<compile_context>
chip_gen: v7x
topology: tpu7x:2x2x1
jax: 0.10.0
libtpu: 0.0.40
codegen_flags: <defaults>
</compile_context>

<pallas_src>
import math
import functools

import jax
import jax.numpy as jnp
from jax.experimental import pallas as pl
from jax.experimental.pallas import tpu as pltpu  # noqa: F401 (kept for scaled-up configs)


# MXU operand dtype (accumulation is always f32). v5e/v6e/v7x peak is bf16.
MM_DTYPE = jnp.bfloat16


def _bf(a):
    return a.astype(MM_DTYPE)


def _layernorm(x, w, b, eps=1e-5):
    mu = jnp.mean(x, axis=-1, keepdims=True)
    var = jnp.mean((x - mu) ** 2, axis=-1, keepdims=True)
    return (x - mu) * jax.lax.rsqrt(var + eps) * w + b


# ------------------------- fused forward Pallas kernel -----------------------
# No grid: the whole (tiny) problem — activations for all B*S rows plus both
# layers' weights — lives in VMEM for the single invocation.

def fused_transformer_kernel(x_ref,
                             wqkv_ref, bqkv_ref, wo_ref, bo_ref,
                             ln1w_ref, ln1b_ref, w1_ref, b1_ref,
                             w2_ref, b2_ref, ln2w_ref, ln2b_ref,
                             flnw_ref, flnb_ref, wc_ref, bc_ref,
                             o_ref, *, num_layers, num_heads, batch, s_pad, s_valid):
    x = x_ref[...]                                         # (B*S_pad, D) f32
    R, D = x.shape
    hd = D // num_heads
    scale = 1.0 / math.sqrt(hd)

    # Key mask for the sublane-padding tail (cols >= s_valid are pads).
    # Hoisted out of the layer/head loops (JAX does not CSE broadcasts).
    col = jax.lax.broadcasted_iota(jnp.int32, (batch, s_pad, s_pad), 2)
    key_mask = col < s_valid                               # (B, S_pad, S_pad)

    for l in range(num_layers):                            # static unroll (NL small)
        wqkv = wqkv_ref[l]; bqkv = bqkv_ref[l]
        wo   = wo_ref[l];   bo   = bo_ref[l]
        w1   = w1_ref[l];   b1   = b1_ref[l]
        w2   = w2_ref[l];   b2   = b2_ref[l]
        ln1w = ln1w_ref[l]; ln1b = ln1b_ref[l]
        ln2w = ln2w_ref[l]; ln2b = ln2b_ref[l]

        # ---- multi-head self-attention (QKV projection over all B*S rows) ----
        qkv = jnp.dot(_bf(x), wqkv, preferred_element_type=jnp.float32) + bqkv  # (R, 3D)
        qkv3 = qkv.reshape(batch, s_pad, 3 * D)            # tile-aligned reshape

        attn = jnp.zeros((R, D), jnp.float32)
        for h in range(num_heads):                         # per head, batched over B
            qh = qkv3[:, :, h * hd:(h + 1) * hd]                       # (B, S, hd)
            kh = qkv3[:, :, D + h * hd:D + (h + 1) * hd]
            vh = qkv3[:, :, 2 * D + h * hd:2 * D + (h + 1) * hd]

            s = jnp.einsum('bsd,btd->bst', _bf(qh), _bf(kh),
                           preferred_element_type=jnp.float32) * scale  # (B, S, S)
            s = jnp.where(key_mask, s, -1e30)              # mask padded keys
            s = s - jnp.max(s, axis=-1, keepdims=True)     # stable softmax (f32)
            p = jnp.exp(s)
            p = p * pl.reciprocal(jnp.sum(p, axis=-1, keepdims=True), approx=True)

            ctx = jnp.einsum('bst,btd->bsd', _bf(p), _bf(vh),
                             preferred_element_type=jnp.float32)        # (B, S, hd)
            # Out-projection distributes over head slices -> no concat needed.
            attn = attn + jnp.dot(_bf(ctx.reshape(R, hd)), wo[h * hd:(h + 1) * hd, :],
                                  preferred_element_type=jnp.float32)
        attn = attn + bo

        # post-norm residual 1
        x = _layernorm(x + attn, ln1w, ln1b)

        # ---- feed-forward (ReLU) over all B*S rows ----
        h1 = jnp.maximum(jnp.dot(_bf(x), w1, preferred_element_type=jnp.float32) + b1, 0.0)
        ff = jnp.dot(_bf(h1), w2, preferred_element_type=jnp.float32) + b2

        # post-norm residual 2
        x = _layernorm(x + ff, ln2w, ln2b)

    # ---- CLS pooling + final LayerNorm + classifier (VPU lane reduction) ----
    cls_rows = jnp.concatenate(
        [x[b * s_pad:b * s_pad + 1, :] for b in range(batch)], axis=0)   # (B, D)
    cls_rows = _layernorm(cls_rows, flnw_ref[...], flnb_ref[...])
    logit = jnp.sum(cls_rows * wc_ref[...], axis=-1, keepdims=True) + bc_ref[...]
    o_ref[...] = logit.astype(o_ref.dtype)                 # (B, 1)


# ------------------------------- glue (JAX) ----------------------------------

def sinusoidal_pe(max_len, d_model):
    position = jnp.arange(max_len, dtype=jnp.float32)[:, None]
    div_term = jnp.exp(jnp.arange(0, d_model, 2, dtype=jnp.float32)
                       * (-math.log(10000.0) / d_model))
    pe = jnp.zeros((max_len, d_model), jnp.float32)
    pe = pe.at[:, 0::2].set(jnp.sin(position * div_term))
    pe = pe.at[:, 1::2].set(jnp.cos(position * div_term))
    return pe


def init_params(key, d_model, ff_dim, num_layers, std=0.02):
    """Weights pre-transposed to [in, out]; big matmul weights stored bf16,
    stacked along a leading [num_layers, ...] axis; biases/LN params f32."""
    key, kc = jax.random.split(key)
    params = {"cls_token": std * jax.random.normal(kc, (1, 1, d_model), jnp.float32)}

    wqkv, wo, w1, w2 = [], [], [], []
    for _ in range(num_layers):
        key, k1, k2, k3, k4 = jax.random.split(key, 5)
        wqkv.append(std * jax.random.normal(k1, (d_model, 3 * d_model), jnp.float32))
        wo.append(std * jax.random.normal(k2, (d_model, d_model), jnp.float32))
        w1.append(std * jax.random.normal(k3, (d_model, ff_dim), jnp.float32))
        w2.append(std * jax.random.normal(k4, (ff_dim, d_model), jnp.float32))
    params["wqkv"] = jnp.stack(wqkv).astype(MM_DTYPE)
    params["wo"]   = jnp.stack(wo).astype(MM_DTYPE)
    params["w1"]   = jnp.stack(w1).astype(MM_DTYPE)
    params["w2"]   = jnp.stack(w2).astype(MM_DTYPE)
    params["bqkv"] = jnp.zeros((num_layers, 1, 3 * d_model), jnp.float32)
    params["bo"]   = jnp.zeros((num_layers, 1, d_model), jnp.float32)
    params["b1"]   = jnp.zeros((num_layers, 1, ff_dim), jnp.float32)
    params["b2"]   = jnp.zeros((num_layers, 1, d_model), jnp.float32)
    params["ln1w"] = jnp.ones((num_layers, 1, d_model), jnp.float32)
    params["ln1b"] = jnp.zeros((num_layers, 1, d_model), jnp.float32)
    params["ln2w"] = jnp.ones((num_layers, 1, d_model), jnp.float32)
    params["ln2b"] = jnp.zeros((num_layers, 1, d_model), jnp.float32)

    key, kcls = jax.random.split(key)
    params["final_lnw"] = jnp.ones((1, d_model), jnp.float32)
    params["final_lnb"] = jnp.zeros((1, d_model), jnp.float32)
    params["wc"] = std * jax.random.normal(kcls, (1, d_model), jnp.float32)  # classifier row
    params["bc"] = jnp.zeros((1, 1), jnp.float32)
    return params


def transformer_classifier_forward(x, params, num_heads):
    """x: [B, L, D] pre-computed embeddings -> logits [B]."""
    B, L, D = x.shape
    S = L + 1                                   # cls + tokens
    S_pad = ((S + 7) // 8) * 8                  # sublane-aligned sequence length

    cls = jnp.broadcast_to(params["cls_token"], (B, 1, D))
    xs = jnp.concatenate([cls, x], axis=1) + sinusoidal_pe(S, D)[None]
    xs = jnp.pad(xs, ((0, 0), (0, S_pad - S), (0, 0)))       # pads masked in-kernel
    xs = xs.reshape(B * S_pad, D).astype(jnp.float32)

    num_layers = params["wqkv"].shape[0]
    kern = functools.partial(
        fused_transformer_kernel,
        num_layers=num_layers, num_heads=num_heads,
        batch=B, s_pad=S_pad, s_valid=S)

    # Single fused pallas_call, no grid: everything fits VMEM at these sizes.
    # For scaled-up configs: raise vmem_limit_bytes via pltpu.CompilerParams,
    # tile over batch rows with a 'parallel' grid axis (v7x megacore), and keep
    # weights bf16 / Buffered(1) to fit v7x's 64 MiB VMEM.
    logits = pl.pallas_call(
        kern,
        out_shape=jax.ShapeDtypeStruct((B, 1), jnp.float32),
    )(xs,
      params["wqkv"], params["bqkv"], params["wo"], params["bo"],
      params["ln1w"], params["ln1b"], params["w1"], params["b1"],
      params["w2"], params["b2"], params["ln2w"], params["ln2b"],
      params["final_lnw"], params["final_lnb"], params["wc"], params["bc"])
    return logits[:, 0]                                       # squeeze(1)


# --------------------------------- main --------------------------------------

if __name__ == "__main__":
    B, L, D, H, NL = 2, 8, 32, 4, 2      # batch, seq_len, embedding_dim, heads, layers
    FF = 4 * D                           # dim_feedforward default

    key = jax.random.PRNGKey(0)
    kx, kp = jax.random.split(key)
    x = jax.random.normal(kx, (B, L, D), jnp.float32)
    params = init_params(kp, D, FF, NL)

    fwd = jax.jit(functools.partial(transformer_classifier_forward, num_heads=H))
    logits = fwd(x, params)
    logits = jax.block_until_ready(logits)
    assert logits.shape == (B,)
    print("KERNEL_OK")
</pallas_src>

<mosaic_0001>
module attributes {stable_mosaic.version = 11 : i64} {
  func.func @fused_transformer_kernel(%arg0: memref<32x32xf32, #tpu.memory_space<vmem>>, %arg1: memref<2x32x96xbf16, #tpu.memory_space<vmem>>, %arg2: memref<2x1x96xf32, #tpu.memory_space<vmem>>, %arg3: memref<2x32x32xbf16, #tpu.memory_space<vmem>>, %arg4: memref<2x1x32xf32, #tpu.memory_space<vmem>>, %arg5: memref<2x1x32xf32, #tpu.memory_space<vmem>>, %arg6: memref<2x1x32xf32, #tpu.memory_space<vmem>>, %arg7: memref<2x32x128xbf16, #tpu.memory_space<vmem>>, %arg8: memref<2x1x128xf32, #tpu.memory_space<vmem>>, %arg9: memref<2x128x32xbf16, #tpu.memory_space<vmem>>, %arg10: memref<2x1x32xf32, #tpu.memory_space<vmem>>, %arg11: memref<2x1x32xf32, #tpu.memory_space<vmem>>, %arg12: memref<2x1x32xf32, #tpu.memory_space<vmem>>, %arg13: memref<1x32xf32, #tpu.memory_space<vmem>>, %arg14: memref<1x32xf32, #tpu.memory_space<vmem>>, %arg15: memref<1x32xf32, #tpu.memory_space<vmem>>, %arg16: memref<1x1xf32, #tpu.memory_space<vmem>>, %arg17: memref<2x1xf32, #tpu.memory_space<vmem>>) attributes {dimension_semantics = [], scalar_prefetch = 0 : i64, scratch_operands = 0 : i64, tpu.core_type = #tpu.core_type<tc>} {
    %c0 = arith.constant 0 : index
    %c0_0 = arith.constant 0 : index
    %0 = vector.load %arg0[%c0, %c0_0] : memref<32x32xf32, #tpu.memory_space<vmem>>, vector<32x32xf32>
    %1 = tpu.iota {dimensions = array<i32: 2>} : vector<2x16x16xi32>
    %c9_i32 = arith.constant 9 : i32
    %2 = vector.broadcast %c9_i32 : i32 to vector<2x16x16xi32>
    %3 = arith.cmpi slt, %1, %2 : vector<2x16x16xi32>
    %c0_1 = arith.constant 0 : index
    %c0_2 = arith.constant 0 : index
    %c0_3 = arith.constant 0 : index
    %4 = vector.load %arg1[%c0_1, %c0_2, %c0_3] : memref<2x32x96xbf16, #tpu.memory_space<vmem>>, vector<1x32x96xbf16>
    %5 = vector.shape_cast %4 : vector<1x32x96xbf16> to vector<32x96xbf16>
    %c0_4 = arith.constant 0 : index
    %c0_5 = arith.constant 0 : index
    %c0_6 = arith.constant 0 : index
    %6 = vector.load %arg2[%c0_4, %c0_5, %c0_6] : memref<2x1x96xf32, #tpu.memory_space<vmem>>, vector<1x1x96xf32>
    %7 = vector.shape_cast %6 : vector<1x1x96xf32> to vector<1x96xf32>
    %c0_7 = arith.constant 0 : index
    %c0_8 = arith.constant 0 : index
    %c0_9 = arith.constant 0 : index
    %8 = vector.load %arg3[%c0_7, %c0_8, %c0_9] : memref<2x32x32xbf16, #tpu.memory_space<vmem>>, vector<1x32x32xbf16>
    %9 = vector.shape_cast %8 : vector<1x32x32xbf16> to vector<32x32xbf16>
    %c0_10 = arith.constant 0 : index
    %c0_11 = arith.constant 0 : index
    %c0_12 = arith.constant 0 : index
    %10 = vector.load %arg4[%c0_10, %c0_11, %c0_12] : memref<2x1x32xf32, #tpu.memory_space<vmem>>, vector<1x1x32xf32>
    %11 = vector.shape_cast %10 : vector<1x1x32xf32> to vector<1x32xf32>
    %c0_13 = arith.constant 0 : index
    %c0_14 = arith.constant 0 : index
    %c0_15 = arith.constant 0 : index
    %12 = vector.load %arg7[%c0_13, %c0_14, %c0_15] : memref<2x32x128xbf16, #tpu.memory_space<vmem>>, vector<1x32x128xbf16>
    %13 = vector.shape_cast %12 : vector<1x32x128xbf16> to vector<32x128xbf16>
    %c0_16 = arith.constant 0 : index
    %c0_17 = arith.constant 0 : index
    %c0_18 = arith.constant 0 : index
    %14 = vector.load %arg8[%c0_16, %c0_17, %c0_18] : memref<2x1x128xf32, #tpu.memory_space<vmem>>, vector<1x1x128xf32>
    %15 = vector.shape_cast %14 : vector<1x1x128xf32> to vector<1x128xf32>
    %c0_19 = arith.constant 0 : index
    %c0_20 = arith.constant 0 : index
    %c0_21 = arith.constant 0 : index
    %16 = vector.load %arg9[%c0_19, %c0_20, %c0_21] : memref<2x128x32xbf16, #tpu.memory_space<vmem>>, vector<1x128x32xbf16>
    %17 = vector.shape_cast %16 : vector<1x128x32xbf16> to vector<128x32xbf16>
    %c0_22 = arith.constant 0 : index
    %c0_23 = arith.constant 0 : index
    %c0_24 = arith.constant 0 : index
    %18 = vector.load %arg10[%c0_22, %c0_23, %c0_24] : memref<2x1x32xf32, #tpu.memory_space<vmem>>, vector<1x1x32xf32>
    %19 = vector.shape_cast %18 : vector<1x1x32xf32> to vector<1x32xf32>
    %c0_25 = arith.constant 0 : index
    %c0_26 = arith.constant 0 : index
    %c0_27 = arith.constant 0 : index
    %20 = vector.load %arg5[%c0_25, %c0_26, %c0_27] : memref<2x1x32xf32, #tpu.memory_space<vmem>>, vector<1x1x32xf32>
    %21 = vector.shape_cast %20 : vector<1x1x32xf32> to vector<1x32xf32>
    %c0_28 = arith.constant 0 : index
    %c0_29 = arith.constant 0 : index
    %c0_30 = arith.constant 0 : index
    %22 = vector.load %arg6[%c0_28, %c0_29, %c0_30] : memref<2x1x32xf32, #tpu.memory_space<vmem>>, vector<1x1x32xf32>
    %23 = vector.shape_cast %22 : vector<1x1x32xf32> to vector<1x32xf32>
    %c0_31 = arith.constant 0 : index
    %c0_32 = arith.constant 0 : index
    %c0_33 = arith.constant 0 : index
    %24 = vector.load %arg11[%c0_31, %c0_32, %c0_33] : memref<2x1x32xf32, #tpu.memory_space<vmem>>, vector<1x1x32xf32>
    %25 = vector.shape_cast %24 : vector<1x1x32xf32> to vector<1x32xf32>
    %c0_34 = arith.constant 0 : index
    %c0_35 = arith.constant 0 : index
    %c0_36 = arith.constant 0 : index
    %26 = vector.load %arg12[%c0_34, %c0_35, %c0_36] : memref<2x1x32xf32, #tpu.memory_space<vmem>>, vector<1x1x32xf32>
    %27 = vector.shape_cast %26 : vector<1x1x32xf32> to vector<1x32xf32>
    %28 = arith.truncf %0 : vector<32x32xf32> to vector<32x32xbf16>
    %cst = arith.constant dense<0.000000e+00> : vector<32x96xf32>
    %29 = tpu.matmul %28, %5, %cst {dimension_numbers = #tpu.dot_dimension_numbers<[1], [0], [0], [1], [0, 0, 1, 1], [], []>} : vector<32x32xbf16>, vector<32x96xbf16>, vector<32x96xf32> -> vector<32x96xf32>
    %30 = vector.broadcast %7 : vector<1x96xf32> to vector<32x96xf32>
    %31 = arith.addf %29, %30 : vector<32x96xf32>
    %32 = vector.shape_cast %31 : vector<32x96xf32> to vector<2x16x96xf32>
    %cst_37 = arith.constant 0.000000e+00 : f32
    %33 = vector.broadcast %cst_37 : f32 to vector<32x32xf32>
    %34 = vector.extract_strided_slice %32 {offsets = [0, 0, 0], sizes = [2, 16, 8], strides = [1, 1, 1]} : vector<2x16x96xf32> to vector<2x16x8xf32>
    %35 = vector.extract_strided_slice %32 {offsets = [0, 0, 32], sizes = [2, 16, 8], strides = [1, 1, 1]} : vector<2x16x96xf32> to vector<2x16x8xf32>
    %36 = vector.extract_strided_slice %32 {offsets = [0, 0, 64], sizes = [2, 16, 8], strides = [1, 1, 1]} : vector<2x16x96xf32> to vector<2x16x8xf32>
    %37 = arith.truncf %34 : vector<2x16x8xf32> to vector<2x16x8xbf16>
    %38 = arith.truncf %35 : vector<2x16x8xf32> to vector<2x16x8xbf16>
    "tpu.trace_start"() <{level = 10 : i32, message = "bsd,btd->bst"}> : () -> ()
    %cst_38 = arith.constant dense<0.000000e+00> : vector<2x16x16xf32>
    %39 = tpu.matmul %37, %38, %cst_38 {dimension_numbers = #tpu.dot_dimension_numbers<[2], [2], [1], [1], [0, 0, 0, 1, 1, 1], [0], [0]>} : vector<2x16x8xbf16>, vector<2x16x8xbf16>, vector<2x16x16xf32> -> vector<2x16x16xf32>
    "tpu.trace_stop"() : () -> ()
    %cst_39 = arith.constant 0.353553385 : f32
    %40 = vector.broadcast %cst_39 : f32 to vector<2x16x16xf32>
    %41 = arith.mulf %39, %40 : vector<2x16x16xf32>
    %cst_40 = arith.constant -1.000000e+30 : f32
    %42 = vector.broadcast %cst_40 : f32 to vector<2x16x16xf32>
    %43 = arith.select %3, %41, %42 : vector<2x16x16xi1>, vector<2x16x16xf32>
    %cst_41 = arith.constant dense<0xFF800000> : vector<2x16xf32>
    %44 = vector.multi_reduction <maximumf>, %43, %cst_41 [2] : vector<2x16x16xf32> to vector<2x16xf32>
    %45 = vector.shape_cast %44 : vector<2x16xf32> to vector<2x16x1xf32>
    %46 = vector.broadcast %45 : vector<2x16x1xf32> to vector<2x16x16xf32>
    %47 = arith.subf %43, %46 : vector<2x16x16xf32>
    %48 = math.exp %47 : vector<2x16x16xf32>
    %cst_42 = arith.constant dense<0.000000e+00> : vector<2x16xf32>
    %49 = vector.multi_reduction <add>, %48, %cst_42 [2] : vector<2x16x16xf32> to vector<2x16xf32>
    %50 = vector.shape_cast %49 : vector<2x16xf32> to vector<2x16x1xf32>
    %51 = tpu.reciprocal %50 {approx = true} : vector<2x16x1xf32> -> vector<2x16x1xf32>
    %52 = vector.broadcast %51 : vector<2x16x1xf32> to vector<2x16x16xf32>
    %53 = arith.mulf %48, %52 : vector<2x16x16xf32>
    %54 = arith.truncf %53 : vector<2x16x16xf32> to vector<2x16x16xbf16>
    %55 = arith.truncf %36 : vector<2x16x8xf32> to vector<2x16x8xbf16>
    "tpu.trace_start"() <{level = 10 : i32, message = "bst,btd->bsd"}> : () -> ()
    %cst_43 = arith.constant dense<0.000000e+00> : vector<2x16x8xf32>
    %56 = tpu.matmul %54, %55, %cst_43 {dimension_numbers = #tpu.dot_dimension_numbers<[2], [1], [1], [2], [0, 0, 0, 1, 1, 2], [0], [0]>} : vector<2x16x16xbf16>, vector<2x16x8xbf16>, vector<2x16x8xf32> -> vector<2x16x8xf32>
    "tpu.trace_stop"() : () -> ()
    %57 = vector.shape_cast %56 : vector<2x16x8xf32> to vector<32x8xf32>
    %58 = arith.truncf %57 : vector<32x8xf32> to vector<32x8xbf16>
    %59 = vector.extract_strided_slice %9 {offsets = [0, 0], sizes = [8, 32], strides = [1, 1]} : vector<32x32xbf16> to vector<8x32xbf16>
    %cst_44 = arith.constant dense<0.000000e+00> : vector<32x32xf32>
    %60 = tpu.matmul %58, %59, %cst_44 {dimension_numbers = #tpu.dot_dimension_numbers<[1], [0], [0], [1], [0, 0, 1, 1], [], []>} : vector<32x8xbf16>, vector<8x32xbf16>, vector<32x32xf32> -> vector<32x32xf32>
    %61 = arith.addf %33, %60 : vector<32x32xf32>
    %62 = vector.extract_strided_slice %32 {offsets = [0, 0, 8], sizes = [2, 16, 8], strides = [1, 1, 1]} : vector<2x16x96xf32> to vector<2x16x8xf32>
    %63 = vector.extract_strided_slice %32 {offsets = [0, 0, 40], sizes = [2, 16, 8], strides = [1, 1, 1]} : vector<2x16x96xf32> to vector<2x16x8xf32>
    %64 = vector.extract_strided_slice %32 {offsets = [0, 0, 72], sizes = [2, 16, 8], strides = [1, 1, 1]} : vector<2x16x96xf32> to vector<2x16x8xf32>
    %65 = arith.truncf %62 : vector<2x16x8xf32> to vector<2x16x8xbf16>
    %66 = arith.truncf %63 : vector<2x16x8xf32> to vector<2x16x8xbf16>
    "tpu.trace_start"() <{level = 10 : i32, message = "bsd,btd->bst"}> : () -> ()
    %cst_45 = arith.constant dense<0.000000e+00> : vector<2x16x16xf32>
    %67 = tpu.matmul %65, %66, %cst_45 {dimension_numbers = #tpu.dot_dimension_numbers<[2], [2], [1], [1], [0, 0, 0, 1, 1, 1], [0], [0]>} : vector<2x16x8xbf16>, vector<2x16x8xbf16>, vector<2x16x16xf32> -> vector<2x16x16xf32>
    "tpu.trace_stop"() : () -> ()
    %cst_46 = arith.constant 0.353553385 : f32
    %68 = vector.broadcast %cst_46 : f32 to vector<2x16x16xf32>
    %69 = arith.mulf %67, %68 : vector<2x16x16xf32>
    %cst_47 = arith.constant -1.000000e+30 : f32
    %70 = vector.broadcast %cst_47 : f32 to vector<2x16x16xf32>
    %71 = arith.select %3, %69, %70 : vector<2x16x16xi1>, vector<2x16x16xf32>
    %cst_48 = arith.constant dense<0xFF800000> : vector<2x16xf32>
    %72 = vector.multi_reduction <maximumf>, %71, %cst_48 [2] : vector<2x16x16xf32> to vector<2x16xf32>
    %73 = vector.shape_cast %72 : vector<2x16xf32> to vector<2x16x1xf32>
    %74 = vector.broadcast %73 : vector<2x16x1xf32> to vector<2x16x16xf32>
    %75 = arith.subf %71, %74 : vector<2x16x16xf32>
    %76 = math.exp %75 : vector<2x16x16xf32>
    %cst_49 = arith.constant dense<0.000000e+00> : vector<2x16xf32>
    %77 = vector.multi_reduction <add>, %76, %cst_49 [2] : vector<2x16x16xf32> to vector<2x16xf32>
    %78 = vector.shape_cast %77 : vector<2x16xf32> to vector<2x16x1xf32>
    %79 = tpu.reciprocal %78 {approx = true} : vector<2x16x1xf32> -> vector<2x16x1xf32>
    %80 = vector.broadcast %79 : vector<2x16x1xf32> to vector<2x16x16xf32>
    %81 = arith.mulf %76, %80 : vector<2x16x16xf32>
    %82 = arith.truncf %81 : vector<2x16x16xf32> to vector<2x16x16xbf16>
    %83 = arith.truncf %64 : vector<2x16x8xf32> to vector<2x16x8xbf16>
    "tpu.trace_start"() <{level = 10 : i32, message = "bst,btd->bsd"}> : () -> ()
    %cst_50 = arith.constant dense<0.000000e+00> : vector<2x16x8xf32>
    %84 = tpu.matmul %82, %83, %cst_50 {dimension_numbers = #tpu.dot_dimension_numbers<[2], [1], [1], [2], [0, 0, 0, 1, 1, 2], [0], [0]>} : vector<2x16x16xbf16>, vector<2x16x8xbf16>, vector<2x16x8xf32> -> vector<2x16x8xf32>
    "tpu.trace_stop"() : () -> ()
    %85 = vector.shape_cast %84 : vector<2x16x8xf32> to vector<32x8xf32>
    %86 = arith.truncf %85 : vector<32x8xf32> to vector<32x8xbf16>
    %87 = vector.extract_strided_slice %9 {offsets = [8, 0], sizes = [8, 32], strides = [1, 1]} : vector<32x32xbf16> to vector<8x32xbf16>
    %cst_51 = arith.constant dense<0.000000e+00> : vector<32x32xf32>
    %88 = tpu.matmul %86, %87, %cst_51 {dimension_numbers = #tpu.dot_dimension_numbers<[1], [0], [0], [1], [0, 0, 1, 1], [], []>} : vector<32x8xbf16>, vector<8x32xbf16>, vector<32x32xf32> -> vector<32x32xf32>
    %89 = arith.addf %61, %88 : vector<32x32xf32>
    %90 = vector.extract_strided_slice %32 {offsets = [0, 0, 16], sizes = [2, 16, 8], strides = [1, 1, 1]} : vector<2x16x96xf32> to vector<2x16x8xf32>
    %91 = vector.extract_strided_slice %32 {offsets = [0, 0, 48], sizes = [2, 16, 8], strides = [1, 1, 1]} : vector<2x16x96xf32> to vector<2x16x8xf32>
    %92 = vector.extract_strided_slice %32 {offsets = [0, 0, 80], sizes = [2, 16, 8], strides = [1, 1, 1]} : vector<2x16x96xf32> to vector<2x16x8xf32>
    %93 = arith.truncf %90 : vector<2x16x8xf32> to vector<2x16x8xbf16>
    %94 = arith.truncf %91 : vector<2x16x8xf32> to vector<2x16x8xbf16>
    "tpu.trace_start"() <{level = 10 : i32, message = "bsd,btd->bst"}> : () -> ()
    %cst_52 = arith.constant dense<0.000000e+00> : vector<2x16x16xf32>
    %95 = tpu.matmul %93, %94, %cst_52 {dimension_numbers = #tpu.dot_dimension_numbers<[2], [2], [1], [1], [0, 0, 0, 1, 1, 1], [0], [0]>} : vector<2x16x8xbf16>, vector<2x16x8xbf16>, vector<2x16x16xf32> -> vector<2x16x16xf32>
    "tpu.trace_stop"() : () -> ()
    %cst_53 = arith.constant 0.353553385 : f32
    %96 = vector.broadcast %cst_53 : f32 to vector<2x16x16xf32>
    %97 = arith.mulf %95, %96 : vector<2x16x16xf32>
    %cst_54 = arith.constant -1.000000e+30 : f32
    %98 = vector.broadcast %cst_54 : f32 to vector<2x16x16xf32>
    %99 = arith.select %3, %97, %98 : vector<2x16x16xi1>, vector<2x16x16xf32>
    %cst_55 = arith.constant dense<0xFF800000> : vector<2x16xf32>
    %100 = vector.multi_reduction <maximumf>, %99, %cst_55 [2] : vector<2x16x16xf32> to vector<2x16xf32>
    %101 = vector.shape_cast %100 : vector<2x16xf32> to vector<2x16x1xf32>
    %102 = vector.broadcast %101 : vector<2x16x1xf32> to vector<2x16x16xf32>
    %103 = arith.subf %99, %102 : vector<2x16x16xf32>
    %104 = math.exp %103 : vector<2x16x16xf32>
    %cst_56 = arith.constant dense<0.000000e+00> : vector<2x16xf32>
    %105 = vector.multi_reduction <add>, %104, %cst_56 [2] : vector<2x16x16xf32> to vector<2x16xf32>
    %106 = vector.shape_cast %105 : vector<2x16xf32> to vector<2x16x1xf32>
    %107 = tpu.reciprocal %106 {approx = true} : vector<2x16x1xf32> -> vector<2x16x1xf32>
    %108 = vector.broadcast %107 : vector<2x16x1xf32> to vector<2x16x16xf32>
    %109 = arith.mulf %104, %108 : vector<2x16x16xf32>
    %110 = arith.truncf %109 : vector<2x16x16xf32> to vector<2x16x16xbf16>
    %111 = arith.truncf %92 : vector<2x16x8xf32> to vector<2x16x8xbf16>
    "tpu.trace_start"() <{level = 10 : i32, message = "bst,btd->bsd"}> : () -> ()
    %cst_57 = arith.constant dense<0.000000e+00> : vector<2x16x8xf32>
    %112 = tpu.matmul %110, %111, %cst_57 {dimension_numbers = #tpu.dot_dimension_numbers<[2], [1], [1], [2], [0, 0, 0, 1, 1, 2], [0], [0]>} : vector<2x16x16xbf16>, vector<2x16x8xbf16>, vector<2x16x8xf32> -> vector<2x16x8xf32>
    "tpu.trace_stop"() : () -> ()
    %113 = vector.shape_cast %112 : vector<2x16x8xf32> to vector<32x8xf32>
    %114 = arith.truncf %113 : vector<32x8xf32> to vector<32x8xbf16>
    %115 = vector.extract_strided_slice %9 {offsets = [16, 0], sizes = [8, 32], strides = [1, 1]} : vector<32x32xbf16> to vector<8x32xbf16>
    %cst_58 = arith.constant dense<0.000000e+00> : vector<32x32xf32>
    %116 = tpu.matmul %114, %115, %cst_58 {dimension_numbers = #tpu.dot_dimension_numbers<[1], [0], [0], [1], [0, 0, 1, 1], [], []>} : vector<32x8xbf16>, vector<8x32xbf16>, vector<32x32xf32> -> vector<32x32xf32>
    %117 = arith.addf %89, %116 : vector<32x32xf32>
    %118 = vector.extract_strided_slice %32 {offsets = [0, 0, 24], sizes = [2, 16, 8], strides = [1, 1, 1]} : vector<2x16x96xf32> to vector<2x16x8xf32>
    %119 = vector.extract_strided_slice %32 {offsets = [0, 0, 56], sizes = [2, 16, 8], strides = [1, 1, 1]} : vector<2x16x96xf32> to vector<2x16x8xf32>
    %120 = vector.extract_strided_slice %32 {offsets = [0, 0, 88], sizes = [2, 16, 8], strides = [1, 1, 1]} : vector<2x16x96xf32> to vector<2x16x8xf32>
    %121 = arith.truncf %118 : vector<2x16x8xf32> to vector<2x16x8xbf16>
    %122 = arith.truncf %119 : vector<2x16x8xf32> to vector<2x16x8xbf16>
    "tpu.trace_start"() <{level = 10 : i32, message = "bsd,btd->bst"}> : () -> ()
    %cst_59 = arith.constant dense<0.000000e+00> : vector<2x16x16xf32>
    %123 = tpu.matmul %121, %122, %cst_59 {dimension_numbers = #tpu.dot_dimension_numbers<[2], [2], [1], [1], [0, 0, 0, 1, 1, 1], [0], [0]>} : vector<2x16x8xbf16>, vector<2x16x8xbf16>, vector<2x16x16xf32> -> vector<2x16x16xf32>
    "tpu.trace_stop"() : () -> ()
    %cst_60 = arith.constant 0.353553385 : f32
    %124 = vector.broadcast %cst_60 : f32 to vector<2x16x16xf32>
    %125 = arith.mulf %123, %124 : vector<2x16x16xf32>
    %cst_61 = arith.constant -1.000000e+30 : f32
    %126 = vector.broadcast %cst_61 : f32 to vector<2x16x16xf32>
    %127 = arith.select %3, %125, %126 : vector<2x16x16xi1>, vector<2x16x16xf32>
    %cst_62 = arith.constant dense<0xFF800000> : vector<2x16xf32>
    %128 = vector.multi_reduction <maximumf>, %127, %cst_62 [2] : vector<2x16x16xf32> to vector<2x16xf32>
    %129 = vector.shape_cast %128 : vector<2x16xf32> to vector<2x16x1xf32>
    %130 = vector.broadcast %129 : vector<2x16x1xf32> to vector<2x16x16xf32>
    %131 = arith.subf %127, %130 : vector<2x16x16xf32>
    %132 = math.exp %131 : vector<2x16x16xf32>
    %cst_63 = arith.constant dense<0.000000e+00> : vector<2x16xf32>
    %133 = vector.multi_reduction <add>, %132, %cst_63 [2] : vector<2x16x16xf32> to vector<2x16xf32>
    %134 = vector.shape_cast %133 : vector<2x16xf32> to vector<2x16x1xf32>
    %135 = tpu.reciprocal %134 {approx = true} : vector<2x16x1xf32> -> vector<2x16x1xf32>
    %136 = vector.broadcast %135 : vector<2x16x1xf32> to vector<2x16x16xf32>
    %137 = arith.mulf %132, %136 : vector<2x16x16xf32>
    %138 = arith.truncf %137 : vector<2x16x16xf32> to vector<2x16x16xbf16>
    %139 = arith.truncf %120 : vector<2x16x8xf32> to vector<2x16x8xbf16>
    "tpu.trace_start"() <{level = 10 : i32, message = "bst,btd->bsd"}> : () -> ()
    %cst_64 = arith.constant dense<0.000000e+00> : vector<2x16x8xf32>
    %140 = tpu.matmul %138, %139, %cst_64 {dimension_numbers = #tpu.dot_dimension_numbers<[2], [1], [1], [2], [0, 0, 0, 1, 1, 2], [0], [0]>} : vector<2x16x16xbf16>, vector<2x16x8xbf16>, vector<2x16x8xf32> -> vector<2x16x8xf32>
    "tpu.trace_stop"() : () -> ()
    %141 = vector.shape_cast %140 : vector<2x16x8xf32> to vector<32x8xf32>
    %142 = arith.truncf %141 : vector<32x8xf32> to vector<32x8xbf16>
    %143 = vector.extract_strided_slice %9 {offsets = [24, 0], sizes = [8, 32], strides = [1, 1]} : vector<32x32xbf16> to vector<8x32xbf16>
    %cst_65 = arith.constant dense<0.000000e+00> : vector<32x32xf32>
    %144 = tpu.matmul %142, %143, %cst_65 {dimension_numbers = #tpu.dot_dimension_numbers<[1], [0], [0], [1], [0, 0, 1, 1], [], []>} : vector<32x8xbf16>, vector<8x32xbf16>, vector<32x32xf32> -> vector<32x32xf32>
    %145 = arith.addf %117, %144 : vector<32x32xf32>
    %146 = vector.broadcast %11 : vector<1x32xf32> to vector<32x32xf32>
    %147 = arith.addf %145, %146 : vector<32x32xf32>
    %148 = arith.addf %0, %147 : vector<32x32xf32>
    %cst_66 = arith.constant dense<0.000000e+00> : vector<32xf32>
    %149 = vector.multi_reduction <add>, %148, %cst_66 [1] : vector<32x32xf32> to vector<32xf32>
    %150 = vector.shape_cast %149 : vector<32xf32> to vector<32x1xf32>
    %cst_67 = arith.constant 3.200000e+01 : f32
    %151 = vector.broadcast %cst_67 : f32 to vector<32x1xf32>
    %152 = arith.divf %150, %151 : vector<32x1xf32>
    %153 = vector.broadcast %152 : vector<32x1xf32> to vector<32x32xf32>
    %154 = arith.subf %148, %153 : vector<32x32xf32>
    %155 = arith.mulf %154, %154 : vector<32x32xf32>
    %cst_68 = arith.constant dense<0.000000e+00> : vector<32xf32>
    %156 = vector.multi_reduction <add>, %155, %cst_68 [1] : vector<32x32xf32> to vector<32xf32>
    %157 = vector.shape_cast %156 : vector<32xf32> to vector<32x1xf32>
    %cst_69 = arith.constant 3.200000e+01 : f32
    %158 = vector.broadcast %cst_69 : f32 to vector<32x1xf32>
    %159 = arith.divf %157, %158 : vector<32x1xf32>
    %160 = vector.broadcast %152 : vector<32x1xf32> to vector<32x32xf32>
    %161 = arith.subf %148, %160 : vector<32x32xf32>
    %cst_70 = arith.constant 9.99999974E-6 : f32
    %162 = vector.broadcast %cst_70 : f32 to vector<32x1xf32>
    %163 = arith.addf %159, %162 : vector<32x1xf32>
    %164 = math.rsqrt %163 : vector<32x1xf32>
    %165 = vector.broadcast %164 : vector<32x1xf32> to vector<32x32xf32>
    %166 = arith.mulf %161, %165 : vector<32x32xf32>
    %167 = vector.broadcast %21 : vector<1x32xf32> to vector<32x32xf32>
    %168 = arith.mulf %166, %167 : vector<32x32xf32>
    %169 = vector.broadcast %23 : vector<1x32xf32> to vector<32x32xf32>
    %170 = arith.addf %168, %169 : vector<32x32xf32>
    %171 = arith.truncf %170 : vector<32x32xf32> to vector<32x32xbf16>
    %cst_71 = arith.constant dense<0.000000e+00> : vector<32x128xf32>
    %172 = tpu.matmul %171, %13, %cst_71 {dimension_numbers = #tpu.dot_dimension_numbers<[1], [0], [0], [1], [0, 0, 1, 1], [], []>} : vector<32x32xbf16>, vector<32x128xbf16>, vector<32x128xf32> -> vector<32x128xf32>
    %173 = vector.broadcast %15 : vector<1x128xf32> to vector<32x128xf32>
    %174 = arith.addf %172, %173 : vector<32x128xf32>
    %cst_72 = arith.constant 0.000000e+00 : f32
    %175 = vector.broadcast %cst_72 : f32 to vector<32x128xf32>
    %176 = arith.maximumf %174, %175 : vector<32x128xf32>
    %177 = arith.truncf %176 : vector<32x128xf32> to vector<32x128xbf16>
    %cst_73 = arith.constant dense<0.000000e+00> : vector<32x32xf32>
    %178 = tpu.matmul %177, %17, %cst_73 {dimension_numbers = #tpu.dot_dimension_numbers<[1], [0], [0], [1], [0, 0, 1, 1], [], []>} : vector<32x128xbf16>, vector<128x32xbf16>, vector<32x32xf32> -> vector<32x32xf32>
    %179 = vector.broadcast %19 : vector<1x32xf32> to vector<32x32xf32>
    %180 = arith.addf %178, %179 : vector<32x32xf32>
    %181 = arith.addf %170, %180 : vector<32x32xf32>
    %cst_74 = arith.constant dense<0.000000e+00> : vector<32xf32>
    %182 = vector.multi_reduction <add>, %181, %cst_74 [1] : vector<32x32xf32> to vector<32xf32>
    %183 = vector.shape_cast %182 : vector<32xf32> to vector<32x1xf32>
    %cst_75 = arith.constant 3.200000e+01 : f32
    %184 = vector.broadcast %cst_75 : f32 to vector<32x1xf32>
    %185 = arith.divf %183, %184 : vector<32x1xf32>
    %186 = vector.broadcast %185 : vector<32x1xf32> to vector<32x32xf32>
    %187 = arith.subf %181, %186 : vector<32x32xf32>
    %188 = arith.mulf %187, %187 : vector<32x32xf32>
    %cst_76 = arith.constant dense<0.000000e+00> : vector<32xf32>
    %189 = vector.multi_reduction <add>, %188, %cst_76 [1] : vector<32x32xf32> to vector<32xf32>
    %190 = vector.shape_cast %189 : vector<32xf32> to vector<32x1xf32>
    %cst_77 = arith.constant 3.200000e+01 : f32
    %191 = vector.broadcast %cst_77 : f32 to vector<32x1xf32>
    %192 = arith.divf %190, %191 : vector<32x1xf32>
    %193 = vector.broadcast %185 : vector<32x1xf32> to vector<32x32xf32>
    %194 = arith.subf %181, %193 : vector<32x32xf32>
    %cst_78 = arith.constant 9.99999974E-6 : f32
    %195 = vector.broadcast %cst_78 : f32 to vector<32x1xf32>
    %196 = arith.addf %192, %195 : vector<32x1xf32>
    %197 = math.rsqrt %196 : vector<32x1xf32>
    %198 = vector.broadcast %197 : vector<32x1xf32> to vector<32x32xf32>
    %199 = arith.mulf %194, %198 : vector<32x32xf32>
    %200 = vector.broadcast %25 : vector<1x32xf32> to vector<32x32xf32>
    %201 = arith.mulf %199, %200 : vector<32x32xf32>
    %202 = vector.broadcast %27 : vector<1x32xf32> to vector<32x32xf32>
    %203 = arith.addf %201, %202 : vector<32x32xf32>
    %c1 = arith.constant 1 : index
    %c0_79 = arith.constant 0 : index
    %c0_80 = arith.constant 0 : index
    %204 = vector.load %arg1[%c1, %c0_79, %c0_80] : memref<2x32x96xbf16, #tpu.memory_space<vmem>>, vector<1x32x96xbf16>
    %205 = vector.shape_cast %204 : vector<1x32x96xbf16> to vector<32x96xbf16>
    %c1_81 = arith.constant 1 : index
    %c0_82 = arith.constant 0 : index
    %c0_83 = arith.constant 0 : index
    %206 = vector.load %arg2[%c1_81, %c0_82, %c0_83] : memref<2x1x96xf32, #tpu.memory_space<vmem>>, vector<1x1x96xf32>
    %207 = vector.shape_cast %206 : vector<1x1x96xf32> to vector<1x96xf32>
    %c1_84 = arith.constant 1 : index
    %c0_85 = arith.constant 0 : index
    %c0_86 = arith.constant 0 : index
    %208 = vector.load %arg3[%c1_84, %c0_85, %c0_86] : memref<2x32x32xbf16, #tpu.memory_space<vmem>>, vector<1x32x32xbf16>
    %209 = vector.shape_cast %208 : vector<1x32x32xbf16> to vector<32x32xbf16>
    %c1_87 = arith.constant 1 : index
    %c0_88 = arith.constant 0 : index
    %c0_89 = arith.constant 0 : index
    %210 = vector.load %arg4[%c1_87, %c0_88, %c0_89] : memref<2x1x32xf32, #tpu.memory_space<vmem>>, vector<1x1x32xf32>
    %211 = vector.shape_cast %210 : vector<1x1x32xf32> to vector<1x32xf32>
    %c1_90 = arith.constant 1 : index
    %c0_91 = arith.constant 0 : index
    %c0_92 = arith.constant 0 : index
    %212 = vector.load %arg7[%c1_90, %c0_91, %c0_92] : memref<2x32x128xbf16, #tpu.memory_space<vmem>>, vector<1x32x128xbf16>
    %213 = vector.shape_cast %212 : vector<1x32x128xbf16> to vector<32x128xbf16>
    %c1_93 = arith.constant 1 : index
    %c0_94 = arith.constant 0 : index
    %c0_95 = arith.constant 0 : index
    %214 = vector.load %arg8[%c1_93, %c0_94, %c0_95] : memref<2x1x128xf32, #tpu.memory_space<vmem>>, vector<1x1x128xf32>
    %215 = vector.shape_cast %214 : vector<1x1x128xf32> to vector<1x128xf32>
    %c1_96 = arith.constant 1 : index
    %c0_97 = arith.constant 0 : index
    %c0_98 = arith.constant 0 : index
    %216 = vector.load %arg9[%c1_96, %c0_97, %c0_98] : memref<2x128x32xbf16, #tpu.memory_space<vmem>>, vector<1x128x32xbf16>
    %217 = vector.shape_cast %216 : vector<1x128x32xbf16> to vector<128x32xbf16>
    %c1_99 = arith.constant 1 : index
    %c0_100 = arith.constant 0 : index
    %c0_101 = arith.constant 0 : index
    %218 = vector.load %arg10[%c1_99, %c0_100, %c0_101] : memref<2x1x32xf32, #tpu.memory_space<vmem>>, vector<1x1x32xf32>
    %219 = vector.shape_cast %218 : vector<1x1x32xf32> to vector<1x32xf32>
    %c1_102 = arith.constant 1 : index
    %c0_103 = arith.constant 0 : index
    %c0_104 = arith.constant 0 : index
    %220 = vector.load %arg5[%c1_102, %c0_103, %c0_104] : memref<2x1x32xf32, #tpu.memory_space<vmem>>, vector<1x1x32xf32>
    %221 = vector.shape_cast %220 : vector<1x1x32xf32> to vector<1x32xf32>
    %c1_105 = arith.constant 1 : index
    %c0_106 = arith.constant 0 : index
    %c0_107 = arith.constant 0 : index
    %222 = vector.load %arg6[%c1_105, %c0_106, %c0_107] : memref<2x1x32xf32, #tpu.memory_space<vmem>>, vector<1x1x32xf32>
    %223 = vector.shape_cast %222 : vector<1x1x32xf32> to vector<1x32xf32>
    %c1_108 = arith.constant 1 : index
    %c0_109 = arith.constant 0 : index
    %c0_110 = arith.constant 0 : index
    %224 = vector.load %arg11[%c1_108, %c0_109, %c0_110] : memref<2x1x32xf32, #tpu.memory_space<vmem>>, vector<1x1x32xf32>
    %225 = vector.shape_cast %224 : vector<1x1x32xf32> to vector<1x32xf32>
    %c1_111 = arith.constant 1 : index
    %c0_112 = arith.constant 0 : index
    %c0_113 = arith.constant 0 : index
    %226 = vector.load %arg12[%c1_111, %c0_112, %c0_113] : memref<2x1x32xf32, #tpu.memory_space<vmem>>, vector<1x1x32xf32>
    %227 = vector.shape_cast %226 : vector<1x1x32xf32> to vector<1x32xf32>
    %228 = arith.truncf %203 : vector<32x32xf32> to vector<32x32xbf16>
    %cst_114 = arith.constant dense<0.000000e+00> : vector<32x96xf32>
    %229 = tpu.matmul %228, %205, %cst_114 {dimension_numbers = #tpu.dot_dimension_numbers<[1], [0], [0], [1], [0, 0, 1, 1], [], []>} : vector<32x32xbf16>, vector<32x96xbf16>, vector<32x96xf32> -> vector<32x96xf32>
    %230 = vector.broadcast %207 : vector<1x96xf32> to vector<32x96xf32>
    %231 = arith.addf %229, %230 : vector<32x96xf32>
    %232 = vector.shape_cast %231 : vector<32x96xf32> to vector<2x16x96xf32>
    %cst_115 = arith.constant 0.000000e+00 : f32
    %233 = vector.broadcast %cst_115 : f32 to vector<32x32xf32>
    %234 = vector.extract_strided_slice %232 {offsets = [0, 0, 0], sizes = [2, 16, 8], strides = [1, 1, 1]} : vector<2x16x96xf32> to vector<2x16x8xf32>
    %235 = vector.extract_strided_slice %232 {offsets = [0, 0, 32], sizes = [2, 16, 8], strides = [1, 1, 1]} : vector<2x16x96xf32> to vector<2x16x8xf32>
    %236 = vector.extract_strided_slice %232 {offsets = [0, 0, 64], sizes = [2, 16, 8], strides = [1, 1, 1]} : vector<2x16x96xf32> to vector<2x16x8xf32>
    %237 = arith.truncf %234 : vector<2x16x8xf32> to vector<2x16x8xbf16>
    %238 = arith.truncf %235 : vector<2x16x8xf32> to vector<2x16x8xbf16>
    "tpu.trace_start"() <{level = 10 : i32, message = "bsd,btd->bst"}> : () -> ()
    %cst_116 = arith.constant dense<0.000000e+00> : vector<2x16x16xf32>
    %239 = tpu.matmul %237, %238, %cst_116 {dimension_numbers = #tpu.dot_dimension_numbers<[2], [2], [1], [1], [0, 0, 0, 1, 1, 1], [0], [0]>} : vector<2x16x8xbf16>, vector<2x16x8xbf16>, vector<2x16x16xf32> -> vector<2x16x16xf32>
    "tpu.trace_stop"() : () -> ()
    %cst_117 = arith.constant 0.353553385 : f32
    %240 = vector.broadcast %cst_117 : f32 to vector<2x16x16xf32>
    %241 = arith.mulf %239, %240 : vector<2x16x16xf32>
    %cst_118 = arith.constant -1.000000e+30 : f32
    %242 = vector.broadcast %cst_118 : f32 to vector<2x16x16xf32>
    %243 = arith.select %3, %241, %242 : vector<2x16x16xi1>, vector<2x16x16xf32>
    %cst_119 = arith.constant dense<0xFF800000> : vector<2x16xf32>
    %244 = vector.multi_reduction <maximumf>, %243, %cst_119 [2] : vector<2x16x16xf32> to vector<2x16xf32>
    %245 = vector.shape_cast %244 : vector<2x16xf32> to vector<2x16x1xf32>
    %246 = vector.broadcast %245 : vector<2x16x1xf32> to vector<2x16x16xf32>
    %247 = arith.subf %243, %246 : vector<2x16x16xf32>
    %248 = math.exp %247 : vector<2x16x16xf32>
    %cst_120 = arith.constant dense<0.000000e+00> : vector<2x16xf32>
    %249 = vector.multi_reduction <add>, %248, %cst_120 [2] : vector<2x16x16xf32> to vector<2x16xf32>
    %250 = vector.shape_cast %249 : vector<2x16xf32> to vector<2x16x1xf32>
    %251 = tpu.reciprocal %250 {approx = true} : vector<2x16x1xf32> -> vector<2x16x1xf32>
    %252 = vector.broadcast %251 : vector<2x16x1xf32> to vector<2x16x16xf32>
    %253 = arith.mulf %248, %252 : vector<2x16x16xf32>
    %254 = arith.truncf %253 : vector<2x16x16xf32> to vector<2x16x16xbf16>
    %255 = arith.truncf %236 : vector<2x16x8xf32> to vector<2x16x8xbf16>
    "tpu.trace_start"() <{level = 10 : i32, message = "bst,btd->bsd"}> : () -> ()
    %cst_121 = arith.constant dense<0.000000e+00> : vector<2x16x8xf32>
    %256 = tpu.matmul %254, %255, %cst_121 {dimension_numbers = #tpu.dot_dimension_numbers<[2], [1], [1], [2], [0, 0, 0, 1, 1, 2], [0], [0]>} : vector<2x16x16xbf16>, vector<2x16x8xbf16>, vector<2x16x8xf32> -> vector<2x16x8xf32>
    "tpu.trace_stop"() : () -> ()
    %257 = vector.shape_cast %256 : vector<2x16x8xf32> to vector<32x8xf32>
    %258 = arith.truncf %257 : vector<32x8xf32> to vector<32x8xbf16>
    %259 = vector.extract_strided_slice %209 {offsets = [0, 0], sizes = [8, 32], strides = [1, 1]} : vector<32x32xbf16> to vector<8x32xbf16>
    %cst_122 = arith.constant dense<0.000000e+00> : vector<32x32xf32>
    %260 = tpu.matmul %258, %259, %cst_122 {dimension_numbers = #tpu.dot_dimension_numbers<[1], [0], [0], [1], [0, 0, 1, 1], [], []>} : vector<32x8xbf16>, vector<8x32xbf16>, vector<32x32xf32> -> vector<32x32xf32>
    %261 = arith.addf %233, %260 : vector<32x32xf32>
    %262 = vector.extract_strided_slice %232 {offsets = [0, 0, 8], sizes = [2, 16, 8], strides = [1, 1, 1]} : vector<2x16x96xf32> to vector<2x16x8xf32>
    %263 = vector.extract_strided_slice %232 {offsets = [0, 0, 40], sizes = [2, 16, 8], strides = [1, 1, 1]} : vector<2x16x96xf32> to vector<2x16x8xf32>
    %264 = vector.extract_strided_slice %232 {offsets = [0, 0, 72], sizes = [2, 16, 8], strides = [1, 1, 1]} : vector<2x16x96xf32> to vector<2x16x8xf32>
    %265 = arith.truncf %262 : vector<2x16x8xf32> to vector<2x16x8xbf16>
    %266 = arith.truncf %263 : vector<2x16x8xf32> to vector<2x16x8xbf16>
    "tpu.trace_start"() <{level = 10 : i32, message = "bsd,btd->bst"}> : () -> ()
    %cst_123 = arith.constant dense<0.000000e+00> : vector<2x16x16xf32>
    %267 = tpu.matmul %265, %266, %cst_123 {dimension_numbers = #tpu.dot_dimension_numbers<[2], [2], [1], [1], [0, 0, 0, 1, 1, 1], [0], [0]>} : vector<2x16x8xbf16>, vector<2x16x8xbf16>, vector<2x16x16xf32> -> vector<2x16x16xf32>
    "tpu.trace_stop"() : () -> ()
    %cst_124 = arith.constant 0.353553385 : f32
    %268 = vector.broadcast %cst_124 : f32 to vector<2x16x16xf32>
    %269 = arith.mulf %267, %268 : vector<2x16x16xf32>
    %cst_125 = arith.constant -1.000000e+30 : f32
    %270 = vector.broadcast %cst_125 : f32 to vector<2x16x16xf32>
    %271 = arith.select %3, %269, %270 : vector<2x16x16xi1>, vector<2x16x16xf32>
    %cst_126 = arith.constant dense<0xFF800000> : vector<2x16xf32>
    %272 = vector.multi_reduction <maximumf>, %271, %cst_126 [2] : vector<2x16x16xf32> to vector<2x16xf32>
    %273 = vector.shape_cast %272 : vector<2x16xf32> to vector<2x16x1xf32>
    %274 = vector.broadcast %273 : vector<2x16x1xf32> to vector<2x16x16xf32>
    %275 = arith.subf %271, %274 : vector<2x16x16xf32>
    %276 = math.exp %275 : vector<2x16x16xf32>
    %cst_127 = arith.constant dense<0.000000e+00> : vector<2x16xf32>
    %277 = vector.multi_reduction <add>, %276, %cst_127 [2] : vector<2x16x16xf32> to vector<2x16xf32>
    %278 = vector.shape_cast %277 : vector<2x16xf32> to vector<2x16x1xf32>
    %279 = tpu.reciprocal %278 {approx = true} : vector<2x16x1xf32> -> vector<2x16x1xf32>
    %280 = vector.broadcast %279 : vector<2x16x1xf32> to vector<2x16x16xf32>
    %281 = arith.mulf %276, %280 : vector<2x16x16xf32>
    %282 = arith.truncf %281 : vector<2x16x16xf32> to vector<2x16x16xbf16>
    %283 = arith.truncf %264 : vector<2x16x8xf32> to vector<2x16x8xbf16>
    "tpu.trace_start"() <{level = 10 : i32, message = "bst,btd->bsd"}> : () -> ()
    %cst_128 = arith.constant dense<0.000000e+00> : vector<2x16x8xf32>
    %284 = tpu.matmul %282, %283, %cst_128 {dimension_numbers = #tpu.dot_dimension_numbers<[2], [1], [1], [2], [0, 0, 0, 1, 1, 2], [0], [0]>} : vector<2x16x16xbf16>, vector<2x16x8xbf16>, vector<2x16x8xf32> -> vector<2x16x8xf32>
    "tpu.trace_stop"() : () -> ()
    %285 = vector.shape_cast %284 : vector<2x16x8xf32> to vector<32x8xf32>
    %286 = arith.truncf %285 : vector<32x8xf32> to vector<32x8xbf16>
    %287 = vector.extract_strided_slice %209 {offsets = [8, 0], sizes = [8, 32], strides = [1, 1]} : vector<32x32xbf16> to vector<8x32xbf16>
    %cst_129 = arith.constant dense<0.000000e+00> : vector<32x32xf32>
    %288 = tpu.matmul %286, %287, %cst_129 {dimension_numbers = #tpu.dot_dimension_numbers<[1], [0], [0], [1], [0, 0, 1, 1], [], []>} : vector<32x8xbf16>, vector<8x32xbf16>, vector<32x32xf32> -> vector<32x32xf32>
    %289 = arith.addf %261, %288 : vector<32x32xf32>
    %290 = vector.extract_strided_slice %232 {offsets = [0, 0, 16], sizes = [2, 16, 8], strides = [1, 1, 1]} : vector<2x16x96xf32> to vector<2x16x8xf32>
    %291 = vector.extract_strided_slice %232 {offsets = [0, 0, 48], sizes = [2, 16, 8], strides = [1, 1, 1]} : vector<2x16x96xf32> to vector<2x16x8xf32>
    %292 = vector.extract_strided_slice %232 {offsets = [0, 0, 80], sizes = [2, 16, 8], strides = [1, 1, 1]} : vector<2x16x96xf32> to vector<2x16x8xf32>
    %293 = arith.truncf %290 : vector<2x16x8xf32> to vector<2x16x8xbf16>
    %294 = arith.truncf %291 : vector<2x16x8xf32> to vector<2x16x8xbf16>
    "tpu.trace_start"() <{level = 10 : i32, message = "bsd,btd->bst"}> : () -> ()
    %cst_130 = arith.constant dense<0.000000e+00> : vector<2x16x16xf32>
    %295 = tpu.matmul %293, %294, %cst_130 {dimension_numbers = #tpu.dot_dimension_numbers<[2], [2], [1], [1], [0, 0, 0, 1, 1, 1], [0], [0]>} : vector<2x16x8xbf16>, vector<2x16x8xbf16>, vector<2x16x16xf32> -> vector<2x16x16xf32>
    "tpu.trace_stop"() : () -> ()
    %cst_131 = arith.constant 0.353553385 : f32
    %296 = vector.broadcast %cst_131 : f32 to vector<2x16x16xf32>
    %297 = arith.mulf %295, %296 : vector<2x16x16xf32>
    %cst_132 = arith.constant -1.000000e+30 : f32
    %298 = vector.broadcast %cst_132 : f32 to vector<2x16x16xf32>
    %299 = arith.select %3, %297, %298 : vector<2x16x16xi1>, vector<2x16x16xf32>
    %cst_133 = arith.constant dense<0xFF800000> : vector<2x16xf32>
    %300 = vector.multi_reduction <maximumf>, %299, %cst_133 [2] : vector<2x16x16xf32> to vector<2x16xf32>
    %301 = vector.shape_cast %300 : vector<2x16xf32> to vector<2x16x1xf32>
    %302 = vector.broadcast %301 : vector<2x16x1xf32> to vector<2x16x16xf32>
    %303 = arith.subf %299, %302 : vector<2x16x16xf32>
    %304 = math.exp %303 : vector<2x16x16xf32>
    %cst_134 = arith.constant dense<0.000000e+00> : vector<2x16xf32>
    %305 = vector.multi_reduction <add>, %304, %cst_134 [2] : vector<2x16x16xf32> to vector<2x16xf32>
    %306 = vector.shape_cast %305 : vector<2x16xf32> to vector<2x16x1xf32>
    %307 = tpu.reciprocal %306 {approx = true} : vector<2x16x1xf32> -> vector<2x16x1xf32>
    %308 = vector.broadcast %307 : vector<2x16x1xf32> to vector<2x16x16xf32>
    %309 = arith.mulf %304, %308 : vector<2x16x16xf32>
    %310 = arith.truncf %309 : vector<2x16x16xf32> to vector<2x16x16xbf16>
    %311 = arith.truncf %292 : vector<2x16x8xf32> to vector<2x16x8xbf16>
    "tpu.trace_start"() <{level = 10 : i32, message = "bst,btd->bsd"}> : () -> ()
    %cst_135 = arith.constant dense<0.000000e+00> : vector<2x16x8xf32>
    %312 = tpu.matmul %310, %311, %cst_135 {dimension_numbers = #tpu.dot_dimension_numbers<[2], [1], [1], [2], [0, 0, 0, 1, 1, 2], [0], [0]>} : vector<2x16x16xbf16>, vector<2x16x8xbf16>, vector<2x16x8xf32> -> vector<2x16x8xf32>
    "tpu.trace_stop"() : () -> ()
    %313 = vector.shape_cast %312 : vector<2x16x8xf32> to vector<32x8xf32>
    %314 = arith.truncf %313 : vector<32x8xf32> to vector<32x8xbf16>
    %315 = vector.extract_strided_slice %209 {offsets = [16, 0], sizes = [8, 32], strides = [1, 1]} : vector<32x32xbf16> to vector<8x32xbf16>
    %cst_136 = arith.constant dense<0.000000e+00> : vector<32x32xf32>
    %316 = tpu.matmul %314, %315, %cst_136 {dimension_numbers = #tpu.dot_dimension_numbers<[1], [0], [0], [1], [0, 0, 1, 1], [], []>} : vector<32x8xbf16>, vector<8x32xbf16>, vector<32x32xf32> -> vector<32x32xf32>
    %317 = arith.addf %289, %316 : vector<32x32xf32>
    %318 = vector.extract_strided_slice %232 {offsets = [0, 0, 24], sizes = [2, 16, 8], strides = [1, 1, 1]} : vector<2x16x96xf32> to vector<2x16x8xf32>
    %319 = vector.extract_strided_slice %232 {offsets = [0, 0, 56], sizes = [2, 16, 8], strides = [1, 1, 1]} : vector<2x16x96xf32> to vector<2x16x8xf32>
    %320 = vector.extract_strided_slice %232 {offsets = [0, 0, 88], sizes = [2, 16, 8], strides = [1, 1, 1]} : vector<2x16x96xf32> to vector<2x16x8xf32>
    %321 = arith.truncf %318 : vector<2x16x8xf32> to vector<2x16x8xbf16>
    %322 = arith.truncf %319 : vector<2x16x8xf32> to vector<2x16x8xbf16>
    "tpu.trace_start"() <{level = 10 : i32, message = "bsd,btd->bst"}> : () -> ()
    %cst_137 = arith.constant dense<0.000000e+00> : vector<2x16x16xf32>
    %323 = tpu.matmul %321, %322, %cst_137 {dimension_numbers = #tpu.dot_dimension_numbers<[2], [2], [1], [1], [0, 0, 0, 1, 1, 1], [0], [0]>} : vector<2x16x8xbf16>, vector<2x16x8xbf16>, vector<2x16x16xf32> -> vector<2x16x16xf32>
    "tpu.trace_stop"() : () -> ()
    %cst_138 = arith.constant 0.353553385 : f32
    %324 = vector.broadcast %cst_138 : f32 to vector<2x16x16xf32>
    %325 = arith.mulf %323, %324 : vector<2x16x16xf32>
    %cst_139 = arith.constant -1.000000e+30 : f32
    %326 = vector.broadcast %cst_139 : f32 to vector<2x16x16xf32>
    %327 = arith.select %3, %325, %326 : vector<2x16x16xi1>, vector<2x16x16xf32>
    %cst_140 = arith.constant dense<0xFF800000> : vector<2x16xf32>
    %328 = vector.multi_reduction <maximumf>, %327, %cst_140 [2] : vector<2x16x16xf32> to vector<2x16xf32>
    %329 = vector.shape_cast %328 : vector<2x16xf32> to vector<2x16x1xf32>
    %330 = vector.broadcast %329 : vector<2x16x1xf32> to vector<2x16x16xf32>
    %331 = arith.subf %327, %330 : vector<2x16x16xf32>
    %332 = math.exp %331 : vector<2x16x16xf32>
    %cst_141 = arith.constant dense<0.000000e+00> : vector<2x16xf32>
    %333 = vector.multi_reduction <add>, %332, %cst_141 [2] : vector<2x16x16xf32> to vector<2x16xf32>
    %334 = vector.shape_cast %333 : vector<2x16xf32> to vector<2x16x1xf32>
    %335 = tpu.reciprocal %334 {approx = true} : vector<2x16x1xf32> -> vector<2x16x1xf32>
    %336 = vector.broadcast %335 : vector<2x16x1xf32> to vector<2x16x16xf32>
    %337 = arith.mulf %332, %336 : vector<2x16x16xf32>
    %338 = arith.truncf %337 : vector<2x16x16xf32> to vector<2x16x16xbf16>
    %339 = arith.truncf %320 : vector<2x16x8xf32> to vector<2x16x8xbf16>
    "tpu.trace_start"() <{level = 10 : i32, message = "bst,btd->bsd"}> : () -> ()
    %cst_142 = arith.constant dense<0.000000e+00> : vector<2x16x8xf32>
    %340 = tpu.matmul %338, %339, %cst_142 {dimension_numbers = #tpu.dot_dimension_numbers<[2], [1], [1], [2], [0, 0, 0, 1, 1, 2], [0], [0]>} : vector<2x16x16xbf16>, vector<2x16x8xbf16>, vector<2x16x8xf32> -> vector<2x16x8xf32>
    "tpu.trace_stop"() : () -> ()
    %341 = vector.shape_cast %340 : vector<2x16x8xf32> to vector<32x8xf32>
    %342 = arith.truncf %341 : vector<32x8xf32> to vector<32x8xbf16>
    %343 = vector.extract_strided_slice %209 {offsets = [24, 0], sizes = [8, 32], strides = [1, 1]} : vector<32x32xbf16> to vector<8x32xbf16>
    %cst_143 = arith.constant dense<0.000000e+00> : vector<32x32xf32>
    %344 = tpu.matmul %342, %343, %cst_143 {dimension_numbers = #tpu.dot_dimension_numbers<[1], [0], [0], [1], [0, 0, 1, 1], [], []>} : vector<32x8xbf16>, vector<8x32xbf16>, vector<32x32xf32> -> vector<32x32xf32>
    %345 = arith.addf %317, %344 : vector<32x32xf32>
    %346 = vector.broadcast %211 : vector<1x32xf32> to vector<32x32xf32>
    %347 = arith.addf %345, %346 : vector<32x32xf32>
    %348 = arith.addf %203, %347 : vector<32x32xf32>
    %cst_144 = arith.constant dense<0.000000e+00> : vector<32xf32>
    %349 = vector.multi_reduction <add>, %348, %cst_144 [1] : vector<32x32xf32> to vector<32xf32>
    %350 = vector.shape_cast %349 : vector<32xf32> to vector<32x1xf32>
    %cst_145 = arith.constant 3.200000e+01 : f32
    %351 = vector.broadcast %cst_145 : f32 to vector<32x1xf32>
    %352 = arith.divf %350, %351 : vector<32x1xf32>
    %353 = vector.broadcast %352 : vector<32x1xf32> to vector<32x32xf32>
    %354 = arith.subf %348, %353 : vector<32x32xf32>
    %355 = arith.mulf %354, %354 : vector<32x32xf32>
    %cst_146 = arith.constant dense<0.000000e+00> : vector<32xf32>
    %356 = vector.multi_reduction <add>, %355, %cst_146 [1] : vector<32x32xf32> to vector<32xf32>
    %357 = vector.shape_cast %356 : vector<32xf32> to vector<32x1xf32>
    %cst_147 = arith.constant 3.200000e+01 : f32
    %358 = vector.broadcast %cst_147 : f32 to vector<32x1xf32>
    %359 = arith.divf %357, %358 : vector<32x1xf32>
    %360 = vector.broadcast %352 : vector<32x1xf32> to vector<32x32xf32>
    %361 = arith.subf %348, %360 : vector<32x32xf32>
    %cst_148 = arith.constant 9.99999974E-6 : f32
    %362 = vector.broadcast %cst_148 : f32 to vector<32x1xf32>
    %363 = arith.addf %359, %362 : vector<32x1xf32>
    %364 = math.rsqrt %363 : vector<32x1xf32>
    %365 = vector.broadcast %364 : vector<32x1xf32> to vector<32x32xf32>
    %366 = arith.mulf %361, %365 : vector<32x32xf32>
    %367 = vector.broadcast %221 : vector<1x32xf32> to vector<32x32xf32>
    %368 = arith.mulf %366, %367 : vector<32x32xf32>
    %369 = vector.broadcast %223 : vector<1x32xf32> to vector<32x32xf32>
    %370 = arith.addf %368, %369 : vector<32x32xf32>
    %371 = arith.truncf %370 : vector<32x32xf32> to vector<32x32xbf16>
    %cst_149 = arith.constant dense<0.000000e+00> : vector<32x128xf32>
    %372 = tpu.matmul %371, %213, %cst_149 {dimension_numbers = #tpu.dot_dimension_numbers<[1], [0], [0], [1], [0, 0, 1, 1], [], []>} : vector<32x32xbf16>, vector<32x128xbf16>, vector<32x128xf32> -> vector<32x128xf32>
    %373 = vector.broadcast %215 : vector<1x128xf32> to vector<32x128xf32>
    %374 = arith.addf %372, %373 : vector<32x128xf32>
    %cst_150 = arith.constant 0.000000e+00 : f32
    %375 = vector.broadcast %cst_150 : f32 to vector<32x128xf32>
    %376 = arith.maximumf %374, %375 : vector<32x128xf32>
    %377 = arith.truncf %376 : vector<32x128xf32> to vector<32x128xbf16>
    %cst_151 = arith.constant dense<0.000000e+00> : vector<32x32xf32>
    %378 = tpu.matmul %377, %217, %cst_151 {dimension_numbers = #tpu.dot_dimension_numbers<[1], [0], [0], [1], [0, 0, 1, 1], [], []>} : vector<32x128xbf16>, vector<128x32xbf16>, vector<32x32xf32> -> vector<32x32xf32>
    %379 = vector.broadcast %219 : vector<1x32xf32> to vector<32x32xf32>
    %380 = arith.addf %378, %379 : vector<32x32xf32>
    %381 = arith.addf %370, %380 : vector<32x32xf32>
    %cst_152 = arith.constant dense<0.000000e+00> : vector<32xf32>
    %382 = vector.multi_reduction <add>, %381, %cst_152 [1] : vector<32x32xf32> to vector<32xf32>
    %383 = vector.shape_cast %382 : vector<32xf32> to vector<32x1xf32>
    %cst_153 = arith.constant 3.200000e+01 : f32
    %384 = vector.broadcast %cst_153 : f32 to vector<32x1xf32>
    %385 = arith.divf %383, %384 : vector<32x1xf32>
    %386 = vector.broadcast %385 : vector<32x1xf32> to vector<32x32xf32>
    %387 = arith.subf %381, %386 : vector<32x32xf32>
    %388 = arith.mulf %387, %387 : vector<32x32xf32>
    %cst_154 = arith.constant dense<0.000000e+00> : vector<32xf32>
    %389 = vector.multi_reduction <add>, %388, %cst_154 [1] : vector<32x32xf32> to vector<32xf32>
    %390 = vector.shape_cast %389 : vector<32xf32> to vector<32x1xf32>
    %cst_155 = arith.constant 3.200000e+01 : f32
    %391 = vector.broadcast %cst_155 : f32 to vector<32x1xf32>
    %392 = arith.divf %390, %391 : vector<32x1xf32>
    %393 = vector.broadcast %385 : vector<32x1xf32> to vector<32x32xf32>
    %394 = arith.subf %381, %393 : vector<32x32xf32>
    %cst_156 = arith.constant 9.99999974E-6 : f32
    %395 = vector.broadcast %cst_156 : f32 to vector<32x1xf32>
    %396 = arith.addf %392, %395 : vector<32x1xf32>
    %397 = math.rsqrt %396 : vector<32x1xf32>
    %398 = vector.broadcast %397 : vector<32x1xf32> to vector<32x32xf32>
    %399 = arith.mulf %394, %398 : vector<32x32xf32>
    %400 = vector.broadcast %225 : vector<1x32xf32> to vector<32x32xf32>
    %401 = arith.mulf %399, %400 : vector<32x32xf32>
    %402 = vector.broadcast %227 : vector<1x32xf32> to vector<32x32xf32>
    %403 = arith.addf %401, %402 : vector<32x32xf32>
    %404 = vector.extract_strided_slice %403 {offsets = [0, 0], sizes = [1, 32], strides = [1, 1]} : vector<32x32xf32> to vector<1x32xf32>
    %405 = vector.extract_strided_slice %403 {offsets = [16, 0], sizes = [1, 32], strides = [1, 1]} : vector<32x32xf32> to vector<1x32xf32>
    %406 = tpu.concatenate %404, %405 in 0 : vector<1x32xf32>, vector<1x32xf32> -> vector<2x32xf32>
    %c0_157 = arith.constant 0 : index
    %c0_158 = arith.constant 0 : index
    %407 = vector.load %arg13[%c0_157, %c0_158] : memref<1x32xf32, #tpu.memory_space<vmem>>, vector<1x32xf32>
    %c0_159 = arith.constant 0 : index
    %c0_160 = arith.constant 0 : index
    %408 = vector.load %arg14[%c0_159, %c0_160] : memref<1x32xf32, #tpu.memory_space<vmem>>, vector<1x32xf32>
    %cst_161 = arith.constant dense<0.000000e+00> : vector<2xf32>
    %409 = vector.multi_reduction <add>, %406, %cst_161 [1] : vector<2x32xf32> to vector<2xf32>
    %410 = vector.shape_cast %409 : vector<2xf32> to vector<2x1xf32>
    %cst_162 = arith.constant 3.200000e+01 : f32
    %411 = vector.broadcast %cst_162 : f32 to vector<2x1xf32>
    %412 = arith.divf %410, %411 : vector<2x1xf32>
    %413 = vector.broadcast %412 : vector<2x1xf32> to vector<2x32xf32>
    %414 = arith.subf %406, %413 : vector<2x32xf32>
    %415 = arith.mulf %414, %414 : vector<2x32xf32>
    %cst_163 = arith.constant dense<0.000000e+00> : vector<2xf32>
    %416 = vector.multi_reduction <add>, %415, %cst_163 [1] : vector<2x32xf32> to vector<2xf32>
    %417 = vector.shape_cast %416 : vector<2xf32> to vector<2x1xf32>
    %cst_164 = arith.constant 3.200000e+01 : f32
    %418 = vector.broadcast %cst_164 : f32 to vector<2x1xf32>
    %419 = arith.divf %417, %418 : vector<2x1xf32>
    %420 = vector.broadcast %412 : vector<2x1xf32> to vector<2x32xf32>
    %421 = arith.subf %406, %420 : vector<2x32xf32>
    %cst_165 = arith.constant 9.99999974E-6 : f32
    %422 = vector.broadcast %cst_165 : f32 to vector<2x1xf32>
    %423 = arith.addf %419, %422 : vector<2x1xf32>
    %424 = math.rsqrt %423 : vector<2x1xf32>
    %425 = vector.broadcast %424 : vector<2x1xf32> to vector<2x32xf32>
    %426 = arith.mulf %421, %425 : vector<2x32xf32>
    %427 = vector.broadcast %407 : vector<1x32xf32> to vector<2x32xf32>
    %428 = arith.mulf %426, %427 : vector<2x32xf32>
    %429 = vector.broadcast %408 : vector<1x32xf32> to vector<2x32xf32>
    %430 = arith.addf %428, %429 : vector<2x32xf32>
    %c0_166 = arith.constant 0 : index
    %c0_167 = arith.constant 0 : index
    %431 = vector.load %arg15[%c0_166, %c0_167] : memref<1x32xf32, #tpu.memory_space<vmem>>, vector<1x32xf32>
    %432 = vector.broadcast %431 : vector<1x32xf32> to vector<2x32xf32>
    %433 = arith.mulf %430, %432 : vector<2x32xf32>
    %cst_168 = arith.constant dense<0.000000e+00> : vector<2xf32>
    %434 = vector.multi_reduction <add>, %433, %cst_168 [1] : vector<2x32xf32> to vector<2xf32>
    %435 = vector.shape_cast %434 : vector<2xf32> to vector<2x1xf32>
    %c0_169 = arith.constant 0 : index
    %c0_170 = arith.constant 0 : index
    %436 = vector.load %arg16[%c0_169, %c0_170] : memref<1x1xf32, #tpu.memory_space<vmem>>, vector<1x1xf32>
    %437 = vector.broadcast %436 : vector<1x1xf32> to vector<2x1xf32>
    %438 = arith.addf %435, %437 : vector<2x1xf32>
    %c0_171 = arith.constant 0 : index
    %c0_172 = arith.constant 0 : index
    %439 = vector.load %arg17[%c0_171, %c0_172] : memref<2x1xf32, #tpu.memory_space<vmem>>, vector<2x1xf32>
    tpu.vector_store %arg17[%c0_171, %c0_172], %438 {strides = array<i32>} : memref<2x1xf32, #tpu.memory_space<vmem>>, vector<2x1xf32>,
    return
  }
}

</mosaic_0001>

<bundles_post_ra>
// kernel: transformer_classifier_forward.1
= control target key start
LH: loop header
LB: loop body
LE: loop exit
PB: predicated region body
PF: predicated region fallthrough
CT: control target
= control target key end

     0   :  { %vm122_vm0 = vcmask 261120   ;;  %v4322_v8 = vmov 0.0   ;;  %vm4323_vm1 = vmmov 0   ;;  %s4324_s25 = smov 96   ;;  %vm183_vm2 = vcmask 64512   ;;  %s4325_s27 = smov 64   ;;  %s5124_s1 = inlined_call_operand.vmem [shape: bf16[2,32,96], index: 1, kind: input, shape index: {}]   ;;  %s5125_s0 = inlined_call_operand.vmem [shape: f32[32,32], index: 0, kind: input, shape index: {}]   ;;  %s5126_s2 = inlined_call_operand.vmem [shape: f32[2,1,96], index: 2, kind: input, shape index: {}]   ;;  %s5127_s3 = inlined_call_operand.vmem [shape: bf16[2,32,32], index: 3, kind: input, shape index: {}]   ;;  %s5128_s4 = inlined_call_operand.vmem [shape: f32[2,1,32], index: 4, kind: input, shape index: {}]   ;;  %s5129_s7 = inlined_call_operand.vmem [shape: bf16[2,32,128], index: 7, kind: input, shape index: {}]   ;;  %s5130_s9 = inlined_call_operand.vmem [shape: bf16[2,128,32], index: 9, kind: input, shape index: {}]   ;;  %s5131_s5 = inlined_call_operand.vmem [shape: f32[2,1,32], index: 5, kind: input, shape index: {}]   ;;  %s5132_s6 = inlined_call_operand.vmem [shape: f32[2,1,32], index: 6, kind: input, shape index: {}]   ;;  %s5133_s8 = inlined_call_operand.vmem [shape: f32[2,1,128], index: 8, kind: input, shape index: {}]   ;;  %s5134_s10 = inlined_call_operand.vmem [shape: f32[2,1,32], index: 10, kind: input, shape index: {}]   ;;  %s5135_s11 = inlined_call_operand.vmem [shape: f32[2,1,32], index: 11, kind: input, shape index: {}]   ;;  %s5136_s12 = inlined_call_operand.vmem [shape: f32[2,1,32], index: 12, kind: input, shape index: {}]   ;;  %s5137_s16 = inlined_call_operand.<no memory space> [shape: f32[1,1], index: 16, kind: input, shape index: {}]   ;;  %s5138_s13 = inlined_call_operand.vmem [shape: f32[1,32], index: 13, kind: input, shape index: {}]   ;;  %s5139_s14 = inlined_call_operand.vmem [shape: f32[1,32], index: 14, kind: input, shape index: {}]   ;;  %s5140_s15 = inlined_call_operand.vmem [shape: f32[1,32], index: 15, kind: input, shape index: {}]   ;;  %s5141_s17 = inlined_call_operand.vmem [shape: f32[2,1], index: 17, kind: output, shape index: {}]  }
   0x1   :  { %5156 = sst [smem:[#allocation3_spill]] %s5124_s1  ;;  %3805 = vmatprep.subr.bf16.mxu0 %v4322_v8  ;;  %v3519_v10 = vld [vmem:[%s5126_s2] ss:$0 sm:$0xff]  ;;  %3807 = vmatprep.mubr.msk.bf16.mxu0 %vm4323_vm1, %v4322_v8  ;;  %v63_v27 = vlaneseq  ;;  %vm289_vm4 = vcmask 130048   ;;  %s4326_s28 = smov 88   ;;  %vm690_vm5 = vcmask 1043456  }
   0x2   :  { %5157 = sst [smem:[#allocation4_spill]] %s5125_s0  ;;  %s5158_s26 = sld [smem:[#allocation3_spill]]  ;;  %vm3462_vm6 = vcmask 1040384   ;;  %vm3466_vm7 = vcmask 254976   ;;  %vm3513_vm8 = vcmask 1024  }
   0x3   :  { %s5159_s30 = sld [smem:[#allocation4_spill]]  ;;  %v4474_v29 = vand.u32 127, %v63_v27  ;;  %s4327_s29 = smov 120  }
   0x4   :  { %s5152_s1 = smov 80   ;;  %s5154_s18 = smov 112  }
   0x5   :  { %vm65_vm3 = vcmp.lt.s32.totalorder %v4474_v29, 9  ;;  %s4330_s19 = smov 56   ;;  %s5150_s0 = smov 48  }
   0x6   :  { %s5148_s24 = smov 72   ;;  %s5146_s20 = smov 104  }
   0x7   :  { %s5144_s23 = smov 40  }
   0x8   :  { %v4136_v0 = vld [vmem:[%s5158_s26] sm:$0xff]   ;;  %v4137_v1 = vld [vmem:[%s5158_s26 + $0x8] sm:$0xff]  }
   0x9   :  { %3779 = vmatprep.subr.bf16.mxu1 %v4136_v0  ;;  %v59_v2 = vld [vmem:[%s5159_s30] sm:$0xff]  ;;  %v60_v3 = vld [vmem:[%s5159_s30 + $0x8] sm:$0xff]  ;;  %v61_v4 = vld [vmem:[%s5159_s30 + $0x10] sm:$0xff] }
   0xa   :  { %3780 = vmatpush3.bf16.msra.mxu1 %v4136_v0  ;;  %v102_v5 = vpack.c.bf16 %v60_v3, %v59_v2  ;;  %v62_v6 = vld [vmem:[%s5159_s30 + $0x18] sm:$0xff] }
   0xb   :  { %3781 = vmatprep.subr.bf16.mxu1 %v4137_v1  ;;  %v103_v7 = vpack.c.bf16 %v62_v6, %v61_v4 }
   0xc   :  { %3783 = vmatprep.mubr.msk.bf16.mxu1 %vm122_vm0, %v102_v5 }
   0xe   :  { %3782 = vmatpush3.bf16.msra.mxu1 %v4137_v1 }
   0xf   :  { %3787 = vmatprep.subr.bf16.mxu1 %v4322_v8 }
  0x11   :  { %3784 = vmatmul.mubr.msk.bf16.vlgmr.msra.gmra.mrb[0].mxu1 %vm122_vm0, %v103_v7 }
  0x12   :  { %3789 = vmatprep.mubr.msk.bf16.mxu1 %vm4323_vm1, %v4322_v8 }
  0xe4   :  { %v3785_v9 = vpop.f32.mrb[0].mxu1 }
  0xe5   :  { %v163_v11 = vpop.f32.mrb[1].mxu1  ;;  %v172_v13 = vadd.f32 %v3785_v9, %v3519_v10 }
  0xe6   :  { %v3786_v12 = vpop.f32.mrb[2].mxu1  ;;  %v164_v16 = vadd.f32 %v3519_v10, %v163_v11 }
  0xe7   :  { %v175_v14 = vadd.f32 %v3786_v12, %v3519_v10  ;;  %v166_v15 = vpop.f32.mrb[3].mxu1 }
  0xe8   :  { %v167_v17 = vadd.f32 %v3519_v10, %v166_v15 }
  0xe9   :  { %v4454_v18 = vpack.c.bf16 %v175_v14, %v172_v13 }
  0xea   :  { %v4456_v19 = vpack.c.bf16 %v167_v17, %v164_v16 }
  0xec   :  { %181 = vrot.lane.b32.xlu0 %v4456_v19, %s4324_s25 }
  0xf0   :  { %232 = vrot.lane.b32.xlu0 %v4454_v18, %s4324_s25 }
 0x15e   :  { %v182_v20 = vpop.permute.xlu0 %181 }
 0x15f   :  { %v188_v21 = vsel %vm183_vm2, %v182_v20, 0 }
 0x160   :  { %3788 = vmatpush3.bf16.xpose.msra.mxu1 %v188_v21 }
 0x161   :  { %3793 = vmatprep.subr.bf16.mxu1 %v4322_v8 }
 0x162   :  { %v233_v22 = vpop.permute.xlu0 %232 }
 0x163   :  { %v238_v23 = vsel %vm183_vm2, %v233_v22, 0 }
 0x167   :  { %3790 = vmatmul.mubr.msk.bf16.vlgmr.msra.gmra.mrb[4].mxu1 %vm183_vm2, %v4456_v19 }
 0x168   :  { %3794 = vmatpush3.bf16.xpose.msra.mxu1 %v238_v23  ;;  %3795 = vmatprep.mubr.msk.bf16.mxu1 %vm4323_vm1, %v4322_v8 }
 0x169   :  { %3799 = vmatprep.subr.bf16.mxu1 %v4322_v8 }
 0x16f   :  { %3796 = vmatmul.mubr.msk.bf16.vlgmr.msra.gmra.mrb[8].mxu1 %vm183_vm2, %v4454_v18 }
 0x170   :  { %3801 = vmatprep.mubr.msk.bf16.mxu1 %vm4323_vm1, %v4322_v8 }
 0x23a   :  { %v224_v24 = vpop.f32.mrb[4].mxu1 }
 0x23b   :  { %v3791_v25 = vpop.f32.mrb[5].mxu1  ;;  %v281_v54 = vmul.f32 0.35355338, %v224_v24 }
 0x23c   :  { %v227_v26 = vpop.f32.mrb[6].mxu1 }
 0x23d   :  { %v3792_v28 = vpop.f32.mrb[7].mxu1  ;;  %v282_v47 = vmul.f32 0.35355338, %v227_v26  ;;  %v285_v55 = vsel %vm65_vm3, %v281_v54, -1e+30 }
 0x23e   :  { %v290_v56 = vsel %vm289_vm4, %v285_v55, -inf }
 0x23f   :  { %v286_v50 = vsel %vm65_vm3, %v282_v47, -1e+30 }
 0x240   :  { %v293_v52 = vsel %vm289_vm4, %v286_v50, -inf }
 0x242   :  { %v274_v30 = vpop.f32.mrb[8].mxu1 }
 0x243   :  { %v283_v31 = vmul.f32 0.35355338, %v274_v30  ;;  %v3797_v32 = vpop.f32.mrb[9].mxu1 }
 0x244   :  { %v277_v33 = vpop.f32.mrb[10].mxu1 }
 0x245   :  { %v284_v34 = vmul.f32 0.35355338, %v277_v33  ;;  %v3798_v35 = vpop.f32.mrb[11].mxu1  ;;  %v287_v36 = vsel %vm65_vm3, %v283_v31, -1e+30 }
 0x246   :  { %v296_v37 = vsel %vm289_vm4, %v287_v36, -inf }
 0x247   :  { %297 = vmax.xlane.f32.xlu1 %v296_v37  ;;  %v288_v38 = vsel %vm65_vm3, %v284_v34, -1e+30 }
 0x248   :  { %v299_v39 = vsel %vm289_vm4, %v288_v38, -inf }
 0x24b   :  { %300 = vmax.xlane.f32.xlu1 %v299_v39 }
 0x25c   :  { %383 = vrot.lane.b32.xlu1 %v4454_v18, %s4325_s27 }
 0x2d4   :  { %v298_v40 = vpop.xlane.xlu1 %297 }
 0x2d5   :  { %v304_v41 = vsub.f32 %v287_v36, %v298_v40 }
 0x2d7   :  { %v310_v42 = vmul.f32 1.442695, %v304_v41 }
 0x2d8   :  { %v301_v43 = vpop.xlane.xlu1 %300 }
 0x2d9   :  { %4160 = vpow2.f32 %v310_v42  ;;  %v305_v44 = vsub.f32 %v288_v38, %v301_v43 }
 0x2db   :  { %v312_v45 = vmul.f32 1.442695, %v305_v44 }
 0x2dc   :  { %v384_v46 = vpop.permute.xlu1 %383 }
 0x2dd   :  { %4162 = vpow2.f32 %v312_v45  ;;  %3806 = vmatpush3.bf16.msra.mxu0 %v384_v46 }
 0x2de   :  { %3817 = vmatprep.subr.bf16.mxu0 %v4322_v8 }
 0x2e3   :  { %v4161_v48 = vpop.eup %4160 }
 0x2e4   :  { %v320_v49 = vsel %vm289_vm4, %v4161_v48, 0.0 }
 0x2e5   :  { %321 = vadd.xlane.f32.xlu0 %v320_v49 }
 0x2e7   :  { %v4163_v51 = vpop.eup %4162 }
 0x2e8   :  { %v323_v53 = vsel %vm289_vm4, %v4163_v51, 0.0 }
 0x2e9   :  { %294 = vmax.xlane.f32.xlu0 %v293_v52  ;;  %324 = vadd.xlane.f32.xlu1 %v323_v53 }
 0x2fa   :  { %485 = vrot.lane.b32.xlu1 %v4454_v18, %s4326_s28 }
 0x2fe   :  { %483 = vrot.lane.b32.xlu1 %v4454_v18, %s4327_s29 }
 0x322   :  { %291 = vmax.xlane.f32.xlu1 %v290_v56 }
 0x333   :  { %432 = vrot.lane.b32.xlu1 %v4456_v19, %s4327_s29 }
 0x372   :  { %v322_v57 = vpop.xlane.xlu0 %321 }
 0x373   :  { %4164 = vrcp.f32 %v322_v57 }
 0x376   :  { %v325_v58 = vpop.xlane.xlu1 %324  ;;  %v295_v3 = vpop.xlane.xlu0 %294 }
 0x377   :  { %4166 = vrcp.f32 %v325_v58  ;;  %v303_v4 = vsub.f32 %v286_v50, %v295_v3 }
 0x379   :  { %v308_v7 = vmul.f32 1.442695, %v303_v4 }
 0x37a   :  { %v486_v63 = vpop.permute.xlu1 %485 }
 0x37b   :  { %v491_v1 = vsel %vm183_vm2, %v486_v63, 0 }
 0x37d   :  { %v4165_v59 = vpop.eup %4164 }
 0x37e   :  { %v332_v61 = vmul.f32 %v4165_v59, %v4161_v48  ;;  %v484_v2 = vpop.permute.xlu1 %483 }
 0x381   :  { %v4167_v60 = vpop.eup %4166 }
 0x382   :  { %v333_v62 = vmul.f32 %v4167_v60, %v4163_v51 }
 0x384   :  { %v335_v0 = vpack.c.bf16 %v333_v62, %v332_v61 }
 0x386   :  { %3808 = vmatmul.mubr.msk.bf16.vlgmr.msra.gmra.mrb[0].mxu0 %vm289_vm4, %v335_v0 }
 0x387   :  { %3818 = vmatpush3.bf16.xpose.msra.mxu0 %v491_v1  ;;  %3819 = vmatprep.mubr.msk.bf16.mxu0 %vm4323_vm1, %v4322_v8 }
 0x388   :  { %3829 = vmatprep.subr.bf16.mxu0 %v4322_v8 }
 0x38e   :  { %3820 = vmatmul.mubr.msk.bf16.vlgmr.msra.gmra.mrb[4].mxu0 %vm183_vm2, %v484_v2 }
 0x38f   :  { %3831 = vmatprep.mubr.msk.bf16.mxu0 %vm4323_vm1, %v4322_v8 }
 0x3af   :  { %v292_v5 = vpop.xlane.xlu1 %291 }
 0x3b0   :  { %v302_v6 = vsub.f32 %v285_v55, %v292_v5 }
 0x3b2   :  { %v306_v9 = vmul.f32 1.442695, %v302_v6 }
 0x3b3   :  { %v433_v42 = vpop.permute.xlu1 %432 }
 0x3b4   :  { %4168 = vpow2.f32 %v306_v9 }
 0x3b5   :  { %4170 = vpow2.f32 %v308_v7 }
 0x3be   :  { %v4169_v10 = vpop.eup %4168 }
 0x3bf   :  { %v314_v11 = vsel %vm289_vm4, %v4169_v10, 0.0  ;;  %v4171_v12 = vpop.eup %4170 }
 0x3c0   :  { %315 = vadd.xlane.f32.xlu0 %v314_v11  ;;  %v317_v13 = vsel %vm289_vm4, %v4171_v12, 0.0 }
 0x3c4   :  { %318 = vadd.xlane.f32.xlu0 %v317_v13 }
 0x3da   :  { %336 = vrot.lane.b32.xlu0 %v4456_v19, %s4325_s27 }
 0x3de   :  { %434 = vrot.lane.b32.xlu0 %v4456_v19, %s4326_s28 }
 0x44d   :  { %v316_v14 = vpop.xlane.xlu0 %315 }
 0x44e   :  { %4172 = vrcp.f32 %v316_v14 }
 0x451   :  { %v319_v15 = vpop.xlane.xlu0 %318 }
 0x452   :  { %4174 = vrcp.f32 %v319_v15 }
 0x455   :  { %v337_v16 = vpop.permute.xlu0 %336 }
 0x456   :  { %3800 = vmatpush3.bf16.msra.mxu1 %v337_v16 }
 0x457   :  { %3811 = vmatprep.subr.bf16.mxu1 %v4322_v8 }
 0x458   :  { %v4173_v20 = vpop.eup %4172 }
 0x459   :  { %v4515_v17 = vpop.f32.mrb[0].mxu0  ;;  %v330_v26 = vmul.f32 %v4173_v20, %v4169_v10  ;;  %v435_v28 = vpop.permute.xlu0 %434 }
 0x45a   :  { %v3809_v21 = vpop.f32.mrb[1].mxu0  ;;  %v440_v31 = vsel %vm183_vm2, %v435_v28, 0 }
 0x45b   :  { %v4517_v22 = vpop.f32.mrb[2].mxu0 }
 0x45c   :  { %v4175_v23 = vpop.eup %4174  ;;  %v431_v24 = vpack.c.bf16 %v4517_v22, %v4515_v17  ;;  %v3810_v25 = vpop.f32.mrb[3].mxu0 }
 0x45d   :  { %v331_v27 = vmul.f32 %v4175_v23, %v4171_v12 }
 0x45f   :  { %v334_v30 = vpack.c.bf16 %v331_v27, %v330_v26 }
 0x461   :  { %3802 = vmatmul.mubr.msk.bf16.vlgmr.msra.gmra.mrb[12].mxu1 %vm289_vm4, %v334_v30  ;;  %v527_v32 = vpop.f32.mrb[4].mxu0 }
 0x462   :  { %3812 = vmatpush3.bf16.xpose.msra.mxu1 %v440_v31  ;;  %v536_v33 = vmul.f32 0.35355338, %v527_v32  ;;  %v3821_v34 = vpop.f32.mrb[5].mxu0  ;;  %3813 = vmatprep.mubr.msk.bf16.mxu1 %vm4323_vm1, %v4322_v8 }
 0x463   :  { %v530_v35 = vpop.f32.mrb[6].mxu0  ;;  %3823 = vmatprep.subr.bf16.mxu1 %v4322_v8 }
 0x464   :  { %v537_v36 = vmul.f32 0.35355338, %v530_v35  ;;  %v3822_v37 = vpop.f32.mrb[7].mxu0  ;;  %v540_v38 = vsel %vm65_vm3, %v536_v33, -1e+30 }
 0x465   :  { %v548_v39 = vsel %vm289_vm4, %v540_v38, -inf }
 0x466   :  { %549 = vmax.xlane.f32.xlu0 %v548_v39  ;;  %v541_v40 = vsel %vm65_vm3, %v537_v36, -1e+30 }
 0x467   :  { %v551_v41 = vsel %vm289_vm4, %v541_v40, -inf }
 0x468   :  { %552 = vmax.xlane.f32.xlu1 %v551_v41 }
 0x469   :  { %3814 = vmatmul.mubr.msk.bf16.vlgmr.msra.gmra.mrb[16].mxu1 %vm183_vm2, %v433_v42 }
 0x46a   :  { %3825 = vmatprep.mubr.msk.bf16.mxu1 %vm4323_vm1, %v4322_v8 }
 0x479   :  { %803 = vrot.lane.b32.xlu1 %v4456_v19, %s5152_s1 }
 0x47d   :  { %852 = vrot.lane.b32.xlu1 %v4454_v18, %s5154_s18 }
 0x4f3   :  { %v550_v43 = vpop.xlane.xlu0 %549 }
 0x4f4   :  { %v556_v44 = vsub.f32 %v540_v38, %v550_v43 }
 0x4f5   :  { %v553_v45 = vpop.xlane.xlu1 %552 }
 0x4f6   :  { %v562_v46 = vmul.f32 1.442695, %v556_v44  ;;  %v557_v47 = vsub.f32 %v541_v40, %v553_v45 }
 0x4f8   :  { %4176 = vpow2.f32 %v562_v46  ;;  %v564_v48 = vmul.f32 1.442695, %v557_v47 }
 0x4f9   :  { %v804_v12 = vpop.permute.xlu1 %803 }
 0x4fa   :  { %4178 = vpow2.f32 %v564_v48  ;;  %v809_v15 = vsel %vm183_vm2, %v804_v12, 0 }
 0x4fd   :  { %v853_v21 = vpop.permute.xlu1 %852 }
 0x502   :  { %v4177_v49 = vpop.eup %4176 }
 0x503   :  { %v572_v50 = vsel %vm289_vm4, %v4177_v49, 0.0 }
 0x504   :  { %v4179_v51 = vpop.eup %4178  ;;  %573 = vadd.xlane.f32.xlu0 %v572_v50 }
 0x505   :  { %v575_v52 = vsel %vm289_vm4, %v4179_v51, 0.0 }
 0x508   :  { %576 = vadd.xlane.f32.xlu0 %v575_v52 }
 0x51e   :  { %635 = vrot.lane.b32.xlu0 %v4454_v18, %s4330_s19 }
 0x522   :  { %801 = vrot.lane.b32.xlu0 %v4456_v19, %s5154_s18  ;;  %s5163_s18 = smov 72  }
 0x526   :  { %854 = vrot.lane.b32.xlu0 %v4454_v18, %s5152_s1  ;;  %s5162_s1 = smov 48  }
 0x534   :  { %v4547_v53 = vpop.f32.mrb[12].mxu1 }
 0x535   :  { %v3803_v54 = vpop.f32.mrb[13].mxu1 }
 0x536   :  { %v4549_v55 = vpop.f32.mrb[14].mxu1 }
 0x537   :  { %v430_v56 = vpack.c.bf16 %v4549_v55, %v4547_v53  ;;  %v3804_v57 = vpop.f32.mrb[15].mxu1 }
 0x53c   :  { %v476_v58 = vpop.f32.mrb[16].mxu1 }
 0x53d   :  { %v534_v59 = vmul.f32 0.35355338, %v476_v58  ;;  %v3815_v60 = vpop.f32.mrb[17].mxu1 }
 0x53e   :  { %v479_v61 = vpop.f32.mrb[18].mxu1 }
 0x53f   :  { %v535_v62 = vmul.f32 0.35355338, %v479_v61  ;;  %v3816_v63 = vpop.f32.mrb[19].mxu1  ;;  %v538_v1 = vsel %vm65_vm3, %v534_v59, -1e+30 }
 0x540   :  { %v542_v3 = vsel %vm289_vm4, %v538_v1, -inf }
 0x541   :  { %v539_v0 = vsel %vm65_vm3, %v535_v62, -1e+30 }
 0x542   :  { %v545_v2 = vsel %vm289_vm4, %v539_v0, -inf }
 0x543   :  { %546 = vmax.xlane.f32.xlu1 %v545_v2 }
 0x545   :  { %543 = vmax.xlane.f32.xlu0 %v542_v3 }
 0x554   :  { %588 = vrot.lane.b32.xlu1 %v4456_v19, %s4330_s19 }
 0x591   :  { %v574_v4 = vpop.xlane.xlu0 %573 }
 0x592   :  { %4180 = vrcp.f32 %v574_v4 }
 0x595   :  { %v577_v5 = vpop.xlane.xlu0 %576 }
 0x596   :  { %4182 = vrcp.f32 %v577_v5 }
 0x599   :  { %v636_v6 = vpop.permute.xlu0 %635 }
 0x59a   :  { %3830 = vmatpush3.bf16.msra.mxu0 %v636_v6 }
 0x59b   :  { %3847 = vmatprep.subr.bf16.mxu0 %v4322_v8 }
 0x59c   :  { %v4181_v7 = vpop.eup %4180 }
 0x59d   :  { %v584_v10 = vmul.f32 %v4181_v7, %v4177_v49  ;;  %v802_v14 = vpop.permute.xlu0 %801  ;;  %v72_v7 = vld [vmem:[%s5127_s3 + $0x4] sm:$0xf] }
 0x5a0   :  { %v4183_v9 = vpop.eup %4182 }
 0x5a1   :  { %v585_v11 = vmul.f32 %v4183_v9, %v4179_v51  ;;  %v855_v16 = vpop.permute.xlu0 %854  ;;  %v692_v9 = vsel %vm690_vm5, %v72_v7, 0 }
 0x5a2   :  { %v860_v20 = vsel %vm183_vm2, %v855_v16, 0 }
 0x5a3   :  { %v587_v13 = vpack.c.bf16 %v585_v11, %v584_v10  ;;  %v71_v10 = vld [vmem:[%s5127_s3] sm:$0xf] }
 0x5a5   :  { %3832 = vmatmul.mubr.msk.bf16.vlgmr.msra.gmra.mrb[8].mxu0 %vm289_vm4, %v587_v13 }
 0x5a6   :  { %3848 = vmatpush3.bf16.xpose.msra.mxu0 %v809_v15  ;;  %3849 = vmatprep.mubr.msk.bf16.mxu0 %vm4323_vm1, %v4322_v8 }
 0x5a7   :  { %3853 = vmatprep.subr.bf16.mxu0 %v4322_v8 }
 0x5ad   :  { %3850 = vmatmul.mubr.msk.bf16.vlgmr.msra.gmra.mrb[12].mxu0 %vm183_vm2, %v802_v14 }
 0x5ae   :  { %3854 = vmatpush3.bf16.xpose.msra.mxu0 %v860_v20  ;;  %3855 = vmatprep.mubr.msk.bf16.mxu0 %vm4323_vm1, %v4322_v8 }
 0x5af   :  { %3865 = vmatprep.subr.bf16.mxu0 %v4322_v8 }
 0x5b5   :  { %3856 = vmatmul.mubr.msk.bf16.vlgmr.msra.gmra.mrb[16].mxu0 %vm183_vm2, %v853_v21 }
 0x5b6   :  { %3867 = vmatprep.mubr.msk.bf16.mxu0 %vm4323_vm1, %v4322_v8 }
 0x5d0   :  { %v547_v23 = vpop.xlane.xlu1 %546 }
 0x5d1   :  { %v555_v25 = vsub.f32 %v539_v0, %v547_v23 }
 0x5d2   :  { %v544_v26 = vpop.xlane.xlu0 %543 }
 0x5d3   :  { %v554_v27 = vsub.f32 %v538_v1, %v544_v26  ;;  %v560_v30 = vmul.f32 1.442695, %v555_v25 }
 0x5d4   :  { %v589_v28 = vpop.permute.xlu1 %588 }
 0x5d5   :  { %v558_v31 = vmul.f32 1.442695, %v554_v27  ;;  %3824 = vmatpush3.bf16.msra.mxu1 %v589_v28 }
 0x5d6   :  { %4115 = vmatprep.subr.msk.bf16.mxu1 %vm690_vm5, %v72_v7 }
 0x5d7   :  { %4184 = vpow2.f32 %v558_v31 }
 0x5d8   :  { %4186 = vpow2.f32 %v560_v30 }
 0x5e1   :  { %v4185_v32 = vpop.eup %4184 }
 0x5e2   :  { %v566_v33 = vsel %vm289_vm4, %v4185_v32, 0.0  ;;  %v4187_v34 = vpop.eup %4186 }
 0x5e3   :  { %567 = vadd.xlane.f32.xlu0 %v566_v33  ;;  %v569_v35 = vsel %vm289_vm4, %v4187_v34, 0.0 }
 0x5e7   :  { %570 = vadd.xlane.f32.xlu0 %v569_v35 }
 0x670   :  { %v568_v36 = vpop.xlane.xlu0 %567 }
 0x671   :  { %4188 = vrcp.f32 %v568_v36 }
 0x674   :  { %v571_v37 = vpop.xlane.xlu0 %570 }
 0x675   :  { %4190 = vrcp.f32 %v571_v37 }
 0x678   :  { %v4577_v38 = vpop.f32.mrb[8].mxu0 }
 0x679   :  { %v3833_v39 = vpop.f32.mrb[9].mxu0 }
 0x67a   :  { %v4579_v40 = vpop.f32.mrb[10].mxu0 }
 0x67b   :  { %v683_v41 = vpack.c.bf16 %v4579_v40, %v4577_v38  ;;  %v3834_v42 = vpop.f32.mrb[11].mxu0  ;;  %v4189_v43 = vpop.eup %4188 }
 0x67c   :  { %v582_v45 = vmul.f32 %v4189_v43, %v4185_v32 }
 0x67f   :  { %v4191_v44 = vpop.eup %4190 }
 0x680   :  { %v583_v46 = vmul.f32 %v4191_v44, %v4187_v34  ;;  %v845_v47 = vpop.f32.mrb[12].mxu0 }
 0x681   :  { %v903_v48 = vmul.f32 0.35355338, %v845_v47  ;;  %v3851_v49 = vpop.f32.mrb[13].mxu0 }
 0x682   :  { %v848_v50 = vpop.f32.mrb[14].mxu0  ;;  %v586_v51 = vpack.c.bf16 %v583_v46, %v582_v45  ;;  %v750_v45 = vsel %vm690_vm5, %v71_v10, 0 }
 0x683   :  { %v904_v52 = vmul.f32 0.35355338, %v848_v50  ;;  %v3852_v54 = vpop.f32.mrb[15].mxu0  ;;  %v907_v57 = vsel %vm65_vm3, %v903_v48, -1e+30 }
 0x684   :  { %3826 = vmatmul.mubr.msk.bf16.vlgmr.msra.gmra.mrb[20].mxu1 %vm289_vm4, %v586_v51  ;;  %v911_v58 = vsel %vm289_vm4, %v907_v57, -inf }
 0x685   :  { %912 = vmax.xlane.f32.xlu0 %v911_v58  ;;  %v908_v59 = vsel %vm65_vm3, %v904_v52, -1e+30  ;;  %3836 = vmatpush3.bf16.msra.mxu1 %v692_v9 }
 0x686   :  { %v914_v61 = vsel %vm289_vm4, %v908_v59, -inf  ;;  %4116 = vmatprep.subr.msk.bf16.mxu1 %vm690_vm5, %v71_v10 }
 0x688   :  { %v896_v60 = vpop.f32.mrb[16].mxu0 }
 0x689   :  { %v905_v62 = vmul.f32 0.35355338, %v896_v60  ;;  %v3857_v63 = vpop.f32.mrb[17].mxu0  ;;  %915 = vmax.xlane.f32.xlu0 %v914_v61  ;;  %v73_v60 = vld [vmem:[%s5127_s3 + $0x8] sm:$0xf] }
 0x68a   :  { %v899_v0 = vpop.f32.mrb[18].mxu0  ;;  %v1060_v61 = vsel %vm690_vm5, %v73_v60, 0 }
 0x68b   :  { %v906_v1 = vmul.f32 0.35355338, %v899_v0  ;;  %v3858_v2 = vpop.f32.mrb[19].mxu0  ;;  %v909_v3 = vsel %vm65_vm3, %v905_v62, -1e+30 }
 0x68c   :  { %v917_v4 = vsel %vm289_vm4, %v909_v3, -inf }
 0x68d   :  { %918 = vmax.xlane.f32.xlu0 %v917_v4  ;;  %v910_v5 = vsel %vm65_vm3, %v906_v1, -1e+30 }
 0x68e   :  { %v920_v6 = vsel %vm289_vm4, %v910_v5, -inf }
 0x691   :  { %921 = vmax.xlane.f32.xlu0 %v920_v6 }
 0x6a7   :  { %957 = vrot.lane.b32.xlu0 %v4456_v19, %s5150_s0 }
 0x712   :  { %v913_v11 = vpop.xlane.xlu0 %912 }
 0x713   :  { %v923_v12 = vsub.f32 %v907_v57, %v913_v11 }
 0x715   :  { %v927_v13 = vmul.f32 1.442695, %v923_v12 }
 0x716   :  { %v916_v14 = vpop.xlane.xlu0 %915 }
 0x717   :  { %4192 = vpow2.f32 %v927_v13  ;;  %v924_v15 = vsub.f32 %v908_v59, %v916_v14 }
 0x719   :  { %v929_v16 = vmul.f32 1.442695, %v924_v15 }
 0x71a   :  { %v919_v20 = vpop.xlane.xlu0 %918 }
 0x71b   :  { %4194 = vpow2.f32 %v929_v16  ;;  %v925_v21 = vsub.f32 %v909_v3, %v919_v20 }
 0x71d   :  { %v931_v23 = vmul.f32 1.442695, %v925_v21 }
 0x71e   :  { %v922_v25 = vpop.xlane.xlu0 %921 }
 0x71f   :  { %4196 = vpow2.f32 %v931_v23  ;;  %v926_v26 = vsub.f32 %v910_v5, %v922_v25 }
 0x721   :  { %v4193_v27 = vpop.eup %4192  ;;  %v933_v28 = vmul.f32 1.442695, %v926_v26 }
 0x722   :  { %v935_v30 = vsel %vm289_vm4, %v4193_v27, 0.0  ;;  %v958_v46 = vpop.permute.xlu0 %957 }
 0x723   :  { %4198 = vpow2.f32 %v933_v28  ;;  %936 = vadd.xlane.f32.xlu1 %v935_v30 }
 0x725   :  { %v4195_v31 = vpop.eup %4194 }
 0x726   :  { %v938_v32 = vsel %vm289_vm4, %v4195_v31, 0.0 }
 0x727   :  { %939 = vadd.xlane.f32.xlu0 %v938_v32 }
 0x729   :  { %v4197_v33 = vpop.eup %4196 }
 0x72a   :  { %v941_v34 = vsel %vm289_vm4, %v4197_v33, 0.0 }
 0x72b   :  { %942 = vadd.xlane.f32.xlu0 %v941_v34 }
 0x72d   :  { %v4199_v35 = vpop.eup %4198 }
 0x72e   :  { %v944_v36 = vsel %vm289_vm4, %v4199_v35, 0.0 }
 0x72f   :  { %945 = vadd.xlane.f32.xlu0 %v944_v36 }
 0x734   :  { %1117 = vrot.lane.b32.xlu1 %v4456_v19, %s5148_s24 }
 0x745   :  { %1004 = vrot.lane.b32.xlu0 %v4454_v18, %s5150_s0  ;;  %s5164_s0 = smov 104  }
 0x749   :  { %1168 = vrot.lane.b32.xlu0 %v4454_v18, %s5148_s24 }
 0x74d   :  { %1115 = vrot.lane.b32.xlu0 %v4456_v19, %s5146_s20 }
 0x751   :  { %1166 = vrot.lane.b32.xlu0 %v4454_v18, %s5146_s20  ;;  %s5165_s20 = smov 40  }
 0x757   :  { %v628_v37 = vpop.f32.mrb[20].mxu1 }
 0x758   :  { %v3827_v39 = vpop.f32.mrb[21].mxu1 }
 0x759   :  { %v631_v42 = vpop.f32.mrb[22].mxu1 }
 0x75a   :  { %v682_v43 = vpack.c.bf16 %v631_v42, %v628_v37  ;;  %v3828_v44 = vpop.f32.mrb[23].mxu1 }
 0x75c   :  { %3837 = vmatprep.mubr.msk.bf16.mxu1 %vm183_vm2, %v682_v43 }
 0x75d   :  { %3838 = vmatmul.mubr.msk.bf16.vlgmr.msra.gmra.mrb[24].mxu1 %vm183_vm2, %v683_v41 }
 0x75e   :  { %3843 = vmatprep.mubr.msk.bf16.mxu1 %vm183_vm2, %v430_v56  ;;  %3842 = vmatpush3.bf16.msra.mxu1 %v750_v45 }
 0x75f   :  { %3859 = vmatprep.subr.bf16.mxu1 %v4322_v8 }
 0x769   :  { %3844 = vmatmul.mubr.msk.bf16.vlgmr.msra.gmra.mrb[24].mxu1 %vm183_vm2, %v431_v24 }
 0x76a   :  { %3860 = vmatpush3.bf16.msra.mxu1 %v958_v46  ;;  %3861 = vmatprep.mubr.msk.bf16.mxu1 %vm4323_vm1, %v4322_v8 }
 0x76b   :  { %4117 = vmatprep.subr.msk.bf16.mxu1 %vm690_vm5, %v73_v60 }
 0x7b0   :  { %v937_v38 = vpop.xlane.xlu1 %936 }
 0x7b1   :  { %4200 = vrcp.f32 %v937_v38 }
 0x7b4   :  { %v940_v40 = vpop.xlane.xlu0 %939  ;;  %v1118_v52 = vpop.permute.xlu1 %1117 }
 0x7b5   :  { %4202 = vrcp.f32 %v940_v40  ;;  %v1123_v57 = vsel %vm183_vm2, %v1118_v52, 0 }
 0x7b8   :  { %v943_v53 = vpop.xlane.xlu0 %942 }
 0x7b9   :  { %4204 = vrcp.f32 %v943_v53 }
 0x7bb   :  { %v4201_v56 = vpop.eup %4200 }
 0x7bc   :  { %v946_v55 = vpop.xlane.xlu0 %945  ;;  %v951_v47 = vmul.f32 %v4201_v56, %v4193_v27 }
 0x7bd   :  { %4206 = vrcp.f32 %v946_v55 }
 0x7bf   :  { %v4203_v41 = vpop.eup %4202 }
 0x7c0   :  { %v952_v48 = vmul.f32 %v4203_v41, %v4195_v31  ;;  %v1005_v49 = vpop.permute.xlu0 %1004 }
 0x7c1   :  { %3866 = vmatpush3.bf16.msra.mxu0 %v1005_v49 }
 0x7c2   :  { %v955_v17 = vpack.c.bf16 %v952_v48, %v951_v47  ;;  %3877 = vmatprep.subr.bf16.mxu0 %v4322_v8 }
 0x7c3   :  { %v4205_v22 = vpop.eup %4204 }
 0x7c4   :  { %3862 = vmatmul.mubr.msk.bf16.vlgmr.msra.gmra.mrb[28].mxu1 %vm289_vm4, %v955_v17  ;;  %v953_v50 = vmul.f32 %v4205_v22, %v4197_v33  ;;  %v1169_v58 = vpop.permute.xlu0 %1168 }
 0x7c5   :  { %3872 = vmatpush3.bf16.msra.mxu1 %v1060_v61  ;;  %v1174_v9 = vsel %vm183_vm2, %v1169_v58, 0 }
 0x7c6   :  { %3883 = vmatprep.subr.bf16.mxu1 %v4322_v8 }
 0x7c7   :  { %v4207_v24 = vpop.eup %4206 }
 0x7c8   :  { %v954_v51 = vmul.f32 %v4207_v24, %v4199_v35  ;;  %v1116_v59 = vpop.permute.xlu0 %1115 }
 0x7ca   :  { %v956_v54 = vpack.c.bf16 %v954_v51, %v953_v50 }
 0x7cc   :  { %3868 = vmatmul.mubr.msk.bf16.vlgmr.msra.gmra.mrb[20].mxu0 %vm289_vm4, %v956_v54  ;;  %v1167_v20 = vpop.permute.xlu0 %1166 }
 0x7cd   :  { %3878 = vmatpush3.bf16.xpose.msra.mxu0 %v1123_v57  ;;  %3879 = vmatprep.mubr.msk.bf16.mxu0 %vm4323_vm1, %v4322_v8 }
 0x7ce   :  { %3889 = vmatprep.subr.bf16.mxu0 %v4322_v8 }
 0x7d4   :  { %3880 = vmatmul.mubr.msk.bf16.vlgmr.msra.gmra.mrb[24].mxu0 %vm183_vm2, %v1116_v59 }
 0x7d5   :  { %3891 = vmatprep.mubr.msk.bf16.mxu0 %vm4323_vm1, %v4322_v8 }
 0x897   :  { %v997_v62 = vpop.f32.mrb[28].mxu1 }
 0x898   :  { %v3863_v63 = vpop.f32.mrb[29].mxu1 }
 0x899   :  { %v1000_v0 = vpop.f32.mrb[30].mxu1 }
 0x89a   :  { %v1051_v1 = vpack.c.bf16 %v1000_v0, %v997_v62  ;;  %v3864_v2 = vpop.f32.mrb[31].mxu1 }
 0x89c   :  { %3873 = vmatprep.mubr.msk.bf16.mxu1 %vm183_vm2, %v1051_v1 }
 0x89f   :  { %v1044_v3 = vpop.f32.mrb[20].mxu0 }
 0x8a0   :  { %v3869_v4 = vpop.f32.mrb[21].mxu0 }
 0x8a1   :  { %v1047_v5 = vpop.f32.mrb[22].mxu0  ;;  %v74_v4 = vld [vmem:[%s5127_s3 + $0xc] sm:$0xf] }
 0x8a2   :  { %v1052_v6 = vpack.c.bf16 %v1047_v5, %v1044_v3  ;;  %v3870_v7 = vpop.f32.mrb[23].mxu0  ;;  %v1374_v5 = vsel %vm690_vm5, %v74_v4, 0 }
 0x8a4   :  { %3874 = vmatmul.mubr.msk.bf16.vlgmr.msra.gmra.mrb[24].mxu1 %vm183_vm2, %v1052_v6 }
 0x8a5   :  { %3884 = vmatpush3.bf16.xpose.msra.mxu1 %v1174_v9  ;;  %3885 = vmatprep.mubr.msk.bf16.mxu1 %vm4323_vm1, %v4322_v8 }
 0x8a6   :  { %3895 = vmatprep.subr.bf16.mxu1 %v4322_v8 }
 0x8a7   :  { %v1159_v10 = vpop.f32.mrb[24].mxu0 }
 0x8a8   :  { %v1217_v11 = vmul.f32 0.35355338, %v1159_v10  ;;  %v3881_v12 = vpop.f32.mrb[25].mxu0 }
 0x8a9   :  { %v1162_v13 = vpop.f32.mrb[26].mxu0 }
 0x8aa   :  { %v1218_v14 = vmul.f32 0.35355338, %v1162_v13  ;;  %v3882_v15 = vpop.f32.mrb[27].mxu0  ;;  %v1221_v16 = vsel %vm65_vm3, %v1217_v11, -1e+30 }
 0x8ab   :  { %v1225_v21 = vsel %vm289_vm4, %v1221_v16, -inf }
 0x8ac   :  { %1226 = vmax.xlane.f32.xlu0 %v1225_v21  ;;  %3886 = vmatmul.mubr.msk.bf16.vlgmr.msra.gmra.mrb[32].mxu1 %vm183_vm2, %v1167_v20  ;;  %v1222_v23 = vsel %vm65_vm3, %v1218_v14, -1e+30  ;;  %v3548_v20 = vld [vmem:[%s5128_s4] ss:$0 sm:$0xff] }
 0x8ad   :  { %v1228_v25 = vsel %vm289_vm4, %v1222_v23, -inf  ;;  %3897 = vmatprep.mubr.msk.bf16.mxu1 %vm4323_vm1, %v4322_v8 }
 0x8ae   :  { %1229 = vmax.xlane.f32.xlu1 %v1228_v25 }
 0x939   :  { %v1227_v26 = vpop.xlane.xlu0 %1226 }
 0x93a   :  { %v1237_v27 = vsub.f32 %v1221_v16, %v1227_v26 }
 0x93b   :  { %v1230_v32 = vpop.xlane.xlu1 %1229 }
 0x93c   :  { %v1241_v28 = vmul.f32 1.442695, %v1237_v27  ;;  %v1238_v33 = vsub.f32 %v1222_v23, %v1230_v32  ;;  %v4318_v32 = vld [vmem:[%s5159_s30] sm:$0xff] }
 0x93e   :  { %4208 = vpow2.f32 %v1241_v28  ;;  %v1243_v34 = vmul.f32 1.442695, %v1238_v33 }
 0x940   :  { %4210 = vpow2.f32 %v1243_v34 }
 0x948   :  { %v4209_v30 = vpop.eup %4208 }
 0x949   :  { %v1249_v31 = vsel %vm289_vm4, %v4209_v30, 0.0 }
 0x94a   :  { %1250 = vadd.xlane.f32.xlu1 %v1249_v31  ;;  %v4211_v40 = vpop.eup %4210 }
 0x94b   :  { %v1252_v53 = vsel %vm289_vm4, %v4211_v40, 0.0 }
 0x97f   :  { %v1210_v35 = vpop.f32.mrb[32].mxu1 }
 0x980   :  { %v1219_v36 = vmul.f32 0.35355338, %v1210_v35  ;;  %v3887_v37 = vpop.f32.mrb[33].mxu1  ;;  %v4319_v35 = vld [vmem:[%s5159_s30 + $0x8] sm:$0xff] }
 0x981   :  { %v1213_v39 = vpop.f32.mrb[34].mxu1  ;;  %v4320_v37 = vld [vmem:[%s5159_s30 + $0x10] sm:$0xff] }
 0x982   :  { %v1220_v42 = vmul.f32 0.35355338, %v1213_v39  ;;  %v3888_v43 = vpop.f32.mrb[35].mxu1  ;;  %v1223_v44 = vsel %vm65_vm3, %v1219_v36, -1e+30 }
 0x983   :  { %v1231_v45 = vsel %vm289_vm4, %v1223_v44, -inf  ;;  %v4321_v43 = vld [vmem:[%s5159_s30 + $0x18] sm:$0xff] }
 0x984   :  { %1232 = vmax.xlane.f32.xlu0 %v1231_v45  ;;  %v1224_v46 = vsel %vm65_vm3, %v1220_v42, -1e+30 }
 0x985   :  { %v1234_v38 = vsel %vm289_vm4, %v1224_v46, -inf }
 0x988   :  { %1235 = vmax.xlane.f32.xlu0 %v1234_v38 }
 0x98c   :  { %1253 = vadd.xlane.f32.xlu0 %v1252_v53 }
 0x9d7   :  { %v1251_v52 = vpop.xlane.xlu1 %1250 }
 0xa11   :  { %v1233_v55 = vpop.xlane.xlu0 %1232 }
 0xa12   :  { %v1239_v56 = vsub.f32 %v1223_v44, %v1233_v55 }
 0xa14   :  { %v1245_v41 = vmul.f32 1.442695, %v1239_v56 }
 0xa15   :  { %v1236_v47 = vpop.xlane.xlu0 %1235 }
 0xa16   :  { %4212 = vpow2.f32 %v1245_v41  ;;  %v1240_v48 = vsub.f32 %v1224_v46, %v1236_v47 }
 0xa18   :  { %v1247_v49 = vmul.f32 1.442695, %v1240_v48 }
 0xa19   :  { %v1254_v51 = vpop.xlane.xlu0 %1253 }
 0xa1a   :  { %4214 = vpow2.f32 %v1247_v49 }
 0xa1b   :  { %4216 = vrcp.f32 %v1254_v51 }
 0xa1c   :  { %4218 = vrcp.f32 %v1251_v52 }
 0xa20   :  { %v4213_v17 = vpop.eup %4212 }
 0xa21   :  { %v1255_v22 = vsel %vm289_vm4, %v4213_v17, 0.0 }
 0xa22   :  { %1256 = vadd.xlane.f32.xlu1 %v1255_v22 }
 0xa24   :  { %v4215_v24 = vpop.eup %4214 }
 0xa25   :  { %v1258_v50 = vsel %vm289_vm4, %v4215_v24, 0.0  ;;  %v4217_v54 = vpop.eup %4216 }
 0xa26   :  { %1259 = vadd.xlane.f32.xlu0 %v1258_v50  ;;  %v4219_v58 = vpop.eup %4218  ;;  %v1266_v59 = vmul.f32 %v4217_v54, %v4211_v40 }
 0xa27   :  { %v1265_v60 = vmul.f32 %v4219_v58, %v4209_v30 }
 0xa29   :  { %v1269_v63 = vpack.c.bf16 %v1266_v59, %v1265_v60 }
 0xa33   :  { %1271 = vrot.lane.b32.xlu1 %v4456_v19, %s5144_s23 }
 0xa3c   :  { %1318 = vrot.lane.b32.xlu0 %v4454_v18, %s5144_s23 }
 0xaaf   :  { %v1257_v57 = vpop.xlane.xlu1 %1256 }
 0xab0   :  { %4220 = vrcp.f32 %v1257_v57 }
 0xab3   :  { %v1272_v61 = vpop.permute.xlu1 %1271  ;;  %v1260_v62 = vpop.xlane.xlu0 %1259 }
 0xab4   :  { %4222 = vrcp.f32 %v1260_v62  ;;  %3890 = vmatpush3.bf16.msra.mxu0 %v1272_v61  ;;  %v4138_v61 = vld [vmem:[%s5129_s7] sm:$0xff]   ;;  %v4139_v62 = vld [vmem:[%s5129_s7 + $0x8] sm:$0xff]  }
 0xab5   :  { %3907 = vmatprep.subr.bf16.mxu0 %v4138_v61 }
 0xab7   :  { %3892 = vmatmul.mubr.msk.bf16.vlgmr.msra.gmra.mrb[28].mxu0 %vm289_vm4, %v1269_v63  ;;  %v1319_v19 = vpop.permute.xlu0 %1318  ;;  %v4140_v63 = vld [vmem:[%s5130_s9] sm:$0xff]  }
 0xab8   :  { %3896 = vmatpush3.bf16.msra.mxu1 %v1319_v19  ;;  %3908 = vmatpush3.bf16.msra.mxu0 %v4138_v61 }
 0xab9   :  { %4118 = vmatprep.subr.msk.bf16.mxu1 %vm690_vm5, %v74_v4  ;;  %3909 = vmatprep.subr.bf16.mxu0 %v4139_v62 }
 0xaba   :  { %v4221_v18 = vpop.eup %4220 }
 0xabb   :  { %v1267_v1 = vmul.f32 %v4221_v18, %v4213_v17 }
 0xabc   :  { %3910 = vmatpush3.bf16.msra.mxu0 %v4139_v62 }
 0xabd   :  { %3915 = vmatprep.subr.bf16.mxu0 %v4140_v63 }
 0xabe   :  { %v4223_v0 = vpop.eup %4222 }
 0xabf   :  { %v1268_v2 = vmul.f32 %v4223_v0, %v4215_v24 }
 0xac1   :  { %v1270_v3 = vpack.c.bf16 %v1268_v2, %v1267_v1 }
 0xac3   :  { %3898 = vmatmul.mubr.msk.bf16.vlgmr.msra.gmra.mrb[36].mxu1 %vm289_vm4, %v1270_v3 }
 0xac4   :  { %3902 = vmatpush3.bf16.msra.mxu1 %v1374_v5 }
 0xb8a   :  { %v1311_v6 = vpop.f32.mrb[28].mxu0 }
 0xb8b   :  { %v3893_v7 = vpop.f32.mrb[29].mxu0 }
 0xb8c   :  { %v1314_v9 = vpop.f32.mrb[30].mxu0 }
 0xb8d   :  { %v1365_v10 = vpack.c.bf16 %v1314_v9, %v1311_v6  ;;  %v3894_v11 = vpop.f32.mrb[31].mxu0 }
 0xb8f   :  { %3903 = vmatprep.mubr.msk.bf16.mxu1 %vm183_vm2, %v1365_v10 }
 0xb96   :  { %v1358_v12 = vpop.f32.mrb[36].mxu1 }
 0xb97   :  { %v3899_v13 = vpop.f32.mrb[37].mxu1 }
 0xb98   :  { %v1361_v14 = vpop.f32.mrb[38].mxu1 }
 0xb99   :  { %v1366_v15 = vpack.c.bf16 %v1361_v14, %v1358_v12  ;;  %v3900_v16 = vpop.f32.mrb[39].mxu1  ;;  %v3549_v12 = vld [vmem:[%s5131_s5] ss:$0 sm:$0xff] }
 0xb9b   :  { %3904 = vmatmul.mubr.msk.bf16.vlgmr.msra.gmra.mrb[24].mxu1 %vm183_vm2, %v1366_v15 }
 0xc6e   :  { %v3905_v21 = vpop.f32.mrb[24].mxu1 }
 0xc6f   :  { %v1410_v23 = vpop.f32.mrb[25].mxu1  ;;  %v1437_v25 = vadd.f32 %v3905_v21, %v3548_v20  ;;  %v3550_v21 = vld [vmem:[%s5132_s6] ss:$0 sm:$0xff] }
 0xc70   :  { %v1435_v26 = vadd.f32 %v3548_v20, %v1410_v23  ;;  %v3906_v27 = vpop.f32.mrb[26].mxu1 }
 0xc71   :  { %v1413_v28 = vpop.f32.mrb[27].mxu1  ;;  %v1438_v30 = vadd.f32 %v3906_v27, %v3548_v20  ;;  %v1441_v39 = vadd.f32 %v4320_v37, %v1437_v25  ;;  %v4141_v37 = vld [vmem:[%s5130_s9 + $0x8] sm:$0xff]  }
 0xc72   :  { %v1436_v31 = vadd.f32 %v3548_v20, %v1413_v28  ;;  %v1439_v33 = vadd.f32 %v4318_v32, %v1435_v26 }
 0xc73   :  { %v1442_v44 = vadd.f32 %v4321_v43, %v1438_v30  ;;  %v1449_v45 = vsel %vm122_vm0, %v1441_v39, 0.0  ;;  %v4144_v43 = vld [vmem:[%s5130_s9 + $0x20] sm:$0xff]  }
 0xc74   :  { %v1443_v34 = vsel %vm122_vm0, %v1439_v33, 0.0  ;;  %v1440_v36 = vadd.f32 %v4319_v35, %v1436_v31 }
 0xc75   :  { %1444 = vadd.xlane.f32.xlu1 %v1443_v34  ;;  %v1452_v46 = vsel %vm122_vm0, %v1442_v44, 0.0 }
 0xc76   :  { %v1446_v42 = vsel %vm122_vm0, %v1440_v36, 0.0 }
 0xc77   :  { %1447 = vadd.xlane.f32.xlu0 %v1446_v42  ;;  %v4143_v42 = vld [vmem:[%s5130_s9 + $0x18] sm:$0xff]  }
 0xc79   :  { %1450 = vadd.xlane.f32.xlu1 %v1449_v45  ;;  %v4146_v45 = vld [vmem:[%s5130_s9 + $0x30] sm:$0xff]  }
 0xc7b   :  { %1453 = vadd.xlane.f32.xlu0 %v1452_v46  ;;  %v4147_v46 = vld [vmem:[%s5130_s9 + $0x38] sm:$0xff]  }
 0xd02   :  { %v1445_v38 = vpop.xlane.xlu1 %1444 }
 0xd03   :  { %v1456_v40 = vmul.f32 0.03125, %v1445_v38  ;;  %v3551_v38 = vld [vmem:[%s5133_s8] ss:$0 sm:$0xff] }
 0xd04   :  { %v1448_v53 = vpop.xlane.xlu0 %1447 }
 0xd05   :  { %v1460_v55 = vsub.f32 %v1439_v33, %v1456_v40  ;;  %v1457_v56 = vmul.f32 0.03125, %v1448_v53 }
 0xd06   :  { %v1451_v41 = vpop.xlane.xlu1 %1450 }
 0xd07   :  { %v1461_v47 = vsub.f32 %v1440_v36, %v1457_v56  ;;  %v1458_v48 = vmul.f32 0.03125, %v1451_v41  ;;  %v1464_v49 = vmul.f32 %v1460_v55, %v1460_v55 }
 0xd08   :  { %v1454_v17 = vpop.xlane.xlu0 %1453 }
 0xd09   :  { %v1462_v22 = vsub.f32 %v1441_v39, %v1458_v48  ;;  %v1459_v24 = vmul.f32 0.03125, %v1454_v17  ;;  %v1468_v50 = vsel %vm122_vm0, %v1464_v49, 0.0  ;;  %v1465_v51 = vmul.f32 %v1461_v47, %v1461_v47  ;;  %v4142_v39 = vld [vmem:[%s5130_s9 + $0x10] sm:$0xff]  }
 0xd0a   :  { %1469 = vadd.xlane.f32.xlu1 %v1468_v50 }
 0xd0b   :  { %v1463_v52 = vsub.f32 %v1442_v44, %v1459_v24  ;;  %v1471_v54 = vsel %vm122_vm0, %v1465_v51, 0.0  ;;  %v1466_v57 = vmul.f32 %v1462_v22, %v1462_v22  ;;  %v4145_v44 = vld [vmem:[%s5130_s9 + $0x28] sm:$0xff]  }
 0xd0c   :  { %1472 = vadd.xlane.f32.xlu0 %v1471_v54  ;;  %v3556_v54 = vld [vmem:[%s5134_s10] ss:$0 sm:$0xff] }
 0xd0d   :  { %v1474_v58 = vsel %vm122_vm0, %v1466_v57, 0.0  ;;  %v1467_v59 = vmul.f32 %v1463_v52, %v1463_v52 }
 0xd0e   :  { %1475 = vadd.xlane.f32.xlu1 %v1474_v58 }
 0xd0f   :  { %v1477_v60 = vsel %vm122_vm0, %v1467_v59, 0.0 }
 0xd10   :  { %1478 = vadd.xlane.f32.xlu0 %v1477_v60 }
 0xd97   :  { %v1470_v19 = vpop.xlane.xlu1 %1469 }
 0xd98   :  { %v1480_v18 = vmul.f32 0.03125, %v1470_v19 }
 0xd99   :  { %v1473_v0 = vpop.xlane.xlu0 %1472 }
 0xd9a   :  { %v1484_v1 = vadd.f32 1e-05, %v1480_v18  ;;  %v1481_v2 = vmul.f32 0.03125, %v1473_v0 }
 0xd9b   :  { %v1476_v3 = vpop.xlane.xlu1 %1475 }
 0xd9c   :  { %4224 = vrsqrt.f32 %v1484_v1  ;;  %v1485_v4 = vadd.f32 1e-05, %v1481_v2  ;;  %v1482_v5 = vmul.f32 0.03125, %v1476_v3 }
 0xd9d   :  { %v1479_v6 = vpop.xlane.xlu0 %1478 }
 0xd9e   :  { %4226 = vrsqrt.f32 %v1485_v4  ;;  %v1486_v7 = vadd.f32 1e-05, %v1482_v5  ;;  %v1483_v9 = vmul.f32 0.03125, %v1479_v6 }
 0xda0   :  { %4228 = vrsqrt.f32 %v1486_v7  ;;  %v1487_v10 = vadd.f32 1e-05, %v1483_v9 }
 0xda2   :  { %4230 = vrsqrt.f32 %v1487_v10 }
 0xda6   :  { %v4225_v11 = vpop.eup %4224 }
 0xda7   :  { %v1492_v13 = vmul.f32 %v4225_v11, %v1460_v55 }
 0xda8   :  { %v4227_v14 = vpop.eup %4226 }
 0xda9   :  { %v1493_v15 = vmul.f32 %v4227_v14, %v1461_v47  ;;  %v1502_v16 = vmul.f32 %v3549_v12, %v1492_v13 }
 0xdaa   :  { %v4229_v20 = vpop.eup %4228 }
 0xdab   :  { %v1494_v23 = vmul.f32 %v4229_v20, %v1462_v22  ;;  %v1503_v25 = vmul.f32 %v3549_v12, %v1493_v15  ;;  %v1512_v30 = vadd.f32 %v3550_v21, %v1502_v16 }
 0xdac   :  { %v4231_v26 = vpop.eup %4230 }
 0xdad   :  { %v1504_v27 = vmul.f32 %v3549_v12, %v1494_v23  ;;  %v1495_v28 = vmul.f32 %v4231_v26, %v1463_v52  ;;  %v1513_v31 = vadd.f32 %v3550_v21, %v1503_v25 }
 0xdaf   :  { %v1505_v32 = vmul.f32 %v3549_v12, %v1495_v28  ;;  %v1516_v33 = vpack.c.bf16 %v1513_v31, %v1512_v30  ;;  %v1514_v34 = vadd.f32 %v3550_v21, %v1504_v27 }
 0xdb1   :  { %3911 = vmatprep.mubr.msk.bf16.mxu0 %vm122_vm0, %v1516_v33  ;;  %v1515_v35 = vadd.f32 %v3550_v21, %v1505_v32 }
 0xdb3   :  { %v1517_v36 = vpack.c.bf16 %v1515_v35, %v1514_v34 }
 0xdb5   :  { %3912 = vmatmul.mubr.msk.bf16.vlgmr.msra.gmra.mrb[32].mxu0 %vm122_vm0, %v1517_v36 }
 0xdb6   :  { %3916 = vmatpush3.bf16.msra.mxu0 %v4140_v63 }
 0xdb7   :  { %3917 = vmatprep.subr.bf16.mxu0 %v4141_v37 }
 0xdba   :  { %3918 = vmatpush3.bf16.msra.mxu0 %v4141_v37 }
 0xdbb   :  { %3919 = vmatprep.subr.bf16.mxu0 %v4142_v39 }
 0xdbe   :  { %3920 = vmatpush3.bf16.msra.mxu0 %v4142_v39 }
 0xdbf   :  { %3921 = vmatprep.subr.bf16.mxu0 %v4143_v42 }
 0xdc2   :  { %3922 = vmatpush3.bf16.msra.mxu0 %v4143_v42 }
 0xdc3   :  { %3923 = vmatprep.subr.bf16.mxu0 %v4144_v43 }
 0xdc6   :  { %3924 = vmatpush3.bf16.msra.mxu0 %v4144_v43 }
 0xdc7   :  { %3925 = vmatprep.subr.bf16.mxu0 %v4145_v44 }
 0xdca   :  { %3926 = vmatpush3.bf16.msra.mxu0 %v4145_v44 }
 0xdcb   :  { %3927 = vmatprep.subr.bf16.mxu0 %v4146_v45 }
 0xdce   :  { %3928 = vmatpush3.bf16.msra.mxu0 %v4146_v45 }
 0xdcf   :  { %3929 = vmatprep.subr.bf16.mxu0 %v4147_v46 }
 0xdd2   :  { %3930 = vmatpush3.bf16.msra.mxu0 %v4147_v46 }
 0xdd3   :  { %3961 = vmatprep.subr.bf16.mxu0 %v4322_v8 }
 0xe88   :  { %v3913_v40 = vpop.f32.mrb[32].mxu0 }
 0xe89   :  { %v1585_v53 = vadd.f32 %v3913_v40, %v3551_v38  ;;  %v1576_v55 = vpop.f32.mrb[33].mxu0 }
 0xe8a   :  { %v1577_v56 = vadd.f32 %v3551_v38, %v1576_v55  ;;  %v3914_v41 = vpop.f32.mrb[34].mxu0 }
 0xe8b   :  { %v1588_v47 = vadd.f32 %v3914_v41, %v3551_v38  ;;  %v1579_v48 = vpop.f32.mrb[35].mxu0  ;;  %v1593_v17 = vmax.f32 %v1585_v53, 0.0  ;;  %v3565_v41 = vld [vmem:[%s5135_s11] ss:$0 sm:$0xff] }
 0xe8c   :  { %v1580_v49 = vadd.f32 %v3551_v38, %v1579_v48  ;;  %v1591_v24 = vmax.f32 %v1577_v56, 0.0 }
 0xe8d   :  { %v1594_v22 = vmax.f32 %v1588_v47, 0.0 }
 0xe8e   :  { %v1592_v50 = vmax.f32 %v1580_v49, 0.0 }
 0xe8f   :  { %v1596_v51 = vpack.c.bf16 %v1594_v22, %v1593_v17 }
 0xe90   :  { %v1595_v52 = vpack.c.bf16 %v1592_v50, %v1591_v24  ;;  %v3566_v24 = vld [vmem:[%s5136_s12] ss:$0 sm:$0xff] }
 0xe92   :  { %3931 = vmatprep.mubr.bf16.mxu0 %v1595_v52 }
 0xe93   :  { %3932 = vmatmul.mubr.bf16.vlgmr.msra.gmra.mrb[36].mxu0 %v1596_v51 }
 0xe94   :  { %3963 = vmatprep.mubr.msk.bf16.mxu0 %vm4323_vm1, %v4322_v8 }
 0xf66   :  { %v3933_v57 = vpop.f32.mrb[36].mxu0 }
 0xf67   :  { %v1685_v58 = vpop.f32.mrb[37].mxu0  ;;  %v1694_v59 = vadd.f32 %v3933_v57, %v3556_v54 }
 0xf68   :  { %v1686_v60 = vadd.f32 %v3556_v54, %v1685_v58  ;;  %v3934_v61 = vpop.f32.mrb[38].mxu0 }
 0xf69   :  { %v1688_v62 = vpop.f32.mrb[39].mxu0  ;;  %v1697_v63 = vadd.f32 %v3934_v61, %v3556_v54  ;;  %v1702_v2 = vadd.f32 %v1694_v59, %v1514_v34  ;;  %v4148_v34 = vld [vmem:[%s5158_s26 + $0x10] sm:$0xff]  }
 0xf6a   :  { %v1689_v19 = vadd.f32 %v3556_v54, %v1688_v62  ;;  %v1700_v18 = vadd.f32 %v1686_v60, %v1512_v30  ;;  %3935 = vmatprep.subr.bf16.mxu1 %v4148_v34 }
 0xf6b   :  { %v1703_v4 = vadd.f32 %v1697_v63, %v1515_v35  ;;  %v1710_v5 = vsel %vm122_vm0, %v1702_v2, 0.0  ;;  %3936 = vmatpush3.bf16.msra.mxu1 %v4148_v34  ;;  %v4149_v35 = vld [vmem:[%s5158_s26 + $0x18] sm:$0xff]  }
 0xf6c   :  { %v1704_v0 = vsel %vm122_vm0, %v1700_v18, 0.0  ;;  %v1701_v1 = vadd.f32 %v1689_v19, %v1513_v31  ;;  %3937 = vmatprep.subr.bf16.mxu1 %v4149_v35 }
 0xf6d   :  { %1705 = vadd.xlane.f32.xlu1 %v1704_v0  ;;  %v1713_v6 = vsel %vm122_vm0, %v1703_v4, 0.0  ;;  %v3603_v0 = vld [vmem:[%s5126_s2 + $0x1] ss:$0 sm:$0xff]  ;;  %s5160_s2 = smov 112  }
 0xf6e   :  { %v1707_v3 = vsel %vm122_vm0, %v1701_v1, 0.0 }
 0xf6f   :  { %1708 = vadd.xlane.f32.xlu0 %v1707_v3  ;;  %3938 = vmatpush3.bf16.msra.mxu1 %v4149_v35 }
 0xf70   :  { %3943 = vmatprep.subr.bf16.mxu1 %v4322_v8 }
 0xf71   :  { %1711 = vadd.xlane.f32.xlu1 %v1710_v5 }
 0xf73   :  { %1714 = vadd.xlane.f32.xlu0 %v1713_v6 }
 0xffa   :  { %v1706_v7 = vpop.xlane.xlu1 %1705 }
 0xffb   :  { %v1716_v9 = vmul.f32 0.03125, %v1706_v7 }
 0xffc   :  { %v1709_v10 = vpop.xlane.xlu0 %1708 }
 0xffd   :  { %v1720_v11 = vsub.f32 %v1700_v18, %v1716_v9  ;;  %v1717_v12 = vmul.f32 0.03125, %v1709_v10 }
 0xffe   :  { %v1712_v13 = vpop.xlane.xlu1 %1711 }
 0xfff   :  { %v1721_v14 = vsub.f32 %v1701_v1, %v1717_v12  ;;  %v1718_v15 = vmul.f32 0.03125, %v1712_v13  ;;  %v1724_v16 = vmul.f32 %v1720_v11, %v1720_v11 }
0x1000   :  { %v1715_v20 = vpop.xlane.xlu0 %1714 }
0x1001   :  { %v1722_v21 = vsub.f32 %v1702_v2, %v1718_v15  ;;  %v1719_v23 = vmul.f32 0.03125, %v1715_v20  ;;  %v1728_v25 = vsel %vm122_vm0, %v1724_v16, 0.0  ;;  %v1725_v26 = vmul.f32 %v1721_v14, %v1721_v14 }
0x1002   :  { %1729 = vadd.xlane.f32.xlu1 %v1728_v25 }
0x1003   :  { %v1723_v27 = vsub.f32 %v1703_v4, %v1719_v23  ;;  %v1731_v28 = vsel %vm122_vm0, %v1725_v26, 0.0  ;;  %v1726_v30 = vmul.f32 %v1722_v21, %v1722_v21 }
0x1004   :  { %1732 = vadd.xlane.f32.xlu0 %v1731_v28 }
0x1005   :  { %v1734_v31 = vsel %vm122_vm0, %v1726_v30, 0.0  ;;  %v1727_v32 = vmul.f32 %v1723_v27, %v1723_v27 }
0x1006   :  { %1735 = vadd.xlane.f32.xlu1 %v1734_v31 }
0x1007   :  { %v1737_v33 = vsel %vm122_vm0, %v1727_v32, 0.0 }
0x1008   :  { %1738 = vadd.xlane.f32.xlu0 %v1737_v33 }
0x108f   :  { %v1730_v36 = vpop.xlane.xlu1 %1729 }
0x1090   :  { %v1740_v37 = vmul.f32 0.03125, %v1730_v36 }
0x1091   :  { %v1733_v39 = vpop.xlane.xlu0 %1732 }
0x1092   :  { %v1744_v42 = vadd.f32 1e-05, %v1740_v37  ;;  %v1741_v43 = vmul.f32 0.03125, %v1733_v39 }
0x1093   :  { %v1736_v44 = vpop.xlane.xlu1 %1735 }
0x1094   :  { %4232 = vrsqrt.f32 %v1744_v42  ;;  %v1745_v45 = vadd.f32 1e-05, %v1741_v43  ;;  %v1742_v46 = vmul.f32 0.03125, %v1736_v44 }
0x1095   :  { %v1739_v38 = vpop.xlane.xlu0 %1738 }
0x1096   :  { %4234 = vrsqrt.f32 %v1745_v45  ;;  %v1746_v40 = vadd.f32 1e-05, %v1742_v46  ;;  %v1743_v53 = vmul.f32 0.03125, %v1739_v38 }
0x1098   :  { %4236 = vrsqrt.f32 %v1746_v40  ;;  %v1747_v55 = vadd.f32 1e-05, %v1743_v53 }
0x109a   :  { %4238 = vrsqrt.f32 %v1747_v55 }
0x109e   :  { %v4233_v56 = vpop.eup %4232 }
0x109f   :  { %v1752_v47 = vmul.f32 %v4233_v56, %v1720_v11 }
0x10a0   :  { %v4235_v48 = vpop.eup %4234 }
0x10a1   :  { %v1753_v49 = vmul.f32 %v4235_v48, %v1721_v14  ;;  %v1762_v17 = vmul.f32 %v3565_v41, %v1752_v47 }
0x10a2   :  { %v4237_v22 = vpop.eup %4236 }
0x10a3   :  { %v1754_v50 = vmul.f32 %v4237_v22, %v1722_v21  ;;  %v1763_v51 = vmul.f32 %v3565_v41, %v1753_v49  ;;  %v4783_v58 = vadd.f32 %v3566_v24, %v1762_v17 }
0x10a4   :  { %v4239_v52 = vpop.eup %4238 }
0x10a5   :  { %v1764_v54 = vmul.f32 %v3565_v41, %v1754_v50  ;;  %v1755_v57 = vmul.f32 %v4239_v52, %v1723_v27  ;;  %v4785_v59 = vadd.f32 %v3566_v24, %v1763_v51 }
0x10a7   :  { %v1765_v60 = vmul.f32 %v3565_v41, %v1755_v57  ;;  %v1824_v61 = vpack.c.bf16 %v4785_v59, %v4783_v58  ;;  %v4790_v62 = vadd.f32 %v3566_v24, %v1764_v54 }
0x10a9   :  { %3939 = vmatprep.mubr.msk.bf16.mxu1 %vm122_vm0, %v1824_v61  ;;  %v4792_v63 = vadd.f32 %v3566_v24, %v1765_v60 }
0x10ab   :  { %v1825_v19 = vpack.c.bf16 %v4792_v63, %v4790_v62 }
0x10ad   :  { %3940 = vmatmul.mubr.msk.bf16.vlgmr.msra.gmra.mrb[40].mxu1 %vm122_vm0, %v1825_v19 }
0x10ae   :  { %3945 = vmatprep.mubr.msk.bf16.mxu1 %vm4323_vm1, %v4322_v8 }
0x1180   :  { %v3941_v18 = vpop.f32.mrb[40].mxu1 }
0x1181   :  { %v1884_v1 = vpop.f32.mrb[41].mxu1  ;;  %v1893_v3 = vadd.f32 %v3941_v18, %v3603_v0 }
0x1182   :  { %v3942_v2 = vpop.f32.mrb[42].mxu1  ;;  %v1885_v6 = vadd.f32 %v3603_v0, %v1884_v1 }
0x1183   :  { %v1896_v4 = vadd.f32 %v3942_v2, %v3603_v0  ;;  %v1887_v5 = vpop.f32.mrb[43].mxu1 }
0x1184   :  { %v1888_v7 = vadd.f32 %v3603_v0, %v1887_v5 }
0x1185   :  { %v4802_v9 = vpack.c.bf16 %v1896_v4, %v1893_v3 }
0x1186   :  { %v4804_v10 = vpack.c.bf16 %v1888_v7, %v1885_v6 }
0x1187   :  { %1952 = vrot.lane.b32.xlu0 %v4802_v9, %s4324_s25 }
0x1188   :  { %1902 = vrot.lane.b32.xlu1 %v4804_v10, %s4324_s25  ;;  %s5161_s25 = smov 80  }
0x11f9   :  { %v1953_v13 = vpop.permute.xlu0 %1952 }
0x11fa   :  { %v1903_v11 = vpop.permute.xlu1 %1902  ;;  %v1958_v14 = vsel %vm183_vm2, %v1953_v13, 0 }
0x11fb   :  { %v1908_v12 = vsel %vm183_vm2, %v1903_v11, 0 }
0x11fc   :  { %3944 = vmatpush3.bf16.xpose.msra.mxu1 %v1908_v12 }
0x11fd   :  { %3949 = vmatprep.subr.bf16.mxu1 %v4322_v8 }
0x1203   :  { %3946 = vmatmul.mubr.msk.bf16.vlgmr.msra.gmra.mrb[44].mxu1 %vm183_vm2, %v4804_v10 }
0x1204   :  { %3950 = vmatpush3.bf16.xpose.msra.mxu1 %v1958_v14  ;;  %3951 = vmatprep.mubr.msk.bf16.mxu1 %vm4323_vm1, %v4322_v8 }
0x1205   :  { %3955 = vmatprep.subr.bf16.mxu1 %v4322_v8 }
0x120b   :  { %3952 = vmatmul.mubr.msk.bf16.vlgmr.msra.gmra.mrb[48].mxu1 %vm183_vm2, %v4802_v9 }
0x120c   :  { %3957 = vmatprep.mubr.msk.bf16.mxu1 %vm4323_vm1, %v4322_v8 }
0x12d6   :  { %v1944_v15 = vpop.f32.mrb[44].mxu1 }
0x12d7   :  { %v3947_v16 = vpop.f32.mrb[45].mxu1  ;;  %v2001_v53 = vmul.f32 0.35355338, %v1944_v15 }
0x12d8   :  { %v1947_v20 = vpop.f32.mrb[46].mxu1 }
0x12d9   :  { %v3948_v21 = vpop.f32.mrb[47].mxu1  ;;  %v2002_v40 = vmul.f32 0.35355338, %v1947_v20  ;;  %v2005_v56 = vsel %vm65_vm3, %v2001_v53, -1e+30 }
0x12da   :  { %v2009_v47 = vsel %vm289_vm4, %v2005_v56, -inf }
0x12db   :  { %v2006_v55 = vsel %vm65_vm3, %v2002_v40, -1e+30 }
0x12dc   :  { %v2012_v41 = vsel %vm289_vm4, %v2006_v55, -inf }
0x12de   :  { %v1994_v23 = vpop.f32.mrb[48].mxu1 }
0x12df   :  { %v2003_v25 = vmul.f32 0.35355338, %v1994_v23  ;;  %v3953_v26 = vpop.f32.mrb[49].mxu1 }
0x12e0   :  { %v1997_v27 = vpop.f32.mrb[50].mxu1 }
0x12e1   :  { %v2004_v28 = vmul.f32 0.35355338, %v1997_v27  ;;  %v3954_v30 = vpop.f32.mrb[51].mxu1  ;;  %v2007_v31 = vsel %vm65_vm3, %v2003_v25, -1e+30 }
0x12e2   :  { %v2015_v32 = vsel %vm289_vm4, %v2007_v31, -inf }
0x12e3   :  { %2016 = vmax.xlane.f32.xlu1 %v2015_v32  ;;  %v2008_v33 = vsel %vm65_vm3, %v2004_v28, -1e+30 }
0x12e4   :  { %v2018_v34 = vsel %vm289_vm4, %v2008_v33, -inf }
0x12e5   :  { %2019 = vmax.xlane.f32.xlu0 %v2018_v34 }
0x1370   :  { %v2017_v35 = vpop.xlane.xlu1 %2016 }
0x1371   :  { %v2023_v36 = vsub.f32 %v2007_v31, %v2017_v35 }
0x1372   :  { %v2020_v37 = vpop.xlane.xlu0 %2019 }
0x1373   :  { %v2029_v39 = vmul.f32 1.442695, %v2023_v36  ;;  %v2024_v42 = vsub.f32 %v2008_v33, %v2020_v37 }
0x1375   :  { %4240 = vpow2.f32 %v2029_v39  ;;  %v2031_v43 = vmul.f32 1.442695, %v2024_v42 }
0x1377   :  { %4242 = vpow2.f32 %v2031_v43 }
0x137f   :  { %v4241_v44 = vpop.eup %4240 }
0x1380   :  { %v2039_v45 = vsel %vm289_vm4, %v4241_v44, 0.0 }
0x1381   :  { %v4243_v46 = vpop.eup %4242  ;;  %2040 = vadd.xlane.f32.xlu1 %v2039_v45 }
0x1382   :  { %v2042_v38 = vsel %vm289_vm4, %v4243_v46, 0.0 }
0x1383   :  { %2043 = vadd.xlane.f32.xlu0 %v2042_v38 }
0x1392   :  { %2102 = vrot.lane.b32.xlu1 %v4802_v9, %s4325_s27 }
0x1396   :  { %2202 = vrot.lane.b32.xlu1 %v4802_v9, %s4327_s29 }
0x1399   :  { %2204 = vrot.lane.b32.xlu0 %v4802_v9, %s4326_s28 }
0x13b8   :  { %2013 = vmax.xlane.f32.xlu0 %v2012_v41 }
0x13ba   :  { %2010 = vmax.xlane.f32.xlu1 %v2009_v47 }
0x140e   :  { %v2041_v48 = vpop.xlane.xlu1 %2040 }
0x140f   :  { %4244 = vrcp.f32 %v2041_v48 }
0x1410   :  { %v2044_v49 = vpop.xlane.xlu0 %2043 }
0x1411   :  { %4246 = vrcp.f32 %v2044_v49 }
0x1412   :  { %v2103_v17 = vpop.permute.xlu1 %2102 }
0x1413   :  { %3962 = vmatpush3.bf16.msra.mxu0 %v2103_v17 }
0x1414   :  { %3973 = vmatprep.subr.bf16.mxu0 %v4322_v8  ;;  %v2205_v52 = vpop.permute.xlu0 %2204 }
0x1415   :  { %v2210_v57 = vsel %vm183_vm2, %v2205_v52, 0 }
0x1416   :  { %v2203_v60 = vpop.permute.xlu1 %2202 }
0x1419   :  { %v4245_v22 = vpop.eup %4244 }
0x141a   :  { %v2051_v50 = vmul.f32 %v4245_v22, %v4241_v44 }
0x141b   :  { %v4247_v24 = vpop.eup %4246 }
0x141c   :  { %v2052_v51 = vmul.f32 %v4247_v24, %v4243_v46 }
0x141e   :  { %v2054_v54 = vpack.c.bf16 %v2052_v51, %v2051_v50 }
0x1420   :  { %3964 = vmatmul.mubr.msk.bf16.vlgmr.msra.gmra.mrb[40].mxu0 %vm289_vm4, %v2054_v54 }
0x1421   :  { %3974 = vmatpush3.bf16.xpose.msra.mxu0 %v2210_v57  ;;  %3975 = vmatprep.mubr.msk.bf16.mxu0 %vm4323_vm1, %v4322_v8 }
0x1422   :  { %3985 = vmatprep.subr.bf16.mxu0 %v4322_v8 }
0x1428   :  { %3976 = vmatmul.mubr.msk.bf16.vlgmr.msra.gmra.mrb[44].mxu0 %vm183_vm2, %v2203_v60 }
0x1429   :  { %3987 = vmatprep.mubr.msk.bf16.mxu0 %vm4323_vm1, %v4322_v8 }
0x1445   :  { %v2014_v61 = vpop.xlane.xlu0 %2013 }
0x1446   :  { %v2022_v19 = vsub.f32 %v2006_v55, %v2014_v61 }
0x1447   :  { %v2011_v18 = vpop.xlane.xlu1 %2010 }
0x1448   :  { %v2027_v0 = vmul.f32 1.442695, %v2022_v19  ;;  %v2021_v1 = vsub.f32 %v2005_v56, %v2011_v18 }
0x144a   :  { %4248 = vpow2.f32 %v2027_v0  ;;  %v2025_v2 = vmul.f32 1.442695, %v2021_v1 }
0x144c   :  { %4250 = vpow2.f32 %v2025_v2 }
0x1454   :  { %v4249_v3 = vpop.eup %4248 }
0x1455   :  { %v2036_v4 = vsel %vm289_vm4, %v4249_v3, 0.0 }
0x1456   :  { %v4251_v5 = vpop.eup %4250  ;;  %2037 = vadd.xlane.f32.xlu1 %v2036_v4 }
0x1457   :  { %v2033_v6 = vsel %vm289_vm4, %v4251_v5, 0.0 }
0x1458   :  { %2034 = vadd.xlane.f32.xlu0 %v2033_v6 }
0x1467   :  { %2153 = vrot.lane.b32.xlu1 %v4804_v10, %s4326_s28 }
0x146b   :  { %2151 = vrot.lane.b32.xlu1 %v4804_v10, %s4327_s29 }
0x146e   :  { %2055 = vrot.lane.b32.xlu0 %v4804_v10, %s4325_s27 }
0x14e3   :  { %v2038_v7 = vpop.xlane.xlu1 %2037 }
0x14e4   :  { %4252 = vrcp.f32 %v2038_v7 }
0x14e5   :  { %v2035_v11 = vpop.xlane.xlu0 %2034 }
0x14e6   :  { %4254 = vrcp.f32 %v2035_v11 }
0x14e7   :  { %v2154_v20 = vpop.permute.xlu1 %2153 }
0x14e8   :  { %v2159_v26 = vsel %vm183_vm2, %v2154_v20, 0 }
0x14e9   :  { %v2056_v12 = vpop.permute.xlu0 %2055 }
0x14ea   :  { %3956 = vmatpush3.bf16.msra.mxu1 %v2056_v12 }
0x14eb   :  { %3967 = vmatprep.subr.bf16.mxu1 %v4322_v8  ;;  %v2152_v32 = vpop.permute.xlu1 %2151 }
0x14ee   :  { %v4253_v13 = vpop.eup %4252 }
0x14ef   :  { %v2050_v15 = vmul.f32 %v4253_v13, %v4249_v3 }
0x14f0   :  { %v4255_v14 = vpop.eup %4254 }
0x14f1   :  { %v2049_v16 = vmul.f32 %v4255_v14, %v4251_v5 }
0x14f3   :  { %v4860_v21 = vpop.f32.mrb[40].mxu0  ;;  %v2053_v23 = vpack.c.bf16 %v2050_v15, %v2049_v16 }
0x14f4   :  { %v3965_v25 = vpop.f32.mrb[41].mxu0 }
0x14f5   :  { %3958 = vmatmul.mubr.msk.bf16.vlgmr.msra.gmra.mrb[52].mxu1 %vm289_vm4, %v2053_v23  ;;  %v4864_v27 = vpop.f32.mrb[42].mxu0 }
0x14f6   :  { %v2150_v28 = vpack.c.bf16 %v4864_v27, %v4860_v21  ;;  %3968 = vmatpush3.bf16.xpose.msra.mxu1 %v2159_v26  ;;  %v3966_v30 = vpop.f32.mrb[43].mxu0  ;;  %3969 = vmatprep.mubr.msk.bf16.mxu1 %vm4323_vm1, %v4322_v8 }
0x14f7   :  { %3979 = vmatprep.subr.bf16.mxu1 %v4322_v8 }
0x14fb   :  { %v2246_v31 = vpop.f32.mrb[44].mxu0 }
0x14fc   :  { %v2255_v33 = vmul.f32 0.35355338, %v2246_v31  ;;  %v3977_v34 = vpop.f32.mrb[45].mxu0 }
0x14fd   :  { %3970 = vmatmul.mubr.msk.bf16.vlgmr.msra.gmra.mrb[56].mxu1 %vm183_vm2, %v2152_v32  ;;  %v2249_v35 = vpop.f32.mrb[46].mxu0 }
0x14fe   :  { %v2259_v36 = vsel %vm65_vm3, %v2255_v33, -1e+30  ;;  %v2256_v37 = vmul.f32 0.35355338, %v2249_v35  ;;  %v3978_v39 = vpop.f32.mrb[47].mxu0  ;;  %3981 = vmatprep.mubr.msk.bf16.mxu1 %vm4323_vm1, %v4322_v8 }
0x14ff   :  { %v2267_v42 = vsel %vm289_vm4, %v2259_v36, -inf }
0x1500   :  { %2268 = vmax.xlane.f32.xlu0 %v2267_v42  ;;  %v2260_v43 = vsel %vm65_vm3, %v2256_v37, -1e+30 }
0x1501   :  { %v2270_v44 = vsel %vm289_vm4, %v2260_v43, -inf }
0x1502   :  { %2271 = vmax.xlane.f32.xlu1 %v2270_v44 }
0x1513   :  { %2354 = vrot.lane.b32.xlu1 %v4802_v9, %s4330_s19 }
0x1517   :  { %2519 = vrot.lane.b32.xlu1 %v4804_v10, %s5160_s2 }
0x151b   :  { %2572 = vrot.lane.b32.xlu1 %v4802_v9, %s5161_s25 }
0x158d   :  { %v2269_v45 = vpop.xlane.xlu0 %2268 }
0x158e   :  { %v2275_v46 = vsub.f32 %v2259_v36, %v2269_v45 }
0x158f   :  { %v2272_v38 = vpop.xlane.xlu1 %2271 }
0x1590   :  { %v2281_v40 = vmul.f32 1.442695, %v2275_v46  ;;  %v2276_v53 = vsub.f32 %v2260_v43, %v2272_v38 }
0x1592   :  { %4256 = vpow2.f32 %v2281_v40  ;;  %v2283_v55 = vmul.f32 1.442695, %v2276_v53 }
0x1593   :  { %v2355_v56 = vpop.permute.xlu1 %2354 }
0x1594   :  { %4258 = vpow2.f32 %v2283_v55  ;;  %3986 = vmatpush3.bf16.msra.mxu0 %v2355_v56 }
0x1595   :  { %4003 = vmatprep.subr.bf16.mxu0 %v4322_v8 }
0x1597   :  { %v2520_v14 = vpop.permute.xlu1 %2519 }
0x159b   :  { %v2573_v16 = vpop.permute.xlu1 %2572 }
0x159c   :  { %v4257_v41 = vpop.eup %4256  ;;  %v2578_v20 = vsel %vm183_vm2, %v2573_v16, 0 }
0x159d   :  { %v2291_v47 = vsel %vm289_vm4, %v4257_v41, 0.0 }
0x159e   :  { %v4259_v48 = vpop.eup %4258  ;;  %2292 = vadd.xlane.f32.xlu0 %v2291_v47 }
0x159f   :  { %v2294_v49 = vsel %vm289_vm4, %v4259_v48, 0.0 }
0x15a2   :  { %2295 = vadd.xlane.f32.xlu0 %v2294_v49 }
0x15b8   :  { %2521 = vrot.lane.b32.xlu0 %v4804_v10, %s5161_s25 }
0x15bc   :  { %2570 = vrot.lane.b32.xlu0 %v4802_v9, %s5160_s2 }
0x15c8   :  { %v4893_v17 = vpop.f32.mrb[52].mxu1 }
0x15c9   :  { %v3959_v22 = vpop.f32.mrb[53].mxu1 }
0x15ca   :  { %v4895_v24 = vpop.f32.mrb[54].mxu1 }
0x15cb   :  { %v2149_v50 = vpack.c.bf16 %v4895_v24, %v4893_v17  ;;  %v3960_v51 = vpop.f32.mrb[55].mxu1 }
0x15d0   :  { %v2195_v52 = vpop.f32.mrb[56].mxu1 }
0x15d1   :  { %v2253_v54 = vmul.f32 0.35355338, %v2195_v52  ;;  %v3971_v57 = vpop.f32.mrb[57].mxu1 }
0x15d2   :  { %v2198_v60 = vpop.f32.mrb[58].mxu1 }
0x15d3   :  { %v2254_v61 = vmul.f32 0.35355338, %v2198_v60  ;;  %v3972_v19 = vpop.f32.mrb[59].mxu1  ;;  %v2257_v18 = vsel %vm65_vm3, %v2253_v54, -1e+30 }
0x15d4   :  { %v2261_v0 = vsel %vm289_vm4, %v2257_v18, -inf }
0x15d5   :  { %2262 = vmax.xlane.f32.xlu1 %v2261_v0  ;;  %v2258_v1 = vsel %vm65_vm3, %v2254_v61, -1e+30 }
0x15d6   :  { %v2264_v2 = vsel %vm289_vm4, %v2258_v1, -inf }
0x15db   :  { %2265 = vmax.xlane.f32.xlu0 %v2264_v2 }
0x162b   :  { %v2293_v3 = vpop.xlane.xlu0 %2292 }
0x162c   :  { %4260 = vrcp.f32 %v2293_v3 }
0x162f   :  { %v2296_v4 = vpop.xlane.xlu0 %2295 }
0x1630   :  { %4262 = vrcp.f32 %v2296_v4 }
0x1633   :  { %v2522_v12 = vpop.permute.xlu0 %2521 }
0x1634   :  { %v2527_v15 = vsel %vm183_vm2, %v2522_v12, 0  ;;  %v3573_v12 = vld [vmem:[%s5127_s3 + $0x14] sm:$0xf] }
0x1636   :  { %v4261_v5 = vpop.eup %4260 }
0x1637   :  { %v2303_v7 = vmul.f32 %v4261_v5, %v4257_v41  ;;  %v2571_v23 = vpop.permute.xlu0 %2570 }
0x163a   :  { %v4263_v6 = vpop.eup %4262 }
0x163b   :  { %v2304_v11 = vmul.f32 %v4263_v6, %v4259_v48 }
0x163d   :  { %v2306_v13 = vpack.c.bf16 %v2304_v11, %v2303_v7 }
0x163f   :  { %3988 = vmatmul.mubr.msk.bf16.vlgmr.msra.gmra.mrb[48].mxu0 %vm289_vm4, %v2306_v13  ;;  %v2410_v13 = vsel %vm690_vm5, %v3573_v12, 0 }
0x1640   :  { %4004 = vmatpush3.bf16.xpose.msra.mxu0 %v2527_v15  ;;  %4005 = vmatprep.mubr.msk.bf16.mxu0 %vm4323_vm1, %v4322_v8 }
0x1641   :  { %4009 = vmatprep.subr.bf16.mxu0 %v4322_v8 }
0x1647   :  { %4006 = vmatmul.mubr.msk.bf16.vlgmr.msra.gmra.mrb[52].mxu0 %vm183_vm2, %v2520_v14  ;;  %v3572_v14 = vld [vmem:[%s5127_s3 + $0x10] sm:$0xf] }
0x1648   :  { %4010 = vmatpush3.bf16.xpose.msra.mxu0 %v2578_v20  ;;  %4011 = vmatprep.mubr.msk.bf16.mxu0 %vm4323_vm1, %v4322_v8 }
0x1649   :  { %4021 = vmatprep.subr.bf16.mxu0 %v4322_v8 }
0x164f   :  { %4012 = vmatmul.mubr.msk.bf16.vlgmr.msra.gmra.mrb[56].mxu0 %vm183_vm2, %v2571_v23 }
0x1650   :  { %4023 = vmatprep.mubr.msk.bf16.mxu0 %vm4323_vm1, %v4322_v8 }
0x1662   :  { %v2263_v25 = vpop.xlane.xlu1 %2262 }
0x1663   :  { %v2273_v26 = vsub.f32 %v2257_v18, %v2263_v25 }
0x1665   :  { %v2277_v30 = vmul.f32 1.442695, %v2273_v26 }
0x1667   :  { %4264 = vpow2.f32 %v2277_v30 }
0x1668   :  { %v2266_v31 = vpop.xlane.xlu0 %2265 }
0x1669   :  { %v2274_v32 = vsub.f32 %v2258_v1, %v2266_v31 }
0x166b   :  { %v2279_v33 = vmul.f32 1.442695, %v2274_v32 }
0x166d   :  { %4266 = vpow2.f32 %v2279_v33 }
0x1671   :  { %v4265_v34 = vpop.eup %4264 }
0x1672   :  { %v2285_v35 = vsel %vm289_vm4, %v4265_v34, 0.0 }
0x1673   :  { %2286 = vadd.xlane.f32.xlu0 %v2285_v35 }
0x1677   :  { %v4267_v36 = vpop.eup %4266 }
0x1678   :  { %v2288_v37 = vsel %vm289_vm4, %v4267_v36, 0.0 }
0x1679   :  { %2289 = vadd.xlane.f32.xlu1 %v2288_v37 }
0x1689   :  { %2307 = vrot.lane.b32.xlu0 %v4804_v10, %s4330_s19 }
0x1700   :  { %v2287_v39 = vpop.xlane.xlu0 %2286 }
0x1701   :  { %4268 = vrcp.f32 %v2287_v39 }
0x1704   :  { %v2308_v42 = vpop.permute.xlu0 %2307 }
0x1705   :  { %3980 = vmatpush3.bf16.msra.mxu1 %v2308_v42 }
0x1706   :  { %v2290_v43 = vpop.xlane.xlu1 %2289  ;;  %4119 = vmatprep.subr.msk.bf16.mxu1 %vm690_vm5, %v3573_v12 }
0x1707   :  { %4270 = vrcp.f32 %v2290_v43 }
0x170b   :  { %v4269_v44 = vpop.eup %4268 }
0x170c   :  { %v2301_v46 = vmul.f32 %v4269_v44, %v4265_v34 }
0x1711   :  { %v4271_v45 = vpop.eup %4270 }
0x1712   :  { %v2302_v38 = vmul.f32 %v4271_v45, %v4267_v36  ;;  %v4922_v40 = vpop.f32.mrb[48].mxu0 }
0x1713   :  { %v3989_v53 = vpop.f32.mrb[49].mxu0 }
0x1714   :  { %v4924_v55 = vpop.f32.mrb[50].mxu0  ;;  %v2305_v56 = vpack.c.bf16 %v2302_v38, %v2301_v46  ;;  %v2468_v53 = vsel %vm690_vm5, %v3572_v14, 0 }
0x1715   :  { %v2402_v41 = vpack.c.bf16 %v4924_v55, %v4922_v40  ;;  %v3990_v47 = vpop.f32.mrb[51].mxu0 }
0x1716   :  { %3982 = vmatmul.mubr.msk.bf16.vlgmr.msra.gmra.mrb[60].mxu1 %vm289_vm4, %v2305_v56 }
0x1717   :  { %3992 = vmatpush3.bf16.msra.mxu1 %v2410_v13 }
0x1718   :  { %4120 = vmatprep.subr.msk.bf16.mxu1 %vm690_vm5, %v3572_v14 }
0x171a   :  { %v2563_v48 = vpop.f32.mrb[52].mxu0 }
0x171b   :  { %v2621_v49 = vmul.f32 0.35355338, %v2563_v48  ;;  %v4007_v22 = vpop.f32.mrb[53].mxu0 }
0x171c   :  { %v2566_v51 = vpop.f32.mrb[54].mxu0 }
0x171d   :  { %v2622_v52 = vmul.f32 0.35355338, %v2566_v51  ;;  %v4008_v54 = vpop.f32.mrb[55].mxu0  ;;  %v2625_v57 = vsel %vm65_vm3, %v2621_v49, -1e+30 }
0x171e   :  { %v2629_v60 = vsel %vm289_vm4, %v2625_v57, -inf }
0x171f   :  { %2630 = vmax.xlane.f32.xlu1 %v2629_v60  ;;  %v2626_v61 = vsel %vm65_vm3, %v2622_v52, -1e+30 }
0x1720   :  { %v2632_v18 = vsel %vm289_vm4, %v2626_v61, -inf }
0x1722   :  { %v2614_v19 = vpop.f32.mrb[56].mxu0 }
0x1723   :  { %v2623_v0 = vmul.f32 0.35355338, %v2614_v19  ;;  %v4013_v1 = vpop.f32.mrb[57].mxu0  ;;  %2633 = vmax.xlane.f32.xlu1 %v2632_v18 }
0x1724   :  { %v2617_v2 = vpop.f32.mrb[58].mxu0  ;;  %v3574_v1 = vld [vmem:[%s5127_s3 + $0x18] sm:$0xf] }
0x1725   :  { %v2624_v3 = vmul.f32 0.35355338, %v2617_v2  ;;  %v4014_v4 = vpop.f32.mrb[59].mxu0  ;;  %v2627_v5 = vsel %vm65_vm3, %v2623_v0, -1e+30  ;;  %v2778_v2 = vsel %vm690_vm5, %v3574_v1, 0 }
0x1726   :  { %v2635_v6 = vsel %vm289_vm4, %v2627_v5, -inf }
0x1727   :  { %2636 = vmax.xlane.f32.xlu1 %v2635_v6  ;;  %v2628_v7 = vsel %vm65_vm3, %v2624_v3, -1e+30 }
0x1728   :  { %v2638_v11 = vsel %vm289_vm4, %v2628_v7, -inf }
0x172b   :  { %2639 = vmax.xlane.f32.xlu1 %v2638_v11 }
0x17ac   :  { %v2631_v15 = vpop.xlane.xlu1 %2630 }
0x17ad   :  { %v2641_v16 = vsub.f32 %v2625_v57, %v2631_v15 }
0x17af   :  { %v2645_v20 = vmul.f32 1.442695, %v2641_v16 }
0x17b0   :  { %v2634_v23 = vpop.xlane.xlu1 %2633 }
0x17b1   :  { %4272 = vpow2.f32 %v2645_v20  ;;  %v2642_v25 = vsub.f32 %v2626_v61, %v2634_v23 }
0x17b3   :  { %v2647_v26 = vmul.f32 1.442695, %v2642_v25 }
0x17b4   :  { %v2637_v34 = vpop.xlane.xlu1 %2636 }
0x17b5   :  { %4274 = vpow2.f32 %v2647_v26  ;;  %v2643_v35 = vsub.f32 %v2627_v5, %v2637_v34 }
0x17b7   :  { %v2649_v37 = vmul.f32 1.442695, %v2643_v35 }
0x17b8   :  { %v2640_v36 = vpop.xlane.xlu1 %2639 }
0x17b9   :  { %v2644_v39 = vsub.f32 %v2628_v7, %v2640_v36  ;;  %4276 = vpow2.f32 %v2649_v37 }
0x17bb   :  { %v4273_v30 = vpop.eup %4272  ;;  %v2651_v42 = vmul.f32 1.442695, %v2644_v39 }
0x17bc   :  { %v2653_v31 = vsel %vm289_vm4, %v4273_v30, 0.0 }
0x17bd   :  { %2654 = vadd.xlane.f32.xlu1 %v2653_v31  ;;  %4278 = vpow2.f32 %v2651_v42 }
0x17bf   :  { %v4275_v32 = vpop.eup %4274 }
0x17c0   :  { %v2656_v33 = vsel %vm289_vm4, %v4275_v32, 0.0 }
0x17c1   :  { %2657 = vadd.xlane.f32.xlu0 %v2656_v33 }
0x17c3   :  { %v4277_v56 = vpop.eup %4276 }
0x17c4   :  { %v2659_v47 = vsel %vm289_vm4, %v4277_v56, 0.0 }
0x17c7   :  { %v4279_v48 = vpop.eup %4278 }
0x17c8   :  { %v2662_v49 = vsel %vm289_vm4, %v4279_v48, 0.0 }
0x17ce   :  { %2675 = vrot.lane.b32.xlu1 %v4804_v10, %s5162_s1 }
0x17d7   :  { %2886 = vrot.lane.b32.xlu0 %v4802_v9, %s5163_s18 }
0x17e9   :  { %v2347_v43 = vpop.f32.mrb[60].mxu1 }
0x17ea   :  { %v3983_v44 = vpop.f32.mrb[61].mxu1 }
0x17eb   :  { %v2350_v45 = vpop.f32.mrb[62].mxu1 }
0x17ec   :  { %v2401_v46 = vpack.c.bf16 %v2350_v45, %v2347_v43  ;;  %v3984_v38 = vpop.f32.mrb[63].mxu1 }
0x17ee   :  { %3993 = vmatprep.mubr.msk.bf16.mxu1 %vm183_vm2, %v2401_v46 }
0x17ef   :  { %3994 = vmatmul.mubr.msk.bf16.vlgmr.msra.gmra.mrb[64].mxu1 %vm183_vm2, %v2402_v41 }
0x17f0   :  { %3999 = vmatprep.mubr.msk.bf16.mxu1 %vm183_vm2, %v2149_v50  ;;  %3998 = vmatpush3.bf16.msra.mxu1 %v2468_v53 }
0x17f1   :  { %4015 = vmatprep.subr.bf16.mxu1 %v4322_v8 }
0x17f2   :  { %2660 = vadd.xlane.f32.xlu1 %v2659_v47 }
0x17f6   :  { %2663 = vadd.xlane.f32.xlu1 %v2662_v49 }
0x17fb   :  { %4000 = vmatmul.mubr.msk.bf16.vlgmr.msra.gmra.mrb[64].mxu1 %vm183_vm2, %v2150_v28 }
0x17fc   :  { %4017 = vmatprep.mubr.msk.bf16.mxu1 %vm4323_vm1, %v4322_v8 }
0x1807   :  { %2722 = vrot.lane.b32.xlu1 %v4802_v9, %s5162_s1 }
0x180b   :  { %2835 = vrot.lane.b32.xlu1 %v4804_v10, %s5163_s18 }
0x180f   :  { %2833 = vrot.lane.b32.xlu1 %v4804_v10, %s5164_s0 }
0x1813   :  { %2884 = vrot.lane.b32.xlu1 %v4802_v9, %s5164_s0 }
0x184a   :  { %v2655_v17 = vpop.xlane.xlu1 %2654 }
0x184b   :  { %4280 = vrcp.f32 %v2655_v17 }
0x184e   :  { %v2676_v21 = vpop.permute.xlu1 %2675  ;;  %v2658_v27 = vpop.xlane.xlu0 %2657 }
0x184f   :  { %4282 = vrcp.f32 %v2658_v27  ;;  %4016 = vmatpush3.bf16.msra.mxu1 %v2676_v21 }
0x1850   :  { %4121 = vmatprep.subr.msk.bf16.mxu1 %vm690_vm5, %v3574_v1 }
0x1852   :  { %v2887_v13 = vpop.permute.xlu0 %2886 }
0x1853   :  { %v2892_v20 = vsel %vm183_vm2, %v2887_v13, 0 }
0x1855   :  { %v4281_v28 = vpop.eup %4280 }
0x1856   :  { %v2669_v50 = vmul.f32 %v4281_v28, %v4273_v30 }
0x1859   :  { %v4283_v24 = vpop.eup %4282 }
0x185a   :  { %v2670_v40 = vmul.f32 %v4283_v24, %v4275_v32 }
0x185c   :  { %v2673_v55 = vpack.c.bf16 %v2670_v40, %v2669_v50 }
0x185e   :  { %4018 = vmatmul.mubr.msk.bf16.vlgmr.msra.gmra.mrb[68].mxu1 %vm289_vm4, %v2673_v55 }
0x185f   :  { %4028 = vmatpush3.bf16.msra.mxu1 %v2778_v2 }
0x1860   :  { %4039 = vmatprep.subr.bf16.mxu1 %v4322_v8 }
0x187f   :  { %v2661_v41 = vpop.xlane.xlu1 %2660 }
0x1880   :  { %4284 = vrcp.f32 %v2661_v41 }
0x1883   :  { %v2664_v22 = vpop.xlane.xlu1 %2663 }
0x1884   :  { %4286 = vrcp.f32 %v2664_v22 }
0x1887   :  { %v2723_v51 = vpop.permute.xlu1 %2722 }
0x1888   :  { %4022 = vmatpush3.bf16.msra.mxu0 %v2723_v51 }
0x1889   :  { %4033 = vmatprep.subr.bf16.mxu0 %v4322_v8 }
0x188a   :  { %v4285_v52 = vpop.eup %4284 }
0x188b   :  { %v2671_v57 = vmul.f32 %v4285_v52, %v4277_v56  ;;  %v2836_v61 = vpop.permute.xlu1 %2835 }
0x188c   :  { %v2841_v18 = vsel %vm183_vm2, %v2836_v61, 0 }
0x188e   :  { %v4287_v54 = vpop.eup %4286 }
0x188f   :  { %v2672_v60 = vmul.f32 %v4287_v54, %v4279_v48  ;;  %v2834_v0 = vpop.permute.xlu1 %2833 }
0x1891   :  { %v2674_v19 = vpack.c.bf16 %v2672_v60, %v2671_v57 }
0x1893   :  { %4024 = vmatmul.mubr.msk.bf16.vlgmr.msra.gmra.mrb[60].mxu0 %vm289_vm4, %v2674_v19  ;;  %v2885_v34 = vpop.permute.xlu1 %2884 }
0x1894   :  { %4034 = vmatpush3.bf16.xpose.msra.mxu0 %v2841_v18  ;;  %4035 = vmatprep.mubr.msk.bf16.mxu0 %vm4323_vm1, %v4322_v8 }
0x1895   :  { %4045 = vmatprep.subr.bf16.mxu0 %v4322_v8 }
0x189b   :  { %4036 = vmatmul.mubr.msk.bf16.vlgmr.msra.gmra.mrb[64].mxu0 %vm183_vm2, %v2834_v0 }
0x189c   :  { %4047 = vmatprep.mubr.msk.bf16.mxu0 %vm4323_vm1, %v4322_v8 }
0x1931   :  { %v2715_v3 = vpop.f32.mrb[68].mxu1 }
0x1932   :  { %v4019_v4 = vpop.f32.mrb[69].mxu1 }
0x1933   :  { %v2718_v5 = vpop.f32.mrb[70].mxu1 }
0x1934   :  { %v2769_v6 = vpack.c.bf16 %v2718_v5, %v2715_v3  ;;  %v4020_v7 = vpop.f32.mrb[71].mxu1 }
0x1936   :  { %4029 = vmatprep.mubr.msk.bf16.mxu1 %vm183_vm2, %v2769_v6 }
0x1966   :  { %v2762_v11 = vpop.f32.mrb[60].mxu0 }
0x1967   :  { %v4025_v12 = vpop.f32.mrb[61].mxu0 }
0x1968   :  { %v2765_v14 = vpop.f32.mrb[62].mxu0 }
0x1969   :  { %v2770_v15 = vpack.c.bf16 %v2765_v14, %v2762_v11  ;;  %v4026_v16 = vpop.f32.mrb[63].mxu0 }
0x196b   :  { %4030 = vmatmul.mubr.msk.bf16.vlgmr.msra.gmra.mrb[64].mxu1 %vm183_vm2, %v2770_v15  ;;  %v3575_v15 = vld [vmem:[%s5127_s3 + $0x1c] sm:$0xf] }
0x196c   :  { %4040 = vmatpush3.bf16.xpose.msra.mxu1 %v2892_v20  ;;  %4041 = vmatprep.mubr.msk.bf16.mxu1 %vm4323_vm1, %v4322_v8  ;;  %v3092_v16 = vsel %vm690_vm5, %v3575_v15, 0 }
0x196d   :  { %4051 = vmatprep.subr.bf16.mxu1 %v4322_v8 }
0x196e   :  { %v2877_v23 = vpop.f32.mrb[64].mxu0 }
0x196f   :  { %v2935_v25 = vmul.f32 0.35355338, %v2877_v23  ;;  %v4037_v26 = vpop.f32.mrb[65].mxu0 }
0x1970   :  { %v2880_v30 = vpop.f32.mrb[66].mxu0 }
0x1971   :  { %v2939_v31 = vsel %vm65_vm3, %v2935_v25, -1e+30  ;;  %v2936_v32 = vmul.f32 0.35355338, %v2880_v30  ;;  %v4038_v33 = vpop.f32.mrb[67].mxu0 }
0x1972   :  { %v2943_v35 = vsel %vm289_vm4, %v2939_v31, -inf }
0x1973   :  { %v2940_v36 = vsel %vm65_vm3, %v2936_v32, -1e+30  ;;  %2944 = vmax.xlane.f32.xlu1 %v2943_v35  ;;  %4042 = vmatmul.mubr.msk.bf16.vlgmr.msra.gmra.mrb[72].mxu1 %vm183_vm2, %v2885_v34 }
0x1974   :  { %v2946_v37 = vsel %vm289_vm4, %v2940_v36, -inf  ;;  %4053 = vmatprep.mubr.msk.bf16.mxu1 %vm4323_vm1, %v4322_v8 }
0x1975   :  { %2947 = vmax.xlane.f32.xlu0 %v2946_v37 }
0x1a00   :  { %v2945_v39 = vpop.xlane.xlu1 %2944 }
0x1a01   :  { %v2955_v42 = vsub.f32 %v2939_v31, %v2945_v39 }
0x1a02   :  { %v2948_v46 = vpop.xlane.xlu0 %2947 }
0x1a03   :  { %v2959_v43 = vmul.f32 1.442695, %v2955_v42  ;;  %v2956_v38 = vsub.f32 %v2940_v36, %v2948_v46  ;;  %v3632_v36 = vld [vmem:[%s5128_s4 + $0x1] ss:$0 sm:$0xff] }
0x1a05   :  { %4288 = vpow2.f32 %v2959_v43  ;;  %v2961_v53 = vmul.f32 1.442695, %v2956_v38 }
0x1a07   :  { %4290 = vpow2.f32 %v2961_v53 }
0x1a0f   :  { %v4289_v44 = vpop.eup %4288 }
0x1a10   :  { %v2967_v45 = vsel %vm289_vm4, %v4289_v44, 0.0 }
0x1a11   :  { %2968 = vadd.xlane.f32.xlu0 %v2967_v45  ;;  %v4291_v50 = vpop.eup %4290 }
0x1a12   :  { %v2970_v40 = vsel %vm289_vm4, %v4291_v50, 0.0 }
0x1a46   :  { %v2928_v56 = vpop.f32.mrb[72].mxu1 }
0x1a47   :  { %v2937_v47 = vmul.f32 0.35355338, %v2928_v56  ;;  %v4043_v48 = vpop.f32.mrb[73].mxu1 }
0x1a48   :  { %v2931_v49 = vpop.f32.mrb[74].mxu1 }
0x1a49   :  { %v2941_v8 = vsel %vm65_vm3, %v2937_v47, -1e+30  ;;  %v2938_v17 = vmul.f32 0.35355338, %v2931_v49  ;;  %v4044_v21 = vpop.f32.mrb[75].mxu1 }
0x1a4a   :  { %v2949_v27 = vsel %vm289_vm4, %v2941_v8, -inf }
0x1a4b   :  { %v2942_v28 = vsel %vm65_vm3, %v2938_v17, -1e+30  ;;  %2950 = vmax.xlane.f32.xlu1 %v2949_v27 }
0x1a4c   :  { %v2952_v24 = vsel %vm289_vm4, %v2942_v28, -inf }
0x1a4f   :  { %2953 = vmax.xlane.f32.xlu1 %v2952_v24 }
0x1a53   :  { %2971 = vadd.xlane.f32.xlu1 %v2970_v40 }
0x1a9e   :  { %v2969_v18 = vpop.xlane.xlu0 %2968 }
0x1ad8   :  { %v2951_v55 = vpop.xlane.xlu1 %2950 }
0x1ad9   :  { %v2957_v41 = vsub.f32 %v2941_v8, %v2951_v55 }
0x1adb   :  { %v2963_v22 = vmul.f32 1.442695, %v2957_v41 }
0x1adc   :  { %v2954_v51 = vpop.xlane.xlu1 %2953 }
0x1add   :  { %4292 = vpow2.f32 %v2963_v22  ;;  %v2958_v52 = vsub.f32 %v2942_v28, %v2954_v51 }
0x1adf   :  { %v2965_v54 = vmul.f32 1.442695, %v2958_v52 }
0x1ae0   :  { %v2972_v19 = vpop.xlane.xlu1 %2971 }
0x1ae1   :  { %4294 = vpow2.f32 %v2965_v54 }
0x1ae2   :  { %4296 = vrcp.f32 %v2972_v19 }
0x1ae3   :  { %4298 = vrcp.f32 %v2969_v18  ;;  %v4150_v18 = vld [vmem:[%s5129_s7 + $0x10] sm:$0xff]  }
0x1ae7   :  { %v4293_v57 = vpop.eup %4292 }
0x1ae8   :  { %v2973_v29 = vsel %vm289_vm4, %v4293_v57, 0.0 }
0x1ae9   :  { %2974 = vadd.xlane.f32.xlu0 %v2973_v29 }
0x1aeb   :  { %v4295_v60 = vpop.eup %4294 }
0x1aec   :  { %v2976_v61 = vsel %vm289_vm4, %v4295_v60, 0.0  ;;  %v4297_v0 = vpop.eup %4296 }
0x1aed   :  { %2977 = vadd.xlane.f32.xlu1 %v2976_v61  ;;  %v4299_v2 = vpop.eup %4298  ;;  %v2984_v3 = vmul.f32 %v4297_v0, %v4291_v50  ;;  %v4151_v0 = vld [vmem:[%s5129_s7 + $0x18] sm:$0xff]  }
0x1aee   :  { %v2983_v4 = vmul.f32 %v4299_v2, %v4289_v44 }
0x1af0   :  { %v2987_v7 = vpack.c.bf16 %v2984_v3, %v2983_v4 }
0x1afe   :  { %3036 = vrot.lane.b32.xlu1 %v4802_v9, %s5165_s20 }
0x1aff   :  { %2989 = vrot.lane.b32.xlu0 %v4804_v10, %s5165_s20 }
0x1b76   :  { %v2975_v1 = vpop.xlane.xlu0 %2974 }
0x1b77   :  { %4300 = vrcp.f32 %v2975_v1  ;;  %v4152_v1 = vld [vmem:[%s5130_s9 + $0x40] sm:$0xff]  }
0x1b7a   :  { %v2990_v5 = vpop.permute.xlu0 %2989  ;;  %v2978_v6 = vpop.xlane.xlu1 %2977 }
0x1b7b   :  { %4302 = vrcp.f32 %v2978_v6  ;;  %4046 = vmatpush3.bf16.msra.mxu0 %v2990_v5 }
0x1b7c   :  { %4063 = vmatprep.subr.bf16.mxu0 %v4150_v18 }
0x1b7e   :  { %4048 = vmatmul.mubr.msk.bf16.vlgmr.msra.gmra.mrb[68].mxu0 %vm289_vm4, %v2987_v7  ;;  %v3037_v9 = vpop.permute.xlu1 %3036 }
0x1b7f   :  { %4052 = vmatpush3.bf16.msra.mxu1 %v3037_v9  ;;  %4064 = vmatpush3.bf16.msra.mxu0 %v4150_v18 }
0x1b80   :  { %4122 = vmatprep.subr.msk.bf16.mxu1 %vm690_vm5, %v3575_v15  ;;  %4065 = vmatprep.subr.bf16.mxu0 %v4151_v0 }
0x1b81   :  { %v4301_v10 = vpop.eup %4300 }
0x1b82   :  { %v2985_v12 = vmul.f32 %v4301_v10, %v4293_v57 }
0x1b83   :  { %4066 = vmatpush3.bf16.msra.mxu0 %v4151_v0 }
0x1b84   :  { %4071 = vmatprep.subr.bf16.mxu0 %v4152_v1 }
0x1b85   :  { %v4303_v11 = vpop.eup %4302 }
0x1b86   :  { %v2986_v13 = vmul.f32 %v4303_v11, %v4295_v60 }
0x1b88   :  { %v2988_v14 = vpack.c.bf16 %v2986_v13, %v2985_v12 }
0x1b8a   :  { %4054 = vmatmul.mubr.msk.bf16.vlgmr.msra.gmra.mrb[76].mxu1 %vm289_vm4, %v2988_v14 }
0x1b8b   :  { %4058 = vmatpush3.bf16.msra.mxu1 %v3092_v16  ;;  %v3633_v16 = vld [vmem:[%s5131_s5 + $0x1] ss:$0 sm:$0xff] }
0x1c51   :  { %v3029_v20 = vpop.f32.mrb[68].mxu0 }
0x1c52   :  { %v4049_v23 = vpop.f32.mrb[69].mxu0 }
0x1c53   :  { %v3032_v25 = vpop.f32.mrb[70].mxu0 }
0x1c54   :  { %v3083_v26 = vpack.c.bf16 %v3032_v25, %v3029_v20  ;;  %v4050_v30 = vpop.f32.mrb[71].mxu0 }
0x1c55   :  { %v3634_v30 = vld [vmem:[%s5132_s6 + $0x1] ss:$0 sm:$0xff] }
0x1c56   :  { %4059 = vmatprep.mubr.msk.bf16.mxu1 %vm183_vm2, %v3083_v26 }
0x1c5d   :  { %v3076_v31 = vpop.f32.mrb[76].mxu1 }
0x1c5e   :  { %v4055_v32 = vpop.f32.mrb[77].mxu1 }
0x1c5f   :  { %v3079_v33 = vpop.f32.mrb[78].mxu1 }
0x1c60   :  { %v3084_v34 = vpack.c.bf16 %v3079_v33, %v3076_v31  ;;  %v4056_v35 = vpop.f32.mrb[79].mxu1 }
0x1c62   :  { %4060 = vmatmul.mubr.msk.bf16.vlgmr.msra.gmra.mrb[64].mxu1 %vm183_vm2, %v3084_v34 }
0x1d35   :  { %v4061_v37 = vpop.f32.mrb[64].mxu1 }
0x1d36   :  { %v3128_v39 = vpop.f32.mrb[65].mxu1  ;;  %v3155_v46 = vadd.f32 %v4061_v37, %v3632_v36 }
0x1d37   :  { %v3153_v42 = vadd.f32 %v3632_v36, %v3128_v39  ;;  %v4062_v43 = vpop.f32.mrb[66].mxu1 }
0x1d38   :  { %v3156_v44 = vadd.f32 %v4062_v43, %v3632_v36  ;;  %v3131_v45 = vpop.f32.mrb[67].mxu1  ;;  %v3159_v49 = vadd.f32 %v3155_v46, %v4790_v62 }
0x1d39   :  { %v3157_v38 = vadd.f32 %v3153_v42, %v4783_v58  ;;  %v3154_v53 = vadd.f32 %v3632_v36, %v3131_v45 }
0x1d3a   :  { %v3160_v56 = vadd.f32 %v3156_v44, %v4792_v63  ;;  %v3167_v21 = vsel %vm122_vm0, %v3159_v49, 0.0 }
0x1d3b   :  { %v3158_v47 = vadd.f32 %v3154_v53, %v4785_v59  ;;  %v3161_v48 = vsel %vm122_vm0, %v3157_v38, 0.0  ;;  %v4154_v53 = vld [vmem:[%s5130_s9 + $0x50] sm:$0xff]  }
0x1d3c   :  { %3162 = vadd.xlane.f32.xlu1 %v3161_v48  ;;  %v3170_v17 = vsel %vm122_vm0, %v3160_v56, 0.0  ;;  %v4157_v48 = vld [vmem:[%s5130_s9 + $0x68] sm:$0xff]  }
0x1d3d   :  { %v3164_v8 = vsel %vm122_vm0, %v3158_v47, 0.0 }
0x1d3e   :  { %3165 = vadd.xlane.f32.xlu0 %v3164_v8  ;;  %v4159_v8 = vld [vmem:[%s5130_s9 + $0x78] sm:$0xff]  }
0x1d40   :  { %3171 = vadd.xlane.f32.xlu1 %v3170_v17  ;;  %v3635_v17 = vld [vmem:[%s5133_s8 + $0x1] ss:$0 sm:$0xff] }
0x1d42   :  { %3168 = vadd.xlane.f32.xlu0 %v3167_v21 }
0x1dc9   :  { %v3163_v58 = vpop.xlane.xlu1 %3162 }
0x1dca   :  { %v3173_v27 = vmul.f32 0.03125, %v3163_v58 }
0x1dcb   :  { %v3166_v28 = vpop.xlane.xlu0 %3165 }
0x1dcc   :  { %v3177_v63 = vsub.f32 %v3157_v38, %v3173_v27  ;;  %v3174_v24 = vmul.f32 0.03125, %v3166_v28  ;;  %v4153_v38 = vld [vmem:[%s5130_s9 + $0x48] sm:$0xff]  }
0x1dcd   :  { %v3172_v59 = vpop.xlane.xlu1 %3171 }
0x1dce   :  { %v3178_v50 = vsub.f32 %v3158_v47, %v3174_v24  ;;  %v3176_v40 = vmul.f32 0.03125, %v3172_v59  ;;  %v3181_v55 = vmul.f32 %v3177_v63, %v3177_v63  ;;  %v4156_v47 = vld [vmem:[%s5130_s9 + $0x60] sm:$0xff]  }
0x1dcf   :  { %v3169_v41 = vpop.xlane.xlu0 %3168 }
0x1dd0   :  { %v3180_v62 = vsub.f32 %v3160_v56, %v3176_v40  ;;  %v3175_v22 = vmul.f32 0.03125, %v3169_v41  ;;  %v3185_v51 = vsel %vm122_vm0, %v3181_v55, 0.0  ;;  %v3182_v52 = vmul.f32 %v3178_v50, %v3178_v50  ;;  %v4155_v56 = vld [vmem:[%s5130_s9 + $0x58] sm:$0xff]  }
0x1dd1   :  { %3186 = vadd.xlane.f32.xlu0 %v3185_v51 }
0x1dd2   :  { %v3179_v54 = vsub.f32 %v3159_v49, %v3175_v22  ;;  %v3188_v57 = vsel %vm122_vm0, %v3182_v52, 0.0  ;;  %v3184_v29 = vmul.f32 %v3180_v62, %v3180_v62  ;;  %v4158_v49 = vld [vmem:[%s5130_s9 + $0x70] sm:$0xff]   ;;  %v3640_v52 = vld [vmem:[%s5134_s10 + $0x1] ss:$0 sm:$0xff] }
0x1dd3   :  { %3189 = vadd.xlane.f32.xlu1 %v3188_v57 }
0x1dd4   :  { %v3183_v60 = vmul.f32 %v3179_v54, %v3179_v54  ;;  %v3194_v61 = vsel %vm122_vm0, %v3184_v29, 0.0 }
0x1dd6   :  { %v3191_v19 = vsel %vm122_vm0, %v3183_v60, 0.0 }
0x1dd7   :  { %3195 = vadd.xlane.f32.xlu1 %v3194_v61  ;;  %3192 = vadd.xlane.f32.xlu0 %v3191_v19 }
0x1e5e   :  { %v3187_v2 = vpop.xlane.xlu0 %3186 }
0x1e5f   :  { %v3197_v3 = vmul.f32 0.03125, %v3187_v2 }
0x1e60   :  { %v3190_v4 = vpop.xlane.xlu1 %3189 }
0x1e61   :  { %v3201_v5 = vadd.f32 1e-05, %v3197_v3  ;;  %v3198_v6 = vmul.f32 0.03125, %v3190_v4 }
0x1e63   :  { %4304 = vrsqrt.f32 %v3201_v5  ;;  %v3202_v7 = vadd.f32 1e-05, %v3198_v6 }
0x1e64   :  { %v3196_v9 = vpop.xlane.xlu1 %3195  ;;  %v3193_v10 = vpop.xlane.xlu0 %3192 }
0x1e65   :  { %4306 = vrsqrt.f32 %v3202_v7  ;;  %v3200_v11 = vmul.f32 0.03125, %v3196_v9  ;;  %v3199_v12 = vmul.f32 0.03125, %v3193_v10 }
0x1e67   :  { %v3204_v13 = vadd.f32 1e-05, %v3200_v11  ;;  %v3203_v14 = vadd.f32 1e-05, %v3199_v12 }
0x1e69   :  { %4308 = vrsqrt.f32 %v3204_v13 }
0x1e6a   :  { %4310 = vrsqrt.f32 %v3203_v14 }
0x1e6d   :  { %v4305_v15 = vpop.eup %4304 }
0x1e6e   :  { %v3209_v20 = vmul.f32 %v4305_v15, %v3177_v63 }
0x1e6f   :  { %v4307_v23 = vpop.eup %4306 }
0x1e70   :  { %v3210_v25 = vmul.f32 %v4307_v23, %v3178_v50  ;;  %v3219_v26 = vmul.f32 %v3633_v16, %v3209_v20 }
0x1e72   :  { %v3220_v31 = vmul.f32 %v3633_v16, %v3210_v25  ;;  %v3229_v35 = vadd.f32 %v3634_v30, %v3219_v26 }
0x1e73   :  { %v4309_v32 = vpop.eup %4308 }
0x1e74   :  { %v4311_v33 = vpop.eup %4310  ;;  %v3212_v34 = vmul.f32 %v4309_v32, %v3180_v62  ;;  %v3230_v36 = vadd.f32 %v3634_v30, %v3220_v31 }
0x1e75   :  { %v3211_v37 = vmul.f32 %v4311_v33, %v3179_v54  ;;  %v3650_v33 = vld [vmem:[%s5136_s12 + $0x1] ss:$0 sm:$0xff] }
0x1e76   :  { %v3222_v39 = vmul.f32 %v3633_v16, %v3212_v34  ;;  %v3233_v42 = vpack.c.bf16 %v3230_v36, %v3229_v35 }
0x1e77   :  { %v3221_v43 = vmul.f32 %v3633_v16, %v3211_v37 }
0x1e78   :  { %4067 = vmatprep.mubr.msk.bf16.mxu0 %vm122_vm0, %v3233_v42  ;;  %v3232_v44 = vadd.f32 %v3634_v30, %v3222_v39 }
0x1e79   :  { %v3231_v45 = vadd.f32 %v3634_v30, %v3221_v43  ;;  %v3649_v30 = vld [vmem:[%s5135_s11 + $0x1] ss:$0 sm:$0xff] }
0x1e7b   :  { %v3234_v46 = vpack.c.bf16 %v3232_v44, %v3231_v45 }
0x1e7d   :  { %4068 = vmatmul.mubr.msk.bf16.vlgmr.msra.gmra.mrb[72].mxu0 %vm122_vm0, %v3234_v46 }
0x1e7e   :  { %4072 = vmatpush3.bf16.msra.mxu0 %v4152_v1 }
0x1e7f   :  { %4073 = vmatprep.subr.bf16.mxu0 %v4153_v38 }
0x1e82   :  { %4074 = vmatpush3.bf16.msra.mxu0 %v4153_v38 }
0x1e83   :  { %4075 = vmatprep.subr.bf16.mxu0 %v4154_v53 }
0x1e86   :  { %4076 = vmatpush3.bf16.msra.mxu0 %v4154_v53 }
0x1e87   :  { %4077 = vmatprep.subr.bf16.mxu0 %v4155_v56 }
0x1e8a   :  { %4078 = vmatpush3.bf16.msra.mxu0 %v4155_v56 }
0x1e8b   :  { %4079 = vmatprep.subr.bf16.mxu0 %v4156_v47 }
0x1e8e   :  { %4080 = vmatpush3.bf16.msra.mxu0 %v4156_v47  ;;  %v22_v47 = vstv %s5137_s16 }
0x1e8f   :  { %4081 = vmatprep.subr.bf16.mxu0 %v4157_v48  ;;  %23 = vst [vmem:[#allocation2] sm:$0x1] %v22_v47 }
0x1e92   :  { %4082 = vmatpush3.bf16.msra.mxu0 %v4157_v48 }
0x1e93   :  { %4083 = vmatprep.subr.bf16.mxu0 %v4158_v49 }
0x1e96   :  { %4084 = vmatpush3.bf16.msra.mxu0 %v4158_v49 }
0x1e97   :  { %4085 = vmatprep.subr.bf16.mxu0 %v4159_v8 }
0x1e9a   :  { %4086 = vmatpush3.bf16.msra.mxu0 %v4159_v8 }
0x1f50   :  { %v4069_v21 = vpop.f32.mrb[72].mxu0 }
0x1f51   :  { %v3302_v58 = vadd.f32 %v4069_v21, %v3635_v17  ;;  %v3293_v27 = vpop.f32.mrb[73].mxu0  ;;  %v3651_v21 = vld [vmem:[%s5138_s13] ss:$0 sm:$0xff] }
0x1f52   :  { %v3294_v28 = vadd.f32 %v3635_v17, %v3293_v27  ;;  %v4070_v63 = vpop.f32.mrb[74].mxu0  ;;  %v3652_v27 = vld [vmem:[%s5139_s14] ss:$0 sm:$0xff] }
0x1f53   :  { %v3305_v24 = vadd.f32 %v4070_v63, %v3635_v17  ;;  %v3296_v59 = vpop.f32.mrb[75].mxu0  ;;  %v3310_v40 = vmax.f32 %v3302_v58, 0.0  ;;  %v3653_v63 = vld [vmem:[%s5140_s15] ss:$0 sm:$0xff] }
0x1f54   :  { %v3297_v50 = vadd.f32 %v3635_v17, %v3296_v59  ;;  %v3308_v41 = vmax.f32 %v3294_v28, 0.0 }
0x1f55   :  { %v3311_v55 = vmax.f32 %v3305_v24, 0.0 }
0x1f56   :  { %v3309_v62 = vmax.f32 %v3297_v50, 0.0 }
0x1f57   :  { %v3313_v22 = vpack.c.bf16 %v3311_v55, %v3310_v40  ;;  %v3654_v40 = vld [vmem:[#allocation2] ss:$0 sm:$0xff] }
0x1f58   :  { %v3312_v51 = vpack.c.bf16 %v3309_v62, %v3308_v41 }
0x1f5a   :  { %4087 = vmatprep.mubr.bf16.mxu0 %v3312_v51 }
0x1f5b   :  { %4088 = vmatmul.mubr.bf16.vlgmr.msra.gmra.mrb[76].mxu0 %v3313_v22 }
0x202e   :  { %v4089_v54 = vpop.f32.mrb[76].mxu0 }
0x202f   :  { %v3410_v57 = vadd.f32 %v4089_v54, %v3640_v52  ;;  %v3402_v29 = vpop.f32.mrb[77].mxu0 }
0x2030   :  { %v3403_v60 = vadd.f32 %v3640_v52, %v3402_v29  ;;  %v4090_v61 = vpop.f32.mrb[78].mxu0 }
0x2031   :  { %v3416_v19 = vadd.f32 %v3410_v57, %v3231_v45  ;;  %v3405_v18 = vpop.f32.mrb[79].mxu0 }
0x2032   :  { %v3415_v0 = vadd.f32 %v3403_v60, %v3229_v35 }
0x2033   :  { %v3420_v1 = vsel %vm122_vm0, %v3416_v19, 0.0 }
0x2034   :  { %3421 = vadd.xlane.f32.xlu0 %v3420_v1  ;;  %v3417_v2 = vsel %vm122_vm0, %v3415_v0, 0.0 }
0x2035   :  { %3418 = vadd.xlane.f32.xlu1 %v3417_v2 }
0x20c1   :  { %v3422_v3 = vpop.xlane.xlu0 %3421 }
0x20c2   :  { %v3424_v4 = vmul.f32 0.03125, %v3422_v3  ;;  %v3419_v5 = vpop.xlane.xlu1 %3418 }
0x20c3   :  { %v3423_v6 = vmul.f32 0.03125, %v3419_v5 }
0x20c4   :  { %v3426_v7 = vsub.f32 %v3416_v19, %v3424_v4 }
0x20c5   :  { %v3425_v9 = vsub.f32 %v3415_v0, %v3423_v6 }
0x20c6   :  { %v3428_v10 = vmul.f32 %v3426_v7, %v3426_v7 }
0x20c7   :  { %v3427_v11 = vmul.f32 %v3425_v9, %v3425_v9 }
0x20c8   :  { %v3432_v12 = vsel %vm122_vm0, %v3428_v10, 0.0 }
0x20c9   :  { %3433 = vadd.xlane.f32.xlu0 %v3432_v12  ;;  %v3429_v13 = vsel %vm122_vm0, %v3427_v11, 0.0 }
0x20ca   :  { %3430 = vadd.xlane.f32.xlu1 %v3429_v13 }
0x2156   :  { %v3434_v14 = vpop.xlane.xlu0 %3433 }
0x2157   :  { %v3436_v15 = vmul.f32 0.03125, %v3434_v14  ;;  %v3431_v16 = vpop.xlane.xlu1 %3430 }
0x2158   :  { %v3435_v20 = vmul.f32 0.03125, %v3431_v16 }
0x2159   :  { %v3438_v23 = vadd.f32 1e-05, %v3436_v15 }
0x215a   :  { %v3437_v25 = vadd.f32 1e-05, %v3435_v20 }
0x215b   :  { %4312 = vrsqrt.f32 %v3438_v23 }
0x215c   :  { %4314 = vrsqrt.f32 %v3437_v25 }
0x2165   :  { %v4313_v26 = vpop.eup %4312 }
0x2166   :  { %v4315_v31 = vpop.eup %4314  ;;  %v3442_v32 = vmul.f32 %v4313_v26, %v3426_v7 }
0x2167   :  { %v3441_v34 = vmul.f32 %v4315_v31, %v3425_v9 }
0x2168   :  { %v3450_v35 = vmul.f32 %v3649_v30, %v3442_v32 }
0x2169   :  { %v3449_v36 = vmul.f32 %v3649_v30, %v3441_v34 }
0x216a   :  { %v3458_v37 = vadd.f32 %v3650_v33, %v3450_v35 }
0x216b   :  { %v3457_v39 = vadd.f32 %v3650_v33, %v3449_v36 }
0x216c   :  { %v3460_v42 = vrot.slane %v3458_v37, 7 }
0x216e   :  { %v3463_v43 = vsel %vm3462_vm6, %v3457_v39, %v3460_v42 }
0x216f   :  { %v3467_v44 = vsel %vm3466_vm7, %v3463_v43, 0.0 }
0x2170   :  { %3468 = vadd.xlane.f32.xlu0 %v3467_v44 }
0x21fd   :  { %v3469_v45 = vpop.xlane.xlu0 %3468 }
0x21fe   :  { %v3470_v46 = vmul.f32 0.03125, %v3469_v45 }
0x2200   :  { %v3471_v38 = vsub.f32 %v3463_v43, %v3470_v46 }
0x2202   :  { %v3472_v53 = vmul.f32 %v3471_v38, %v3471_v38 }
0x2204   :  { %v3473_v56 = vsel %vm3466_vm7, %v3472_v53, 0.0 }
0x2205   :  { %3474 = vadd.xlane.f32.xlu1 %v3473_v56 }
0x2292   :  { %v3475_v48 = vpop.xlane.xlu1 %3474 }
0x2293   :  { %v3476_v49 = vmul.f32 0.03125, %v3475_v48 }
0x2295   :  { %v3477_v8 = vadd.f32 1e-05, %v3476_v49 }
0x2297   :  { %4316 = vrsqrt.f32 %v3477_v8 }
0x22a1   :  { %v4317_v17 = vpop.eup %4316 }
0x22a2   :  { %v3479_v58 = vmul.f32 %v4317_v17, %v3471_v38 }
0x22a4   :  { %v3486_v28 = vmul.f32 %v3651_v21, %v3479_v58 }
0x22a6   :  { %v3493_v24 = vadd.f32 %v3652_v27, %v3486_v28 }
0x22a8   :  { %v3501_v59 = vmul.f32 %v3653_v63, %v3493_v24 }
0x22aa   :  { %v3502_v50 = vsel %vm3466_vm7, %v3501_v59, 0.0 }
0x22ab   :  { %3503 = vadd.xlane.f32.xlu0 %v3502_v50 }
0x2338   :  { %v3504_v55 = vpop.xlane.xlu0 %3503 }
0x2339   :  { %v3512_v41 = vadd.f32 %v3654_v40, %v3504_v55 }
0x233b   :  { %3514 = vst.msk [vmem:[%s5141_s17] sm:$0x3] %vm3513_vm8, %v3512_v41 }

</bundles_post_ra>
